<compile_context>
chip_gen: v6e
topology: v6e:2x2x1
jax: 0.10.0
libtpu: 0.0.40
codegen_flags: <defaults>
</compile_context>

<pallas_src>
import jax
import jax.numpy as jnp
import numpy as np
from jax import lax
from jax.experimental import pallas as pl
from jax.experimental.pallas import tpu as pltpu

_HIGHEST = lax.Precision.HIGHEST


def _rt_output_kernel(pep_ref, gly_ref, cnt_ref,
                      wsp_ref, wsg_ref, exp_p_ref, exp_g_ref,
                      pool_p_ref, pool_g_ref, alpha_ref, whead_ref, bias_ref,
                      out_ref):
    f32 = jnp.float32
    # Batch tile, loaded at native dtype (bf16 OK) and upcast in vregs.
    pep = pep_ref[...].astype(f32)          # (Bt, L*Fp)  lane-dense
    gly = gly_ref[...].astype(f32)          # (Bt, N*Fg)  lane-dense
    cnt = cnt_ref[...]                      # (Bt, 1) int32 valid-node counts

    # ---- peptide AttentionSum: gate scores via constant block-diagonal weight ----
    s_p = jnp.dot(pep, wsp_ref[...], precision=_HIGHEST,
                  preferred_element_type=f32)                       # (Bt, L)
    s_p = s_p - jnp.max(s_p, axis=1, keepdims=True)
    e_p = jnp.exp(s_p)
    a_p = e_p / jnp.sum(e_p, axis=1, keepdims=True)                 # softmax over seq

    a_full_p = jnp.dot(a_p, exp_p_ref[...], precision=_HIGHEST,
                       preferred_element_type=f32)                  # (Bt, L*Fp) broadcast on MXU
    wpep = pep * a_full_p                                           # (Bt, L*Fp)

    # ---- glycan GlobalAttentionPooling: masked softmax over this graph's nodes ----
    s_g = jnp.dot(gly, wsg_ref[...], precision=_HIGHEST,
                  preferred_element_type=f32)                       # (Bt, N)
    node = lax.broadcasted_iota(jnp.int32, s_g.shape, 1)
    valid = node < cnt                                              # (Bt, N) mask built in-kernel
    s_g = jnp.where(valid, s_g, -1e30)
    s_g = s_g - jnp.max(s_g, axis=1, keepdims=True)
    e_g = jnp.where(valid, jnp.exp(s_g), 0.0)
    denom = jnp.maximum(jnp.sum(e_g, axis=1, keepdims=True), 1e-30) # guard empty graphs
    a_g = e_g / denom                                               # (Bt, N)

    a_full_g = jnp.dot(a_g, exp_g_ref[...], precision=_HIGHEST,
                       preferred_element_type=f32)                  # (Bt, N*Fg)
    wgly = gly * a_full_g                                           # (Bt, N*Fg)

    # ---- pooled features, placed side-by-side into (Bt, Fp+Fg) by the pool matrices ----
    pooled = (jnp.dot(wpep, pool_p_ref[...], precision=_HIGHEST, preferred_element_type=f32)
              + jnp.dot(wgly, pool_g_ref[...], precision=_HIGHEST, preferred_element_type=f32))

    # ---- fused PReLU (per-lane alpha) + fused output head, batch lands on lanes ----
    act = jnp.where(pooled >= 0, pooled, alpha_ref[...] * pooled)   # (Bt, Fp+Fg)
    head = jnp.einsum("of,bf->ob", whead_ref[...], act,
                      precision=_HIGHEST, preferred_element_type=f32)  # (1, Bt)
    out_ref[...] = (head + bias_ref[...])[None]                     # (1, 1, Bt) lane-dense store


def _build_constants(params, L, Fp, N, Fg):
    """Tiny resident constant matrices that re-express the per-row reductions as matmuls."""
    f32 = jnp.float32
    w_pa = jnp.asarray(params["w_pep_attn"], f32).reshape(Fp, 1)
    w_ga = jnp.asarray(params["w_gly_attn"], f32).reshape(Fg, 1)
    eye_l = jnp.eye(L, dtype=f32)
    eye_n = jnp.eye(N, dtype=f32)

    wsp = jnp.kron(eye_l, w_pa)                               # (L*Fp, L): scores = pep_flat @ wsp
    wsg = jnp.kron(eye_n, w_ga)                               # (N*Fg, N)
    exp_p = jnp.kron(eye_l, jnp.ones((1, Fp), f32))           # (L, L*Fp): attention broadcast
    exp_g = jnp.kron(eye_n, jnp.ones((1, Fg), f32))           # (N, N*Fg)
    pool_p = jnp.concatenate(
        [jnp.kron(jnp.ones((L, 1), f32), jnp.eye(Fp, dtype=f32)),
         jnp.zeros((L * Fp, Fg), f32)], axis=1)               # (L*Fp, Fp+Fg) -> lanes [0, Fp)
    pool_g = jnp.concatenate(
        [jnp.zeros((N * Fg, Fp), f32),
         jnp.kron(jnp.ones((N, 1), f32), jnp.eye(Fg, dtype=f32))], axis=1)  # -> lanes [Fp, Fp+Fg)

    alpha = jnp.concatenate(
        [jnp.full((1, Fp), params["alpha_pep"], f32),
         jnp.full((1, Fg), params["alpha_gly"], f32)], axis=1)                # (1, Fp+Fg)
    w_head = jnp.concatenate(
        [jnp.asarray(params["w_pep_out"], f32).reshape(1, Fp),
         jnp.asarray(params["w_gly_out"], f32).reshape(1, Fg)], axis=1)       # (1, Fp+Fg)
    bias = jnp.reshape(jnp.asarray(params["b_pep"], f32)
                       + jnp.asarray(params["b_gly"], f32), (1, 1))
    return wsp, wsg, exp_p, exp_g, pool_p, pool_g, alpha, w_head, bias


def glyco_peptide_rt_output(pep_feature, gly_feature, gly_node_counts, params, *, batch_tile=1024):
    """Pallas forward. Returns shape (B,) like the PyTorch module (after squeeze(1)).

    pep_feature: (B, L, Fp), gly_feature: (B, N, Fg)  -- f32 or bf16 (loaded at native width).
    gly_node_counts: (B,) int -- number of valid glycan nodes per graph (padded-dense graphs).
    """
    B, L, Fp = pep_feature.shape
    _, N, Fg = gly_feature.shape

    # Lane-dense 2-D views (free reshapes of contiguous row-major arrays; no HBM copies).
    pep_flat = pep_feature.reshape(B, L * Fp)
    gly_flat = gly_feature.reshape(B, N * Fg)
    counts = jnp.asarray(gly_node_counts, jnp.int32).reshape(B, 1)

    # Batch tile: one exact full-array block when the batch fits (no padding, no partial
    # blocks); otherwise a 128-multiple tile with an unpadded partial final block.
    max_tile = max(128, (min(int(batch_tile), 2048) // 128) * 128)
    Bt = B if B <= max_tile else max_tile
    num_tiles = pl.cdiv(B, Bt)

    consts = _build_constants(params, L, Fp, N, Fg)

    # VMEM budget: double-buffered input streams (counts block lane-pads to 128) plus
    # f32 temporaries + resident constants, capped below v7x's 64 MiB physical VMEM.
    in_block_bytes = (Bt * L * Fp * pep_flat.dtype.itemsize
                      + Bt * N * Fg * gly_flat.dtype.itemsize
                      + Bt * 128 * 4)
    need = 2 * in_block_bytes + 5 * Bt * (L * Fp + N * Fg) * 4 + (4 << 20)
    vmem_limit = int(min(max(need, 16 << 20), 48 << 20))

    tile_ix = lambda i: (i, 0)      # batch-tiled streams
    const_ix = lambda i: (0, 0)     # resident constants (DMA'd once)

    out = pl.pallas_call(
        _rt_output_kernel,
        out_shape=jax.ShapeDtypeStruct((num_tiles, 1, Bt), jnp.float32),
        grid=(num_tiles,),
        in_specs=[
            pl.BlockSpec((Bt, L * Fp), tile_ix),          # pep tile (pipelined)
            pl.BlockSpec((Bt, N * Fg), tile_ix),          # gly tile (pipelined)
            pl.BlockSpec((Bt, 1), tile_ix),               # node counts (pipelined)
            pl.BlockSpec((L * Fp, L), const_ix),          # score weight (block-diag)
            pl.BlockSpec((N * Fg, N), const_ix),
            pl.BlockSpec((L, L * Fp), const_ix),          # attention expand
            pl.BlockSpec((N, N * Fg), const_ix),
            pl.BlockSpec((L * Fp, Fp + Fg), const_ix),    # pool + placement
            pl.BlockSpec((N * Fg, Fp + Fg), const_ix),
            pl.BlockSpec((1, Fp + Fg), const_ix),         # PReLU alpha vector
            pl.BlockSpec((1, Fp + Fg), const_ix),         # fused head weight
            pl.BlockSpec((1, 1), const_ix),               # fused head bias
        ],
        out_specs=pl.BlockSpec((1, 1, Bt), lambda i: (i, 0, 0)),   # lane-dense output row
        compiler_params=pltpu.CompilerParams(
            # TODO(synk): on v7x verify both TensorCores are busy in a trace; if not,
            # switch the batch axis to pltpu.CORE_PARALLEL (or an explicit core split).
            dimension_semantics=("parallel",),
            vmem_limit_bytes=vmem_limit,
        ),
    )(pep_flat, gly_flat, counts, *consts)

    return out.reshape(-1)[:B]   # squeeze(1) + drop any partial-tile tail


def _reference(pep_feature, gly_feature, node_counts, params):
    """Pure-JAX reference mirroring the PyTorch forward."""
    f32 = jnp.float32
    pep_feature = pep_feature.astype(f32)
    gly_feature = gly_feature.astype(f32)
    N = gly_feature.shape[1]
    mask = jnp.arange(N)[None, :] < jnp.asarray(node_counts)[:, None]

    w_pa = jnp.asarray(params["w_pep_attn"], f32)[0]
    w_ga = jnp.asarray(params["w_gly_attn"], f32)[0]

    s_p = jnp.einsum("blf,f->bl", pep_feature, w_pa, precision=_HIGHEST)
    a_p = jax.nn.softmax(s_p, axis=1)
    pep = jnp.einsum("bl,blf->bf", a_p, pep_feature, precision=_HIGHEST)

    s_g = jnp.einsum("bnf,f->bn", gly_feature, w_ga, precision=_HIGHEST)
    s_g = jnp.where(mask, s_g, -jnp.inf)
    a_g = jnp.where(mask, jax.nn.softmax(s_g, axis=1), 0.0)
    gly = jnp.einsum("bn,bnf->bf", a_g, gly_feature, precision=_HIGHEST)

    prelu = lambda x, a: jnp.where(x >= 0, x, a * x)
    pep_out = jnp.einsum("bf,f->b", prelu(pep, params["alpha_pep"]),
                         jnp.asarray(params["w_pep_out"], f32)[0],
                         precision=_HIGHEST) + params["b_pep"]
    gly_out = jnp.einsum("bf,f->b", prelu(gly, params["alpha_gly"]),
                         jnp.asarray(params["w_gly_out"], f32)[0],
                         precision=_HIGHEST) + params["b_gly"]
    return pep_out + gly_out


if __name__ == "__main__":
    # Small deterministic shapes: batch=2, pep seq len=8, pep_features=32,
    # max glycan nodes=16, gly_features=32.
    B, L, Fp = 2, 8, 32
    N, Fg = 16, 32

    key = jax.random.PRNGKey(0)
    k = jax.random.split(key, 6)

    pep_feature = jax.random.normal(k[0], (B, L, Fp), jnp.float32)
    gly_feature = jax.random.normal(k[1], (B, N, Fg), jnp.float32)
    # batched-graph node counts: graph 0 has 10 nodes, graph 1 has 16 nodes
    node_counts = jnp.array([10, 16], jnp.int32)

    params = {
        "w_pep_attn": 0.1 * jax.random.normal(k[2], (1, Fp), jnp.float32),  # Linear(Fp,1,bias=False)
        "w_gly_attn": 0.1 * jax.random.normal(k[3], (1, Fg), jnp.float32),  # Linear(Fg,1,bias=False)
        "w_pep_out":  0.1 * jax.random.normal(k[4], (1, Fp), jnp.float32),  # Linear(Fp,1)
        "w_gly_out":  0.1 * jax.random.normal(k[5], (1, Fg), jnp.float32),  # Linear(Fg,1)
        "b_pep": 0.05,
        "b_gly": -0.03,
        "alpha_pep": 0.25,   # PyTorch PReLU default init
        "alpha_gly": 0.25,
    }

    out = glyco_peptide_rt_output(pep_feature, gly_feature, node_counts, params)
    out = jax.block_until_ready(out)

    ref = _reference(pep_feature, gly_feature, node_counts, params)
    np.testing.assert_allclose(np.asarray(out), np.asarray(ref), rtol=2e-3, atol=2e-3)
    assert out.shape == (B,)

    print("KERNEL_OK")
</pallas_src>

<mosaic_0001>
module attributes {stable_mosaic.version = 11 : i64} {
  func.func @_rt_output_kernel(%arg0: i32, %arg1: memref<2x256xf32, #tpu.memory_space<vmem>>, %arg2: memref<2x512xf32, #tpu.memory_space<vmem>>, %arg3: memref<2x1xi32, #tpu.memory_space<vmem>>, %arg4: memref<256x8xf32, #tpu.memory_space<vmem>>, %arg5: memref<512x16xf32, #tpu.memory_space<vmem>>, %arg6: memref<8x256xf32, #tpu.memory_space<vmem>>, %arg7: memref<16x512xf32, #tpu.memory_space<vmem>>, %arg8: memref<256x64xf32, #tpu.memory_space<vmem>>, %arg9: memref<512x64xf32, #tpu.memory_space<vmem>>, %arg10: memref<1x64xf32, #tpu.memory_space<vmem>>, %arg11: memref<1x64xf32, #tpu.memory_space<vmem>>, %arg12: memref<1x1xf32, #tpu.memory_space<vmem>>, %arg13: memref<1x1x2xf32, #tpu.memory_space<vmem>>) attributes {dimension_semantics = [#tpu.dimension_semantics<parallel>], iteration_bounds = array<i64: 1>, scalar_prefetch = 0 : i64, scratch_operands = 0 : i64, tpu.core_type = #tpu.core_type<tc>, window_params = [{transform_indices = @transform_0, window_bounds = array<i64: 2, 256>}, {transform_indices = @transform_1, window_bounds = array<i64: 2, 512>}, {transform_indices = @transform_2, window_bounds = array<i64: 2, 1>}, {pipeline_mode = #tpu.pipeline_mode<synchronous>, transform_indices = @transform_3, window_bounds = array<i64: 256, 8>}, {pipeline_mode = #tpu.pipeline_mode<synchronous>, transform_indices = @transform_4, window_bounds = array<i64: 512, 16>}, {pipeline_mode = #tpu.pipeline_mode<synchronous>, transform_indices = @transform_5, window_bounds = array<i64: 8, 256>}, {pipeline_mode = #tpu.pipeline_mode<synchronous>, transform_indices = @transform_6, window_bounds = array<i64: 16, 512>}, {pipeline_mode = #tpu.pipeline_mode<synchronous>, transform_indices = @transform_7, window_bounds = array<i64: 256, 64>}, {pipeline_mode = #tpu.pipeline_mode<synchronous>, transform_indices = @transform_8, window_bounds = array<i64: 512, 64>}, {pipeline_mode = #tpu.pipeline_mode<synchronous>, transform_indices = @transform_9, window_bounds = array<i64: 1, 64>}, {pipeline_mode = #tpu.pipeline_mode<synchronous>, transform_indices = @transform_10, window_bounds = array<i64: 1, 64>}, {pipeline_mode = #tpu.pipeline_mode<synchronous>, transform_indices = @transform_11, window_bounds = array<i64: 1, 1>}, {transform_indices = @transform_12, window_bounds = array<i64: 1, 1, 2>}]} {
    %c0 = arith.constant 0 : index
    %c0_0 = arith.constant 0 : index
    %0 = vector.load %arg1[%c0, %c0_0] : memref<2x256xf32, #tpu.memory_space<vmem>>, vector<2x256xf32>
    %c0_1 = arith.constant 0 : index
    %c0_2 = arith.constant 0 : index
    %1 = vector.load %arg2[%c0_1, %c0_2] : memref<2x512xf32, #tpu.memory_space<vmem>>, vector<2x512xf32>
    %c0_3 = arith.constant 0 : index
    %c0_4 = arith.constant 0 : index
    %2 = vector.load %arg3[%c0_3, %c0_4] : memref<2x1xi32, #tpu.memory_space<vmem>>, vector<2x1xi32>
    %c0_5 = arith.constant 0 : index
    %c0_6 = arith.constant 0 : index
    %3 = vector.load %arg4[%c0_5, %c0_6] : memref<256x8xf32, #tpu.memory_space<vmem>>, vector<256x8xf32>
    %cst = arith.constant dense<0.000000e+00> : vector<2x8xf32>
    %4 = tpu.matmul %0, %3, %cst {dimension_numbers = #tpu.dot_dimension_numbers<[1], [0], [0], [1], [0, 0, 1, 1], [], []>, precision = #tpu.contract_precision<fp32>} : vector<2x256xf32>, vector<256x8xf32>, vector<2x8xf32> -> vector<2x8xf32>
    %cst_7 = arith.constant dense<0xFF800000> : vector<2xf32>
    %5 = vector.multi_reduction <maximumf>, %4, %cst_7 [1] : vector<2x8xf32> to vector<2xf32>
    %6 = vector.shape_cast %5 : vector<2xf32> to vector<2x1xf32>
    %7 = vector.broadcast %6 : vector<2x1xf32> to vector<2x8xf32>
    %8 = arith.subf %4, %7 : vector<2x8xf32>
    %9 = math.exp %8 : vector<2x8xf32>
    %cst_8 = arith.constant dense<0.000000e+00> : vector<2xf32>
    %10 = vector.multi_reduction <add>, %9, %cst_8 [1] : vector<2x8xf32> to vector<2xf32>
    %11 = vector.shape_cast %10 : vector<2xf32> to vector<2x1xf32>
    %12 = vector.broadcast %11 : vector<2x1xf32> to vector<2x8xf32>
    %13 = arith.divf %9, %12 : vector<2x8xf32>
    %c0_9 = arith.constant 0 : index
    %c0_10 = arith.constant 0 : index
    %14 = vector.load %arg6[%c0_9, %c0_10] : memref<8x256xf32, #tpu.memory_space<vmem>>, vector<8x256xf32>
    %cst_11 = arith.constant dense<0.000000e+00> : vector<2x256xf32>
    %15 = tpu.matmul %13, %14, %cst_11 {dimension_numbers = #tpu.dot_dimension_numbers<[1], [0], [0], [1], [0, 0, 1, 1], [], []>, precision = #tpu.contract_precision<fp32>} : vector<2x8xf32>, vector<8x256xf32>, vector<2x256xf32> -> vector<2x256xf32>
    %16 = arith.mulf %0, %15 : vector<2x256xf32>
    %c0_12 = arith.constant 0 : index
    %c0_13 = arith.constant 0 : index
    %17 = vector.load %arg5[%c0_12, %c0_13] : memref<512x16xf32, #tpu.memory_space<vmem>>, vector<512x16xf32>
    %cst_14 = arith.constant dense<0.000000e+00> : vector<2x16xf32>
    %18 = tpu.matmul %1, %17, %cst_14 {dimension_numbers = #tpu.dot_dimension_numbers<[1], [0], [0], [1], [0, 0, 1, 1], [], []>, precision = #tpu.contract_precision<fp32>} : vector<2x512xf32>, vector<512x16xf32>, vector<2x16xf32> -> vector<2x16xf32>
    %19 = tpu.iota {dimensions = array<i32: 1>} : vector<2x16xi32>
    %20 = vector.broadcast %2 : vector<2x1xi32> to vector<2x16xi32>
    %21 = arith.cmpi slt, %19, %20 : vector<2x16xi32>
    %cst_15 = arith.constant -1.000000e+30 : f32
    %22 = vector.broadcast %cst_15 : f32 to vector<2x16xf32>
    %23 = arith.select %21, %18, %22 : vector<2x16xi1>, vector<2x16xf32>
    %cst_16 = arith.constant dense<0xFF800000> : vector<2xf32>
    %24 = vector.multi_reduction <maximumf>, %23, %cst_16 [1] : vector<2x16xf32> to vector<2xf32>
    %25 = vector.shape_cast %24 : vector<2xf32> to vector<2x1xf32>
    %26 = vector.broadcast %25 : vector<2x1xf32> to vector<2x16xf32>
    %27 = arith.subf %23, %26 : vector<2x16xf32>
    %28 = math.exp %27 : vector<2x16xf32>
    %cst_17 = arith.constant 0.000000e+00 : f32
    %29 = vector.broadcast %cst_17 : f32 to vector<2x16xf32>
    %30 = arith.select %21, %28, %29 : vector<2x16xi1>, vector<2x16xf32>
    %cst_18 = arith.constant dense<0.000000e+00> : vector<2xf32>
    %31 = vector.multi_reduction <add>, %30, %cst_18 [1] : vector<2x16xf32> to vector<2xf32>
    %32 = vector.shape_cast %31 : vector<2xf32> to vector<2x1xf32>
    %cst_19 = arith.constant 1.000000e-30 : f32
    %33 = vector.broadcast %cst_19 : f32 to vector<2x1xf32>
    %34 = arith.maximumf %32, %33 : vector<2x1xf32>
    %35 = vector.broadcast %34 : vector<2x1xf32> to vector<2x16xf32>
    %36 = arith.divf %30, %35 : vector<2x16xf32>
    %c0_20 = arith.constant 0 : index
    %c0_21 = arith.constant 0 : index
    %37 = vector.load %arg7[%c0_20, %c0_21] : memref<16x512xf32, #tpu.memory_space<vmem>>, vector<16x512xf32>
    %cst_22 = arith.constant dense<0.000000e+00> : vector<2x512xf32>
    %38 = tpu.matmul %36, %37, %cst_22 {dimension_numbers = #tpu.dot_dimension_numbers<[1], [0], [0], [1], [0, 0, 1, 1], [], []>, precision = #tpu.contract_precision<fp32>} : vector<2x16xf32>, vector<16x512xf32>, vector<2x512xf32> -> vector<2x512xf32>
    %39 = arith.mulf %1, %38 : vector<2x512xf32>
    %c0_23 = arith.constant 0 : index
    %c0_24 = arith.constant 0 : index
    %40 = vector.load %arg8[%c0_23, %c0_24] : memref<256x64xf32, #tpu.memory_space<vmem>>, vector<256x64xf32>
    %cst_25 = arith.constant dense<0.000000e+00> : vector<2x64xf32>
    %41 = tpu.matmul %16, %40, %cst_25 {dimension_numbers = #tpu.dot_dimension_numbers<[1], [0], [0], [1], [0, 0, 1, 1], [], []>, precision = #tpu.contract_precision<fp32>} : vector<2x256xf32>, vector<256x64xf32>, vector<2x64xf32> -> vector<2x64xf32>
    %c0_26 = arith.constant 0 : index
    %c0_27 = arith.constant 0 : index
    %42 = vector.load %arg9[%c0_26, %c0_27] : memref<512x64xf32, #tpu.memory_space<vmem>>, vector<512x64xf32>
    %cst_28 = arith.constant dense<0.000000e+00> : vector<2x64xf32>
    %43 = tpu.matmul %39, %42, %cst_28 {dimension_numbers = #tpu.dot_dimension_numbers<[1], [0], [0], [1], [0, 0, 1, 1], [], []>, precision = #tpu.contract_precision<fp32>} : vector<2x512xf32>, vector<512x64xf32>, vector<2x64xf32> -> vector<2x64xf32>
    %44 = arith.addf %41, %43 : vector<2x64xf32>
    %cst_29 = arith.constant 0.000000e+00 : f32
    %45 = vector.broadcast %cst_29 : f32 to vector<2x64xf32>
    %46 = arith.cmpf oge, %44, %45 : vector<2x64xf32>
    %c0_30 = arith.constant 0 : index
    %c0_31 = arith.constant 0 : index
    %47 = vector.load %arg10[%c0_30, %c0_31] : memref<1x64xf32, #tpu.memory_space<vmem>>, vector<1x64xf32>
    %48 = vector.broadcast %47 : vector<1x64xf32> to vector<2x64xf32>
    %49 = arith.mulf %48, %44 : vector<2x64xf32>
    %50 = arith.select %46, %44, %49 : vector<2x64xi1>, vector<2x64xf32>
    %c0_32 = arith.constant 0 : index
    %c0_33 = arith.constant 0 : index
    %51 = vector.load %arg11[%c0_32, %c0_33] : memref<1x64xf32, #tpu.memory_space<vmem>>, vector<1x64xf32>
    "tpu.trace_start"() <{level = 10 : i32, message = "of,bf->ob"}> : () -> ()
    %cst_34 = arith.constant dense<0.000000e+00> : vector<1x2xf32>
    %52 = tpu.matmul %51, %50, %cst_34 {dimension_numbers = #tpu.dot_dimension_numbers<[1], [1], [0], [0], [0, 0, 1, 0], [], []>, precision = #tpu.contract_precision<fp32>} : vector<1x64xf32>, vector<2x64xf32>, vector<1x2xf32> -> vector<1x2xf32>
    "tpu.trace_stop"() : () -> ()
    %c0_35 = arith.constant 0 : index
    %c0_36 = arith.constant 0 : index
    %53 = vector.load %arg12[%c0_35, %c0_36] : memref<1x1xf32, #tpu.memory_space<vmem>>, vector<1x1xf32>
    %54 = vector.broadcast %53 : vector<1x1xf32> to vector<1x2xf32>
    %55 = arith.addf %52, %54 : vector<1x2xf32>
    %56 = vector.shape_cast %55 : vector<1x2xf32> to vector<1x1x2xf32>
    %c0_37 = arith.constant 0 : index
    %c0_38 = arith.constant 0 : index
    %c0_39 = arith.constant 0 : index
    %57 = vector.load %arg13[%c0_37, %c0_38, %c0_39] : memref<1x1x2xf32, #tpu.memory_space<vmem>>, vector<1x1x2xf32>
    tpu.vector_store %arg13[%c0_37, %c0_38, %c0_39], %56 {strides = array<i32>} : memref<1x1x2xf32, #tpu.memory_space<vmem>>, vector<1x1x2xf32>,
    return
  }
  func.func @transform_0(%arg0: i32) -> (i32, i32) {
    %c0_i32 = arith.constant 0 : i32
    %c0_i32_0 = arith.constant 0 : i32
    return %arg0, %c0_i32 : i32, i32
  }
  func.func @transform_1(%arg0: i32) -> (i32, i32) {
    %c0_i32 = arith.constant 0 : i32
    %c0_i32_0 = arith.constant 0 : i32
    return %arg0, %c0_i32 : i32, i32
  }
  func.func @transform_2(%arg0: i32) -> (i32, i32) {
    %c0_i32 = arith.constant 0 : i32
    %c0_i32_0 = arith.constant 0 : i32
    return %arg0, %c0_i32 : i32, i32
  }
  func.func @transform_3(%arg0: i32) -> (i32, i32) {
    %c0_i32 = arith.constant 0 : i32
    %c0_i32_0 = arith.constant 0 : i32
    %c0_i32_1 = arith.constant 0 : i32
    return %c0_i32, %c0_i32_0 : i32, i32
  }
  func.func @transform_4(%arg0: i32) -> (i32, i32) {
    %c0_i32 = arith.constant 0 : i32
    %c0_i32_0 = arith.constant 0 : i32
    %c0_i32_1 = arith.constant 0 : i32
    return %c0_i32, %c0_i32_0 : i32, i32
  }
  func.func @transform_5(%arg0: i32) -> (i32, i32) {
    %c0_i32 = arith.constant 0 : i32
    %c0_i32_0 = arith.constant 0 : i32
    %c0_i32_1 = arith.constant 0 : i32
    return %c0_i32, %c0_i32_0 : i32, i32
  }
  func.func @transform_6(%arg0: i32) -> (i32, i32) {
    %c0_i32 = arith.constant 0 : i32
    %c0_i32_0 = arith.constant 0 : i32
    %c0_i32_1 = arith.constant 0 : i32
    return %c0_i32, %c0_i32_0 : i32, i32
  }
  func.func @transform_7(%arg0: i32) -> (i32, i32) {
    %c0_i32 = arith.constant 0 : i32
    %c0_i32_0 = arith.constant 0 : i32
    %c0_i32_1 = arith.constant 0 : i32
    return %c0_i32, %c0_i32_0 : i32, i32
  }
  func.func @transform_8(%arg0: i32) -> (i32, i32) {
    %c0_i32 = arith.constant 0 : i32
    %c0_i32_0 = arith.constant 0 : i32
    %c0_i32_1 = arith.constant 0 : i32
    return %c0_i32, %c0_i32_0 : i32, i32
  }
  func.func @transform_9(%arg0: i32) -> (i32, i32) {
    %c0_i32 = arith.constant 0 : i32
    %c0_i32_0 = arith.constant 0 : i32
    %c0_i32_1 = arith.constant 0 : i32
    return %c0_i32, %c0_i32_0 : i32, i32
  }
  func.func @transform_10(%arg0: i32) -> (i32, i32) {
    %c0_i32 = arith.constant 0 : i32
    %c0_i32_0 = arith.constant 0 : i32
    %c0_i32_1 = arith.constant 0 : i32
    return %c0_i32, %c0_i32_0 : i32, i32
  }
  func.func @transform_11(%arg0: i32) -> (i32, i32) {
    %c0_i32 = arith.constant 0 : i32
    %c0_i32_0 = arith.constant 0 : i32
    %c0_i32_1 = arith.constant 0 : i32
    return %c0_i32, %c0_i32_0 : i32, i32
  }
  func.func @transform_12(%arg0: i32) -> (i32, i32, i32) {
    %c0_i32 = arith.constant 0 : i32
    %c0_i32_0 = arith.constant 0 : i32
    %c0_i32_1 = arith.constant 0 : i32
    return %arg0, %c0_i32, %c0_i32_0 : i32, i32, i32
  }
}

</mosaic_0001>

<bundles_post_ra>
// kernel: tpu_custom_call.1
= control target key start
LH: loop header
LB: loop body
LE: loop exit
PB: predicated region body
PF: predicated region fallthrough
CT: control target
= control target key end

     0   :  { %s13195_s0 = inlined_call_operand.vmem [shape: f32[2,256], index: 0, kind: input, shape index: {}]   ;;  %s13196_s1 = inlined_call_operand.vmem [shape: f32[2,512], index: 1, kind: input, shape index: {}]   ;;  %s13197_s2 = inlined_call_operand.vmem [shape: s32[2,1], index: 2, kind: input, shape index: {}]   ;;  %s13198_s3 = inlined_call_operand.vmem [shape: f32[256,8], index: 3, kind: input, shape index: {}]   ;;  %s13199_s4 = inlined_call_operand.vmem [shape: f32[512,16], index: 4, kind: input, shape index: {}]   ;;  %s13200_s5 = inlined_call_operand.vmem [shape: f32[8,256], index: 5, kind: input, shape index: {}]   ;;  %s13201_s6 = inlined_call_operand.vmem [shape: f32[16,512], index: 6, kind: input, shape index: {}]   ;;  %s13202_s7 = inlined_call_operand.vmem [shape: f32[256,64], index: 7, kind: input, shape index: {}]   ;;  %s13203_s8 = inlined_call_operand.vmem [shape: f32[512,64], index: 8, kind: input, shape index: {}]   ;;  %s13204_s9 = inlined_call_operand.vmem [shape: f32[1,64], index: 9, kind: input, shape index: {}]   ;;  %s13205_s10 = inlined_call_operand.vmem [shape: f32[1,64], index: 10, kind: input, shape index: {}]   ;;  %s13206_s11 = inlined_call_operand.<no memory space> [shape: f32[1,1], index: 11, kind: input, shape index: {}]   ;;  %s13207_s12 = inlined_call_operand.hbm [shape: f32[1,1,2], index: 12, kind: output, shape index: {}]  }
   0x1   :  { %v17_v0 = vstv %s13206_s11 }
   0x2   :  { %18 = vst [vmem:[#allocation2] sm:$0x1] %v17_v0 }
   0x3   :  { %v78_v1 = vld [vmem:[%s13198_s3 + $0xf8] sm:$0xff]  ;;  %v77_v3 = vld [vmem:[%s13198_s3 + $0xf0] sm:$0xff]  ;;  %v76_v8 = vld [vmem:[%s13198_s3 + $0xe8] sm:$0xff]  ;;  %v8844_v17 = vmov 1983009808  }
   0x4   :  { %v62_v2 = vld [vmem:[%s13198_s3 + $0x78] sm:$0xff]  ;;  %v8926_v4 = vand.u32 4294901760, %v78_v1  ;;  %v8930_v6 = vand.u32 4294901760, %v77_v3  ;;  %v61_v7 = vld [vmem:[%s13198_s3 + $0x70] sm:$0xff]  ;;  %v60_v9 = vld [vmem:[%s13198_s3 + $0x68] sm:$0xff]  ;;  %v8943_v12 = vand.u32 4294901760, %v76_v8  ;;  %v8958_v18 = vunpack.c.l.s4 %v8844_v17 }
   0x5   :  { %v8928_v5 = vand.u32 4294901760, %v62_v2  ;;  %v8941_v11 = vand.u32 4294901760, %v61_v7  ;;  %v8945_v13 = vand.u32 4294901760, %v60_v9  ;;  %v75_v14 = vld [vmem:[%s13198_s3 + $0xe0] sm:$0xff]  ;;  %v8956_v16 = vld [vmem:[%s13198_s3 + $0xd8] sm:$0xff]  ;;  %v8979_v24 = vld [vmem:[%s13198_s3 + $0xd0] sm:$0xff] }
   0x6   :  { %v59_v15 = vld [vmem:[%s13198_s3 + $0x60] sm:$0xff]  ;;  %7501 = vmatprep.subr.mxu0 %v8926_v4  ;;  %v8961_v19 = vand.u32 4294901760, %v75_v14  ;;  %v8966_v21 = vand.u32 4294901760, %v8956_v16  ;;  %v8969_v22 = vsub.f32 %v78_v1, %v8926_v4  ;;  %v8974_v23 = vld [vmem:[%s13198_s3 + $0x58] sm:$0xff]  ;;  %v8984_v25 = vld [vmem:[%s13198_s3 + $0x50] sm:$0xff]  ;;  %v8994_v28 = vand.u32 4294901760, %v8979_v24 }
   0x7   :  { %v8963_v20 = vand.u32 4294901760, %v59_v15  ;;  %7502 = vmatpush3.msra.mxu0 %v8928_v5  ;;  %v8988_v26 = vand.u32 4294901760, %v8974_v23  ;;  %v8991_v27 = vsub.f32 %v62_v2, %v8928_v5  ;;  %v8997_v29 = vsub.f32 %v77_v3, %v8930_v6  ;;  %v9002_v30 = vld [vmem:[%s13198_s3 + $0xc8] sm:$0xff]  ;;  %v9012_v32 = vld [vmem:[%s13198_s3 + $0xc0] sm:$0xff]  ;;  %v9064_v50 = vld [vmem:[%s13198_s3 + $0xb8] sm:$0xff] }
   0x8   :  { %13605 = vst [vmem:[#allocation6_spill] sm:$0xff] %v8969_v22  ;;  %v9007_v31 = vld [vmem:[%s13198_s3 + $0x48] sm:$0xff]  ;;  %7503 = vmatprep.subr.mxu0 %v8930_v6  ;;  %v13220_v33 = vand.u32 4294901760, %v8969_v22  ;;  %v9017_v34 = vand.u32 4294901760, %v8984_v25  ;;  %v9020_v35 = vsub.f32 %v61_v7, %v8941_v11  ;;  %v9023_v36 = vand.u32 4294901760, %v9002_v30  ;;  %v9037_v41 = vld [vmem:[%s13198_s3 + $0x40] sm:$0xff] }
   0x9   :  { %7504 = vmatpush3.msra.mxu0 %v8941_v11  ;;  %v13219_v37 = vand.u32 4294901760, %v8991_v27  ;;  %v13217_v38 = vand.u32 4294901760, %v8997_v29  ;;  %v9029_v39 = vsub.f32 %v76_v8, %v8943_v12  ;;  %v9032_v40 = vand.u32 4294901760, %v9007_v31  ;;  %v9077_v55 = vld [vmem:[%s13198_s3 + $0x38] sm:$0xff]  ;;  %v9087_v60 = vld [vmem:[%s13198_s3 + $0xb0] sm:$0xff] }
   0xa   :  { %7505 = vmatprep.subr.mxu0 %v8943_v12  ;;  %v318_v42 = vsub.f32 %v8969_v22, %v13220_v33  ;;  %v13215_v43 = vand.u32 4294901760, %v9020_v35  ;;  %v9045_v44 = vsub.f32 %v60_v9, %v8945_v13  ;;  %v9048_v45 = vand.u32 4294901760, %v9012_v32  ;;  %v9102_v1 = vld [vmem:[%s13198_s3 + $0x30] sm:$0xff] }
   0xb   :  { %7506 = vmatpush3.msra.mxu0 %v8945_v13  ;;  %v206_v46 = vsub.f32 %v8991_v27, %v13219_v37  ;;  %v325_v47 = vsub.f32 %v8997_v29, %v13217_v38  ;;  %v13214_v48 = vand.u32 4294901760, %v9029_v39  ;;  %v9059_v49 = vsub.f32 %v75_v14, %v8961_v19 }
   0xc   :  { %13606 = vst [vmem:[#allocation7_spill] sm:$0xff] %v9048_v45  ;;  %7507 = vmatprep.subr.mxu0 %v8961_v19  ;;  %v319_v51 = vand.u32 4294901760, %v318_v42  ;;  %v213_v52 = vsub.f32 %v9020_v35, %v13215_v43  ;;  %v13212_v53 = vand.u32 4294901760, %v9045_v44  ;;  %v9072_v54 = vand.u32 4294901760, %v9037_v41 }
   0xd   :  { %7508 = vmatpush3.msra.mxu0 %v8963_v20  ;;  %v207_v56 = vand.u32 4294901760, %v206_v46  ;;  %v326_v57 = vand.u32 4294901760, %v325_v47  ;;  %v332_v58 = vsub.f32 %v9029_v39, %v13214_v48  ;;  %v13210_v59 = vand.u32 4294901760, %v9059_v49 }
   0xe   :  { %13607 = vst [vmem:[#allocation8_spill] sm:$0xff] %v9072_v54  ;;  %7509 = vmatprep.subr.mxu0 %v8966_v21  ;;  %7536 = vmatprep.subr.mxu1 %v319_v51  ;;  %v214_v61 = vand.u32 4294901760, %v213_v52  ;;  %v220_v62 = vsub.f32 %v9045_v44, %v13212_v53  ;;  %v9094_v63 = vsub.f32 %v59_v15, %v8963_v20  ;;  %v9097_v0 = vand.u32 4294901760, %v9064_v50 }
  0x10   :  { %13608 = vst [vmem:[#allocation9_spill] sm:$0xff] %v9097_v0 }
  0x11   :  { %19 = vsyncpa [#allocation4], 0  ;;  %7510 = vmatpush3.msra.mxu0 %v8988_v26  ;;  %7537 = vmatpush3.msra.mxu1 %v207_v56  ;;  %v333_v2 = vand.u32 4294901760, %v332_v58  ;;  %v339_v3 = vsub.f32 %v9059_v49, %v13210_v59  ;;  %v9110_v7 = vsub.f32 %v8956_v16, %v8966_v21  ;;  %v9113_v8 = vand.u32 4294901760, %v9077_v55  ;;  %v9118_v9 = vld [vmem:[%s13198_s3 + $0xa8] sm:$0xff]  ;;  %v9211_v43 = vld [vmem:[%s13198_s3 + $0x18] sm:$0xff] }
  0x12   :  { %7511 = vmatprep.subr.mxu0 %v8994_v28  ;;  %7538 = vmatprep.subr.mxu1 %v326_v57  ;;  %v221_v14 = vand.u32 4294901760, %v220_v62  ;;  %v13208_v15 = vand.u32 4294901760, %v9094_v63  ;;  %v9124_v17 = vsub.f32 %v8974_v23, %v8988_v26  ;;  %v9127_v16 = vand.u32 4294901760, %v9087_v60  ;;  %v9132_v42 = vld [vmem:[%s13198_s3 + $0x28] sm:$0xff]  ;;  %v9227_v38 = vld [vmem:[%s13198_s3 + $0x90] sm:$0xff] }
  0x13   :  { %13609 = vst [vmem:[#allocation10_spill] sm:$0xff] %v9113_v8  ;;  %7512 = vmatpush3.msra.mxu0 %v9017_v34  ;;  %7539 = vmatpush3.msra.mxu1 %v214_v61  ;;  %v340_v46 = vand.u32 4294901760, %v339_v3  ;;  %v13209_v47 = vand.u32 4294901760, %v9110_v7  ;;  %v9138_v51 = vsub.f32 %v8979_v24, %v8994_v28  ;;  %v9141_v23 = vand.u32 4294901760, %v9102_v1  ;;  %v9158_v24 = vld [vmem:[%s13198_s3 + $0xa0] sm:$0xff]  ;;  %v9254_v10 = vld [vmem:[%s13198_s3 + $0x88] sm:$0xff] }
  0x14   :  { %13610 = vst [vmem:[#allocation11_spill] sm:$0xff] %v9127_v16  ;;  %7513 = vmatprep.subr.mxu0 %v9023_v36  ;;  %7540 = vmatprep.subr.mxu1 %v333_v2  ;;  %v227_v52 = vsub.f32 %v9094_v63, %v13208_v15  ;;  %v13211_v56 = vand.u32 4294901760, %v9124_v17  ;;  %v9150_v57 = vsub.f32 %v8984_v25, %v9017_v34  ;;  %v9153_v58 = vand.u32 4294901760, %v9118_v9 }
  0x15   :  { %13611 = vst [vmem:[#allocation12_spill] sm:$0xff] %v9141_v23  ;;  %7514 = vmatpush3.msra.mxu0 %v9032_v40  ;;  %7541 = vmatpush3.msra.mxu1 %v221_v14  ;;  %v346_v61 = vsub.f32 %v9110_v7, %v13209_v47  ;;  %v13213_v62 = vand.u32 4294901760, %v9138_v51  ;;  %v9167_v25 = vsub.f32 %v9002_v30, %v9023_v36  ;;  %v9170_v2 = vand.u32 4294901760, %v9132_v42  ;;  %v9184_v30 = vld [vmem:[%s13198_s3 + $0x20] sm:$0xff] }
  0x16   :  { %13612 = vst [vmem:[#allocation13_spill] sm:$0xff] %v9153_v58  ;;  %7515 = vmatprep.subr.mxu0 %v9048_v45  ;;  %7542 = vmatprep.subr.mxu1 %v340_v46  ;;  %v228_v3 = vand.u32 4294901760, %v227_v52  ;;  %v234_v14 = vsub.f32 %v9124_v17, %v13211_v56  ;;  %v13216_v15 = vand.u32 4294901760, %v9150_v57  ;;  %v9179_v47 = vsub.f32 %v9007_v31, %v9032_v40  ;;  %v9197_v31 = vld [vmem:[%s13198_s3 + $0x98] sm:$0xff] }
  0x17   :  { %13613 = vst [vmem:[#allocation14_spill] sm:$0xff] %v9170_v2  ;;  %7516 = vmatpush3.msra.mxu0 %v9072_v54  ;;  %v347_v59 = vand.u32 4294901760, %v346_v61  ;;  %v353_v46 = vsub.f32 %v9138_v51, %v13213_v62  ;;  %v13218_v52 = vand.u32 4294901760, %v9167_v25  ;;  %v9192_v56 = vand.u32 4294901760, %v9158_v24 }
  0x18   :  { %7543 = vmatpush3.msra.mxu1 %v228_v3  ;;  %7517 = vmatprep.subr.mxu0 %v9097_v0  ;;  %v235_v53 = vand.u32 4294901760, %v234_v14  ;;  %v241_v61 = vsub.f32 %v9150_v57, %v13216_v15  ;;  %v13221_v62 = vand.u32 4294901760, %v9179_v47  ;;  %v9206_v48 = vsub.f32 %v9012_v32, %v9048_v45 }
  0x19   :  { %13614 = vst [vmem:[#allocation15_spill] sm:$0xff] %v9192_v56  ;;  %7544 = vmatprep.subr.mxu1 %v347_v59  ;;  %7518 = vmatpush3.msra.mxu0 %v9113_v8  ;;  %v354_v3 = vand.u32 4294901760, %v353_v46  ;;  %v360_v14 = vsub.f32 %v9167_v25, %v13218_v52  ;;  %v9218_v15 = vand.u32 4294901760, %v9184_v30  ;;  %v9222_v32 = vsub.f32 %v9037_v41, %v9072_v54  ;;  %v9240_v41 = vld [vmem:[%s13198_s3 + $0x10] sm:$0xff] }
  0x1a   :  { %7545 = vmatpush3.msra.mxu1 %v235_v53  ;;  %7519 = vmatprep.subr.mxu0 %v9127_v16  ;;  %v242_v59 = vand.u32 4294901760, %v241_v61  ;;  %v248_v46 = vsub.f32 %v9179_v47, %v13221_v62  ;;  %v13227_v52 = vand.u32 4294901760, %v9206_v48  ;;  %v9235_v37 = vand.u32 4294901760, %v9197_v31 }
  0x1b   :  { %13615 = vst [vmem:[#allocation16_spill] sm:$0xff] %v9218_v15  ;;  %13616 = vst [vmem:[#allocation17_spill] sm:$0xff] %v9222_v32  ;;  %7546 = vmatprep.subr.mxu1 %v354_v3  ;;  %7520 = vmatpush3.msra.mxu0 %v9141_v23  ;;  %v361_v53 = vand.u32 4294901760, %v360_v14  ;;  %v9246_v33 = vsub.f32 %v9064_v50, %v9097_v0  ;;  %v9249_v62 = vand.u32 4294901760, %v9211_v43  ;;  %v9265_v61 = vand.u32 4294901760, %v9227_v38 }
  0x1c   :  { %13617 = vst [vmem:[#allocation18_spill] sm:$0xff] %v9235_v37  ;;  %7547 = vmatpush3.msra.mxu1 %v242_v59  ;;  %7521 = vmatprep.subr.mxu0 %v9153_v58  ;;  %v249_v3 = vand.u32 4294901760, %v248_v46  ;;  %v367_v14 = vsub.f32 %v9206_v48, %v13227_v52  ;;  %v9262_v50 = vsub.f32 %v9077_v55, %v9113_v8  ;;  %v13621_v0 = vand.u32 4294901760, %v9222_v32  ;;  %v9282_v55 = vld [vmem:[%s13198_s3 + $0x8] sm:$0xff] }
  0x1d   :  { %13618 = vst [vmem:[#allocation19_spill] sm:$0xff] %v9249_v62  ;;  %13620 = vst [vmem:[#allocation21_spill] sm:$0xff] %v9265_v61  ;;  %7548 = vmatprep.subr.mxu1 %v361_v53  ;;  %7522 = vmatpush3.msra.mxu0 %v9170_v2  ;;  %v9274_v54 = vsub.f32 %v9087_v60, %v9127_v16  ;;  %v9277_v52 = vand.u32 4294901760, %v9240_v41  ;;  %v9288_v46 = vsub.f32 %v9102_v1, %v9141_v23  ;;  %v9296_v16 = vld [vmem:[%s13198_s3 + $0x80] sm:$0xff]  ;;  %vm952_vm0 = vcmask 58368  }
  0x1e   :  { %13619 = vst [vmem:[#allocation20_spill] sm:$0xff] %v9262_v50  ;;  %v255_v59 = vsub.f32 %v9222_v32, %v13621_v0  ;;  %7549 = vmatpush3.msra.mxu1 %v249_v3  ;;  %7523 = vmatprep.subr.mxu0 %v9192_v56  ;;  %v368_v53 = vand.u32 4294901760, %v367_v14  ;;  %v9291_v60 = vand.u32 4294901760, %v9254_v10  ;;  %v13625_v8 = vand.u32 4294901760, %v9246_v33 }
  0x1f   :  { %13622 = vst [vmem:[#allocation22_spill] sm:$0xff] %v9274_v54  ;;  %13623 = vst [vmem:[#allocation23_spill] sm:$0xff] %v9277_v52  ;;  %7524 = vmatpush3.msra.mxu0 %v9218_v15  ;;  %v13244_v0 = vand.u32 4294901760, %v9274_v54  ;;  %v9305_v1 = vsub.f32 %v9118_v9, %v9153_v58  ;;  %v13627_v23 = vand.u32 4294901760, %v9262_v50  ;;  %v9322_v9 = vld [vmem:[%s13198_s3] sm:$0xff]  ;;  %v9330_v58 = vand.u32 4294901760, %v9296_v16 }
  0x20   :  { %13624 = vst [vmem:[#allocation24_spill] sm:$0xff] %v9291_v60  ;;  %v256_v3 = vand.u32 4294901760, %v255_v59  ;;  %v374_v14 = vsub.f32 %v9246_v33, %v13625_v8  ;;  %7550 = vmatprep.subr.mxu1 %v368_v53  ;;  %7525 = vmatprep.subr.mxu0 %v9235_v37  ;;  %v9313_v59 = vand.u32 4294901760, %v9282_v55  ;;  %v9317_v8 = vsub.f32 %v9132_v42, %v9170_v2 }
  0x21   :  { %13626 = vst [vmem:[#allocation25_spill] sm:$0xff] %v9305_v1  ;;  %v262_v32 = vsub.f32 %v9262_v50, %v13627_v23  ;;  %7526 = vmatpush3.msra.mxu0 %v9249_v62  ;;  %v381_v23 = vsub.f32 %v9274_v54, %v13244_v0  ;;  %v13249_v45 = vand.u32 4294901760, %v9305_v1  ;;  %13629 = vst [vmem:[#allocation27_spill] sm:$0xff] %v9330_v58  ;;  %v13630_v2 = vand.u32 4294901760, %v9288_v46 }
  0x22   :  { %13628 = vst [vmem:[#allocation26_spill] sm:$0xff] %v9313_v59  ;;  %7551 = vmatpush3.msra.mxu1 %v256_v3  ;;  %v375_v53 = vand.u32 4294901760, %v374_v14  ;;  %7527 = vmatprep.subr.mxu0 %v9265_v61  ;;  %v9339_v14 = vsub.f32 %v9158_v24, %v9192_v56  ;;  %v9346_v54 = vand.u32 4294901760, %v9322_v9  ;;  %v13631_v24 = vand.u32 4294901760, %v9317_v8 }
  0x23   :  { %v263_v42 = vand.u32 4294901760, %v262_v32  ;;  %v269_v50 = vsub.f32 %v9288_v46, %v13630_v2  ;;  %v382_v0 = vand.u32 4294901760, %v381_v23  ;;  %7528 = vmatpush3.msra.mxu0 %v9277_v52  ;;  %v388_v32 = vsub.f32 %v9305_v1, %v13249_v45 }
  0x24   :  { %7552 = vmatprep.subr.mxu1 %v375_v53  ;;  %v9350_v2 = vsub.f32 %v9184_v30, %v9218_v15  ;;  %7529 = vmatprep.subr.mxu0 %v9291_v60  ;;  %v276_v53 = vsub.f32 %v9317_v8, %v13631_v24  ;;  %v13254_v23 = vand.u32 4294901760, %v9339_v14  ;;  %v82_v56 = vunpack.c.0.s8 %v8958_v18 }
  0x25   :  { %7553 = vmatpush3.msra.mxu1 %v263_v42  ;;  %v270_v3 = vand.u32 4294901760, %v269_v50  ;;  %v389_v45 = vand.u32 4294901760, %v388_v32  ;;  %7530 = vmatpush3.msra.mxu0 %v9313_v59  ;;  %v13632_v30 = vlaneseq  ;;  %v9365_v50 = vsub.f32 %v9197_v31, %v9235_v37 }
  0x26   :  { %7554 = vmatprep.subr.mxu1 %v382_v0  ;;  %v13255_v1 = vand.u32 4294901760, %v9350_v2  ;;  %v277_v42 = vand.u32 4294901760, %v276_v53  ;;  %7531 = vmatprep.subr.mxu0 %v9330_v58  ;;  %v395_v18 = vsub.f32 %v9339_v14, %v13254_v23  ;;  %v8821_v0 = vld.sshfl [vmem:[%s13195_s0] sm:$0x33 pattern:$0x76325410]  ;;  %v9376_v32 = vsub.f32 %v9211_v43, %v9249_v62 }
  0x27   :  { %v9361_v15 = vshrl.u32 %v13632_v30, 7  ;;  %7555 = vmatpush3.msra.mxu1 %v270_v3  ;;  %v9380_v31 = vsub.f32 %v9227_v38, %v9265_v61  ;;  %7532 = vmatpush3.msra.mxu0 %v9346_v54  ;;  %v13257_v53 = vand.u32 4294901760, %v9365_v50  ;;  %v9392_v43 = vsub.f32 %v9240_v41, %v9277_v52 }
  0x28   :  { %7556 = vmatprep.subr.mxu1 %v389_v45  ;;  %v283_v3 = vsub.f32 %v9350_v2, %v13255_v1  ;;  %v396_v23 = vand.u32 4294901760, %v395_v18  ;;  %7571 = vmatprep.subr.mxu0 %v8969_v22  ;;  %v13259_v38 = vand.u32 4294901760, %v9376_v32  ;;  %v9399_v1 = vsub.f32 %v9254_v10, %v9291_v60 }
  0x29   :  { %13633 = vst [vmem:[#allocation28_spill] sm:$0xff] %v9361_v15  ;;  %v9387_v24 = vsub.s32 %v82_v56, %v9361_v15  ;;  %7557 = vmatpush3.msra.mxu1 %v277_v42  ;;  %v13261_v45 = vand.u32 4294901760, %v9380_v31  ;;  %v402_v15 = vsub.f32 %v9365_v50, %v13257_v53  ;;  %v9414_v10 = vsub.f32 %v9282_v55, %v9313_v59 }
  0x2a   :  { %v284_v56 = vand.u32 4294901760, %v283_v3  ;;  %7558 = vmatprep.subr.mxu1 %v396_v23  ;;  %v290_v42 = vsub.f32 %v9376_v32, %v13259_v38  ;;  %v13267_v30 = vand.u32 4294901760, %v9399_v1  ;;  %v87_v3 = vcombine.high %v8821_v0, %v8821_v0 }
  0x2b   :  { %13634 = vst [vmem:[#allocation29_spill] sm:$0xff] %v9387_v24  ;;  %v409_v18 = vsub.f32 %v9380_v31, %v13261_v45  ;;  %v9416_v53 = vand.u32 4294901760, %v8821_v0  ;;  %v403_v41 = vand.u32 4294901760, %v402_v15  ;;  %v13636_v23 = vand.u32 4294901760, %v9392_v43 }
  0x2c   :  { %7559 = vmatpush3.msra.mxu1 %v284_v56  ;;  %v291_v38 = vand.u32 4294901760, %v290_v42  ;;  %v416_v45 = vsub.f32 %v9399_v1, %v13267_v30  ;;  %v13266_v60 = vand.u32 4294901760, %v9414_v10  ;;  %v9425_v52 = vand.u32 4294901760, %v87_v3 }
  0x2d   :  { %13635 = vst [vmem:[#allocation30_spill] sm:$0xff] %v9416_v53  ;;  %v297_v24 = vsub.f32 %v9392_v43, %v13636_v23  ;;  %v410_v22 = vand.u32 4294901760, %v409_v18  ;;  %7560 = vmatprep.subr.mxu1 %v403_v41  ;;  %v9428_v55 = vsub.f32 %v8821_v0, %v9416_v53  ;;  %v9432_v15 = vsub.f32 %v9296_v16, %v9330_v58 }
  0x2e   :  { %13637 = vst [vmem:[#allocation31_spill] sm:$0xff] %v9425_v52  ;;  %7561 = vmatpush3.msra.mxu1 %v291_v38  ;;  %v417_v42 = vand.u32 4294901760, %v416_v45  ;;  %v304_v18 = vsub.f32 %v9414_v10, %v13266_v60  ;;  %v9439_v23 = vsub.f32 %v9322_v9, %v9346_v54  ;;  %v9442_v41 = vsub.f32 %v87_v3, %v9425_v52 }
  0x2f   :  { %v298_v56 = vand.u32 4294901760, %v297_v24  ;;  %v13272_v0 = vand.u32 4294901760, %v9428_v55  ;;  %7562 = vmatprep.subr.mxu1 %v410_v22  ;;  %v13271_v24 = vand.u32 4294901760, %v9432_v15  ;;  %427 = vmatprep.mubr.f32.mxu1 %v9425_v52  ;;  %vm966_vm1 = vcmask 64512  }
  0x30   :  { %v305_v16 = vand.u32 4294901760, %v304_v18  ;;  %v13270_v38 = vand.u32 4294901760, %v9439_v23  ;;  %v13273_v45 = vand.u32 4294901760, %v9442_v41  ;;  %vm3264_vm3 = vcmask 123904  }
  0x31   :  { %7563 = vmatpush3.msra.mxu1 %v298_v56  ;;  %v195_v9 = vsub.f32 %v9428_v55, %v13272_v0  ;;  %v423_v3 = vsub.f32 %v9432_v15, %v13271_v24  ;;  %v13649_v24 = vld [vmem:[#allocation14_spill] sm:$0xff]  ;;  %v13650_v0 = vld [vmem:[#allocation15_spill] sm:$0xff]  ;;  %vm3286_vm4 = vcmask 130048   ;;  %vm8847_vm5 = vmmov 0  }
  0x32   :  { %7564 = vmatprep.subr.mxu1 %v417_v42  ;;  %v311_v22 = vsub.f32 %v9439_v23, %v13270_v38  ;;  %v189_v56 = vsub.f32 %v9442_v41, %v13273_v45  ;;  %v13641_v42 = vld [vmem:[#allocation9_spill] sm:$0xff]  ;;  %v13651_v45 = vld [vmem:[#allocation16_spill] sm:$0xff]  ;;  %vm7031_vm6 = vcmask 523264   ;;  %vm7484_vm8 = vcmask 8192  }
  0x33   :  { %7565 = vmatpush3.msra.mxu1 %v305_v16  ;;  %v424_v18 = vand.u32 4294901760, %v423_v3  ;;  %v196_v60 = vand.u32 4294901760, %v195_v9  ;;  %v13642_v16 = vld [vmem:[#allocation20_spill] sm:$0xff]  ;;  %v13643_v9 = vld [vmem:[#allocation10_spill] sm:$0xff]  ;;  %v13648_v38 = vld [vmem:[#allocation13_spill] sm:$0xff] }
  0x34   :  { %v312_v30 = vand.u32 4294901760, %v311_v22  ;;  %v190_v52 = vand.u32 4294901760, %v189_v56  ;;  %v13644_v3 = vld [vmem:[#allocation22_spill] sm:$0xff]  ;;  %v13645_v22 = vld [vmem:[#allocation11_spill] sm:$0xff]  ;;  %v13646_v56 = vld [vmem:[#allocation12_spill] sm:$0xff] }
  0x35   :  { %7566 = vmatprep.subr.mxu1 %v424_v18  ;;  %v13647_v18 = vld [vmem:[#allocation25_spill] sm:$0xff] }
  0x36   :  { %7567 = vmatpush3.msra.mxu1 %v312_v30  ;;  %191 = vmatprep.mubr.f32.mxu0 %v190_v52  ;;  %v13638_v52 = vld [vmem:[#allocation7_spill] sm:$0xff]  ;;  %v13640_v30 = vld [vmem:[#allocation8_spill] sm:$0xff] }
  0x37   :  { %429 = vmatmul.mubr.f32.vlgmr.msra.gmra.mxu1 %v9416_v53  ;;  %197 = vmatmul.mubr.f32.vlgmr.msra.gmra.mxu0 %v196_v60  ;;  %v13639_v60 = vld [vmem:[#allocation17_spill] sm:$0xff]  ;;  %v13652_v53 = vld [vmem:[#allocation23_spill] sm:$0xff] }
  0x38   :  { %7606 = vmatprep.subr.mxu1 %v8926_v4  ;;  %7572 = vmatpush3.msra.mxu0 %v8991_v27 }
  0x39   :  { %7607 = vmatpush3.msra.mxu1 %v8928_v5  ;;  %7573 = vmatprep.subr.mxu0 %v8997_v29 }
  0x3a   :  { %7608 = vmatprep.subr.mxu1 %v8930_v6  ;;  %7574 = vmatpush3.msra.mxu0 %v9020_v35 }
  0x3b   :  { %7609 = vmatpush3.msra.mxu1 %v8941_v11  ;;  %7575 = vmatprep.subr.mxu0 %v9029_v39 }
  0x3c   :  { %7610 = vmatprep.subr.mxu1 %v8943_v12  ;;  %7576 = vmatpush3.msra.mxu0 %v9045_v44 }
  0x3d   :  { %7611 = vmatpush3.msra.mxu1 %v8945_v13  ;;  %7577 = vmatprep.subr.mxu0 %v9059_v49 }
  0x3e   :  { %7612 = vmatprep.subr.mxu1 %v8961_v19  ;;  %7578 = vmatpush3.msra.mxu0 %v9094_v63 }
  0x3f   :  { %7613 = vmatpush3.msra.mxu1 %v8963_v20  ;;  %7579 = vmatprep.subr.mxu0 %v9110_v7 }
  0x40   :  { %7614 = vmatprep.subr.mxu1 %v8966_v21  ;;  %7580 = vmatpush3.msra.mxu0 %v9124_v17 }
  0x41   :  { %7615 = vmatpush3.msra.mxu1 %v8988_v26  ;;  %7581 = vmatprep.subr.mxu0 %v9138_v51 }
  0x42   :  { %7616 = vmatprep.subr.mxu1 %v8994_v28  ;;  %7582 = vmatpush3.msra.mxu0 %v9150_v57 }
  0x43   :  { %7617 = vmatpush3.msra.mxu1 %v9017_v34  ;;  %7583 = vmatprep.subr.mxu0 %v9167_v25 }
  0x44   :  { %7618 = vmatprep.subr.mxu1 %v9023_v36  ;;  %7584 = vmatpush3.msra.mxu0 %v9179_v47 }
  0x45   :  { %7619 = vmatpush3.msra.mxu1 %v9032_v40  ;;  %7585 = vmatprep.subr.mxu0 %v9206_v48 }
  0x46   :  { %7620 = vmatprep.subr.mxu1 %v13638_v52  ;;  %7586 = vmatpush3.msra.mxu0 %v13639_v60 }
  0x47   :  { %7621 = vmatpush3.msra.mxu1 %v13640_v30  ;;  %7587 = vmatprep.subr.mxu0 %v9246_v33 }
  0x48   :  { %7622 = vmatprep.subr.mxu1 %v13641_v42  ;;  %7588 = vmatpush3.msra.mxu0 %v13642_v16 }
  0x49   :  { %7623 = vmatpush3.msra.mxu1 %v13643_v9  ;;  %7589 = vmatprep.subr.mxu0 %v13644_v3 }
  0x4a   :  { %7624 = vmatprep.subr.mxu1 %v13645_v22  ;;  %7590 = vmatpush3.msra.mxu0 %v9288_v46 }
  0x4b   :  { %7625 = vmatpush3.msra.mxu1 %v13646_v56  ;;  %7591 = vmatprep.subr.mxu0 %v13647_v18 }
  0x4c   :  { %7626 = vmatprep.subr.mxu1 %v13648_v38  ;;  %7592 = vmatpush3.msra.mxu0 %v9317_v8 }
  0x4d   :  { %7627 = vmatpush3.msra.mxu1 %v13649_v24  ;;  %7593 = vmatprep.subr.mxu0 %v9339_v14 }
  0x4e   :  { %7628 = vmatprep.subr.mxu1 %v13650_v0  ;;  %7594 = vmatpush3.msra.mxu0 %v9350_v2  ;;  %v13653_v0 = vld [vmem:[#allocation24_spill] sm:$0xff] }
  0x4f   :  { %564 = vmatprep.mubr.f32.mxu0 %v9442_v41  ;;  %7595 = vmatprep.subr.mxu0 %v9365_v50 }
  0x50   :  { %7629 = vmatpush3.msra.mxu1 %v13651_v45  ;;  %7596 = vmatpush3.msra.mxu0 %v9376_v32 }
  0x51   :  { %7630 = vmatprep.subr.mxu1 %v9235_v37  ;;  %7597 = vmatprep.subr.mxu0 %v9380_v31  ;;  %v13656_v37 = vand.u32 4294901760, %v8991_v27  ;;  %v13662_v27 = vand.u32 4294901760, %v9045_v44  ;;  %v13682_v44 = vand.u32 4294901760, %v9376_v32 }
  0x52   :  { %7631 = vmatpush3.msra.mxu1 %v9249_v62  ;;  %7598 = vmatpush3.msra.mxu0 %v9392_v43  ;;  %v13654_v62 = vld [vmem:[#allocation6_spill] sm:$0xff] }
  0x53   :  { %7632 = vmatprep.subr.mxu1 %v9265_v61  ;;  %7599 = vmatprep.subr.mxu0 %v9399_v1  ;;  %v13655_v61 = vand.u32 4294901760, %v13654_v62  ;;  %v13661_v62 = vand.u32 4294901760, %v9029_v39  ;;  %v13680_v39 = vand.u32 4294901760, %v9350_v2 }
  0x54   :  { %7633 = vmatpush3.msra.mxu1 %v13652_v53  ;;  %7600 = vmatpush3.msra.mxu0 %v9414_v10  ;;  %v13658_v53 = vand.u32 4294901760, %v9442_v41 }
  0x55   :  { %7634 = vmatprep.subr.mxu1 %v13653_v0  ;;  %7601 = vmatprep.subr.mxu0 %v9432_v15  ;;  %v13657_v0 = vand.u32 4294901760, %v8997_v29  ;;  %v13663_v29 = vand.u32 4294901760, %v9059_v49  ;;  %v13684_v49 = vld [vmem:[#allocation15_spill] sm:$0xff] }
  0x56   :  { %7635 = vmatpush3.msra.mxu1 %v9313_v59  ;;  %7602 = vmatpush3.msra.mxu0 %v9439_v23  ;;  %v13659_v59 = vand.u32 4294901760, %v9020_v35  ;;  %v13664_v35 = vand.u32 4294901760, %v9094_v63  ;;  %v13685_v63 = vand.u32 4294901760, %v9392_v43 }
  0x57   :  { %7636 = vmatprep.subr.mxu1 %v9330_v58  ;;  %567 = vmatmul.mubr.f32.vlgmr.msra.gmra.mxu0 %v9428_v55  ;;  %v13660_v58 = vand.u32 4294901760, %v9428_v55 }
  0x58   :  { %7641 = vmatprep.subr.mxu0 %v13655_v61  ;;  %7637 = vmatpush3.msra.mxu1 %v9346_v54  ;;  %v13693_v61 = vld [vmem:[#allocation21_spill] sm:$0xff] }
  0x59   :  { %7642 = vmatpush3.msra.mxu0 %v13656_v37  ;;  %671 = vmatprep.mubr.f32.mxu1 %v13658_v53  ;;  %v13665_v37 = vand.u32 4294901760, %v9110_v7  ;;  %v13686_v7 = vld [vmem:[#allocation31_spill] sm:$0xff] }
  0x5a   :  { %7643 = vmatprep.subr.mxu0 %v13657_v0  ;;  %675 = vmatmul.mubr.f32.vlgmr.msra.gmra.mxu1 %v13660_v58  ;;  %v13691_v58 = vld [vmem:[#allocation19_spill] sm:$0xff] }
  0x5b   :  { %7644 = vmatpush3.msra.mxu0 %v13659_v59  ;;  %7676 = vmatprep.subr.mxu1 %v8926_v4  ;;  %v13666_v4 = vand.u32 4294901760, %v9124_v17  ;;  %v13687_v17 = vand.u32 4294901760, %v9399_v1  ;;  %v13695_v1 = vld [vmem:[#allocation23_spill] sm:$0xff]  ;;  %v13696_v59 = vld [vmem:[#allocation24_spill] sm:$0xff] }
  0x5c   :  { %7645 = vmatprep.subr.mxu0 %v13661_v62  ;;  %7677 = vmatpush3.msra.mxu1 %v8928_v5  ;;  %v13667_v5 = vand.u32 4294901760, %v9138_v51  ;;  %v13689_v51 = vld [vmem:[#allocation18_spill] sm:$0xff] }
  0x5d   :  { %7646 = vmatpush3.msra.mxu0 %v13662_v27  ;;  %7678 = vmatprep.subr.mxu1 %v8930_v6  ;;  %v13668_v6 = vand.u32 4294901760, %v9150_v57  ;;  %v13690_v57 = vand.u32 4294901760, %v9432_v15 }
  0x5e   :  { %7647 = vmatprep.subr.mxu0 %v13663_v29  ;;  %7679 = vmatpush3.msra.mxu1 %v8941_v11  ;;  %v13669_v11 = vand.u32 4294901760, %v9167_v25  ;;  %v13692_v25 = vand.u32 4294901760, %v9439_v23 }
  0x5f   :  { %7648 = vmatpush3.msra.mxu0 %v13664_v35  ;;  %7680 = vmatprep.subr.mxu1 %v8943_v12  ;;  %v13670_v12 = vand.u32 4294901760, %v9179_v47  ;;  %v13688_v47 = vand.u32 4294901760, %v9414_v10  ;;  %v965_v35 = vld [vmem:[%s13200_s5 + $0x8] sm:$0xff] }
  0x60   :  { %7649 = vmatprep.subr.mxu0 %v13665_v37  ;;  %7681 = vmatpush3.msra.mxu1 %v8945_v13  ;;  %v13671_v13 = vand.u32 4294901760, %v9206_v48  ;;  %v13683_v48 = vand.u32 4294901760, %v9380_v31  ;;  %v964_v37 = vld [vmem:[%s13200_s5] sm:$0xff] }
  0x61   :  { %7650 = vmatpush3.msra.mxu0 %v13666_v4  ;;  %7682 = vmatprep.subr.mxu1 %v8961_v19  ;;  %v13672_v19 = vand.u32 4294901760, %v13639_v60  ;;  %v9637_v4 = vand.u32 4294901760, %v965_v35 }
  0x62   :  { %7651 = vmatprep.subr.mxu0 %v13667_v5  ;;  %7683 = vmatpush3.msra.mxu1 %v8963_v20  ;;  %v13673_v20 = vand.u32 4294901760, %v9246_v33  ;;  %v13677_v33 = vand.u32 4294901760, %v13647_v18  ;;  %v9639_v5 = vand.u32 4294901760, %v964_v37 }
  0x63   :  { %7652 = vmatpush3.msra.mxu0 %v13668_v6  ;;  %7684 = vmatprep.subr.mxu1 %v8966_v21  ;;  %v13674_v21 = vand.u32 4294901760, %v13642_v16  ;;  %v13297_v6 = vmov 0.0  }
  0x64   :  { %7653 = vmatprep.subr.mxu0 %v13669_v11  ;;  %7685 = vmatpush3.msra.mxu1 %v8988_v26  ;;  %v13675_v26 = vand.u32 4294901760, %v13644_v3  ;;  %v9644_v11 = vsub.f32 %v965_v35, %v9637_v4 }
  0x65   :  { %7654 = vmatpush3.msra.mxu0 %v13670_v12  ;;  %7686 = vmatprep.subr.mxu1 %v8994_v28  ;;  %v13676_v28 = vand.u32 4294901760, %v9288_v46  ;;  %v13694_v46 = vld [vmem:[#allocation30_spill] sm:$0xff]  ;;  %v9647_v12 = vsub.f32 %v964_v37, %v9639_v5 }
  0x66   :  { %7655 = vmatprep.subr.mxu0 %v13671_v13  ;;  %7687 = vmatpush3.msra.mxu1 %v9017_v34  ;;  %v13678_v34 = vand.u32 4294901760, %v9317_v8  ;;  %v13697_v8 = vld [vmem:[#allocation26_spill] sm:$0xff]  ;;  %v13290_v13 = vand.u32 4294901760, %v9644_v11 }
  0x67   :  { %7656 = vmatpush3.msra.mxu0 %v13672_v19  ;;  %7688 = vmatprep.subr.mxu1 %v9023_v36  ;;  %v13679_v36 = vand.u32 4294901760, %v9339_v14  ;;  %v13698_v14 = vld [vmem:[#allocation27_spill] sm:$0xff]  ;;  %v13288_v19 = vand.u32 4294901760, %v9647_v12 }
  0x68   :  { %7657 = vmatprep.subr.mxu0 %v13673_v20  ;;  %7689 = vmatpush3.msra.mxu1 %v9032_v40  ;;  %v13681_v40 = vand.u32 4294901760, %v9365_v50  ;;  %v1081_v20 = vsub.f32 %v9644_v11, %v13290_v13 }
  0x69   :  { %7658 = vmatpush3.msra.mxu0 %v13674_v21  ;;  %7690 = vmatprep.subr.mxu1 %v13638_v52  ;;  %v1087_v21 = vsub.f32 %v9647_v12, %v13288_v19 }
  0x6a   :  { %7659 = vmatprep.subr.mxu0 %v13675_v26  ;;  %7691 = vmatpush3.msra.mxu1 %v13640_v30  ;;  %v1082_v26 = vand.u32 4294901760, %v1081_v20 }
  0x6b   :  { %7660 = vmatpush3.msra.mxu0 %v13676_v28  ;;  %7692 = vmatprep.subr.mxu1 %v13641_v42  ;;  %v1088_v28 = vand.u32 4294901760, %v1087_v21 }
  0x6c   :  { %7661 = vmatprep.subr.mxu0 %v13677_v33  ;;  %7693 = vmatpush3.msra.mxu1 %v13643_v9  ;;  %v1478_v33 = vld [vmem:[%s13199_s4 + $0xf8] sm:$0xff] }
  0x6d   :  { %7662 = vmatpush3.msra.mxu0 %v13678_v34  ;;  %7694 = vmatprep.subr.mxu1 %v13645_v22  ;;  %v1462_v34 = vld [vmem:[%s13199_s4 + $0x78] sm:$0xff] }
  0x6e   :  { %7663 = vmatprep.subr.mxu0 %v13679_v36  ;;  %7695 = vmatpush3.msra.mxu1 %v13646_v56  ;;  %v1477_v36 = vld [vmem:[%s13199_s4 + $0xf0] sm:$0xff] }
  0x6f   :  { %7664 = vmatpush3.msra.mxu0 %v13680_v39  ;;  %7696 = vmatprep.subr.mxu1 %v13648_v38 }
  0x70   :  { %7665 = vmatprep.subr.mxu0 %v13681_v40  ;;  %7697 = vmatpush3.msra.mxu1 %v13649_v24  ;;  %v9670_v40 = vand.u32 4294901760, %v1478_v33 }
  0x71   :  { %7666 = vmatpush3.msra.mxu0 %v13682_v44  ;;  %7698 = vmatprep.subr.mxu1 %v13684_v49  ;;  %v9672_v44 = vand.u32 4294901760, %v1462_v34  ;;  %v1461_v49 = vld [vmem:[%s13199_s4 + $0x70] sm:$0xff] }
  0x72   :  { %7667 = vmatprep.subr.mxu0 %v13683_v48  ;;  %841 = vmatprep.mubr.f32.mxu0 %v13686_v7  ;;  %v9674_v48 = vand.u32 4294901760, %v1477_v36 }
  0x73   :  { %7668 = vmatpush3.msra.mxu0 %v13685_v63  ;;  %7699 = vmatpush3.msra.mxu1 %v13651_v45  ;;  %v9680_v63 = vsub.f32 %v1478_v33, %v9670_v40 }
  0x74   :  { %7669 = vmatprep.subr.mxu0 %v13687_v17  ;;  %7700 = vmatprep.subr.mxu1 %v13689_v51  ;;  %v1476_v17 = vld [vmem:[%s13199_s4 + $0xe8] sm:$0xff]  ;;  %v9691_v51 = vsub.f32 %v1477_v36, %v9674_v48 }
  0x75   :  { %7670 = vmatpush3.msra.mxu0 %v13688_v47  ;;  %7701 = vmatpush3.msra.mxu1 %v13691_v58  ;;  %v9688_v47 = vand.u32 4294901760, %v1461_v49  ;;  %v9696_v58 = vand.u32 4294901760, %v1476_v17 }
  0x76   :  { %7671 = vmatprep.subr.mxu0 %v13690_v57  ;;  %7702 = vmatprep.subr.mxu1 %v13693_v61  ;;  %13700 = vst [vmem:[#allocation17_spill] sm:$0xff] %v9691_v51  ;;  %v1460_v57 = vld [vmem:[%s13199_s4 + $0x68] sm:$0xff] }
  0x77   :  { %7672 = vmatpush3.msra.mxu0 %v13692_v25  ;;  %7703 = vmatpush3.msra.mxu1 %v13695_v1  ;;  %13701 = vst [vmem:[#allocation8_spill] sm:$0xff] %v9696_v58  ;;  %v13286_v25 = vand.u32 4294901760, %v9680_v63  ;;  %v9704_v1 = vsub.f32 %v1461_v49, %v9688_v47 }
  0x78   :  { %843 = vmatmul.mubr.f32.vlgmr.msra.gmra.mxu0 %v13694_v46  ;;  %7704 = vmatprep.subr.mxu1 %v13696_v59  ;;  %v9706_v59 = vand.u32 4294901760, %v1460_v57 }
  0x79   :  { %945 = vmatprep.mubr.f32.mxu1 %v13686_v7  ;;  %7705 = vmatpush3.msra.mxu1 %v13697_v8  ;;  %v9683_v7 = vsub.f32 %v1462_v34, %v9672_v44  ;;  %13702 = vst [vmem:[#allocation9_spill] sm:$0xff] %v9704_v1  ;;  %v1459_v8 = vld [vmem:[%s13199_s4 + $0x60] sm:$0xff] }
  0x7a   :  { %7706 = vmatprep.subr.mxu1 %v13698_v14  ;;  %1036 = vmatprep.mubr.f32.mxu0 %v13297_v6  ;;  %v13284_v14 = vand.u32 4294901760, %v9691_v51 }
  0x7b   :  { %7707 = vmatpush3.msra.mxu1 %v9346_v54  ;;  %1001 = vmatprep.subr.mxu0 %v9637_v4  ;;  %13699 = vst [vmem:[#allocation7_spill] sm:$0xff] %v9683_v7  ;;  %v13285_v61 = vand.u32 4294901760, %v9683_v7 }
  0x7c   :  { %947 = vmatmul.mubr.f32.vlgmr.msra.gmra.mxu1 %v13694_v46  ;;  %1003 = vmatpush1.msra.mxu0 %v9639_v5  ;;  %v1475_v46 = vld [vmem:[%s13199_s4 + $0xe0] sm:$0xff] }
  0x7d   :  { %1122 = vmatprep.mubr.f32.mxu1 %v13297_v6  ;;  %1162 = vmatprep.subr.mxu0 %v9644_v11 }
  0x7e   :  { %1083 = vmatprep.subr.mxu1 %v1082_v26  ;;  %v9793_v26 = vld [vmem:[%s13196_s1] sm:$0xff] }
  0x7f   :  { %1089 = vmatpush1.msra.mxu1 %v1088_v28  ;;  %13708 = vst [vmem:[#allocation25_spill] sm:$0xff] %v9793_v26 }
  0x80   :  { %1238 = vmatprep.subr.mxu1 %v9637_v4 }
  0xf7   :  { %v7533_v2 = vpop.f32.mrf.mxu0  ;;  %v7568_v50 = vpop.f32.mrf.mxu1 }
  0xf9   :  { %v7534_v32 = vpop.f32.mrf.mxu0  ;;  %v7569_v31 = vpop.f32.mrf.mxu1 }
  0xfa   :  { %v7570_v55 = vadd.f32 %v7569_v31, %v7568_v50  ;;  %v7535_v23 = vadd.f32 %v7534_v32, %v7533_v2  ;;  %v9713_v2 = vsub.f32 %v1476_v17, %v9696_v58  ;;  %v9715_v50 = vand.u32 4294901760, %v1475_v46  ;;  %v1474_v32 = vld [vmem:[%s13199_s4 + $0xd8] sm:$0xff] }
  0xfb   :  { %v9723_v31 = vsub.f32 %v9680_v63, %v13286_v25 }
  0xfc   :  { %v431_v24 = vadd.f32 %v7570_v55, %v7535_v23  ;;  %13703 = vst [vmem:[#allocation20_spill] sm:$0xff] %v9713_v2  ;;  %v13283_v55 = vand.u32 4294901760, %v9704_v1  ;;  %v1473_v23 = vld [vmem:[%s13199_s4 + $0xd0] sm:$0xff] }
 0x117   :  { %v7603_v53 = vpop.f32.mrf.mxu0 }
 0x119   :  { %v7604_v10 = vpop.f32.mrf.mxu0 }
 0x11a   :  { %v7638_v43 = vpop.f32.mrf.mxu1  ;;  %v7605_v41 = vadd.f32 %v7604_v10, %v7603_v53  ;;  %v9728_v53 = vsub.f32 %v9683_v7, %v13285_v61  ;;  %v1458_v10 = vld [vmem:[%s13199_s4 + $0x58] sm:$0xff] }
 0x11c   :  { %v7639_v15 = vpop.f32.mrf.mxu1  ;;  %v569_v52 = vadd.f32 %v7605_v41, %v431_v24  ;;  %v9747_v24 = vand.u32 4294901760, %v1474_v32 }
 0x11d   :  { %v7640_v38 = vadd.f32 %v7639_v15, %v7638_v43  ;;  %v9730_v43 = vand.u32 4294901760, %v1459_v8  ;;  %v9737_v15 = vsub.f32 %v1460_v57, %v9706_v59 }
 0x11e   :  { %v9786_v20 = vsub.f32 %v1474_v32, %v9747_v24 }
 0x11f   :  { %v677_v30 = vadd.f32 %v7640_v38, %v569_v52  ;;  %13704 = vst [vmem:[#allocation10_spill] sm:$0xff] %v9737_v15  ;;  %v1457_v38 = vld [vmem:[%s13199_s4 + $0x50] sm:$0xff]  ;;  %v13281_v52 = vand.u32 4294901760, %v9713_v2 }
 0x120   :  { %13707 = vst [vmem:[#allocation12_spill] sm:$0xff] %v9786_v20 }
 0x121   :  { %v9798_v28 = vsub.f32 %v9713_v2, %v13281_v52 }
 0x138   :  { %v7673_v0 = vpop.f32.mrf.mxu0 }
 0x13a   :  { %v7674_v45 = vpop.f32.mrf.mxu0 }
 0x13b   :  { %v7675_v60 = vadd.f32 %v7674_v45, %v7673_v0  ;;  %v9745_v0 = vsub.f32 %v9691_v51, %v13284_v14 }
 0x13c   :  { %v7708_v54 = vpop.f32.mrf.mxu1 }
 0x13d   :  { %v845_v16 = vadd.f32 %v7675_v60, %v677_v30  ;;  %v9754_v60 = vsub.f32 %v1475_v46, %v9715_v50  ;;  %v1472_v30 = vld [vmem:[%s13199_s4 + $0xc8] sm:$0xff] }
 0x13e   :  { %v7709_v42 = vpop.f32.mrf.mxu1  ;;  %v9788_v21 = vand.u32 4294901760, %v1472_v30 }
 0x13f   :  { %v7710_v9 = vadd.f32 %v7709_v42, %v7708_v54  ;;  %13705 = vst [vmem:[#allocation22_spill] sm:$0xff] %v9754_v60  ;;  %v9756_v54 = vand.u32 4294901760, %v1458_v10  ;;  %v1762_v42 = vand.u32 4294901760, %v9723_v31  ;;  %v13287_v33 = vand.u32 4294901760, %v9754_v60 }
 0x141   :  { %v949_v3 = vadd.f32 %v7710_v9, %v845_v16  ;;  %v9764_v9 = vsub.f32 %v1459_v8, %v9730_v43  ;;  %v9802_v34 = vsub.f32 %v1458_v10, %v9756_v54  ;;  %v13713_v10 = vld [vmem:[#allocation29_spill] sm:$0xff]  ;;  %v1453_v16 = vld [vmem:[%s13199_s4 + $0x30] sm:$0xff] }
 0x143   :  { %v953_v22 = vsel %vm952_vm0, %v949_v3, -inf  ;;  %13706 = vst [vmem:[#allocation11_spill] sm:$0xff] %v9764_v9  ;;  %13709 = vst [vmem:[#allocation13_spill] sm:$0xff] %v9802_v34  ;;  %v13289_v17 = vand.u32 4294901760, %v9764_v9 }
 0x144   :  { %954 = vmax.xlane.f32.xlu0 %v953_v22  ;;  %v1456_v22 = vld [vmem:[%s13199_s4 + $0x48] sm:$0xff] }
 0x145   :  { %v9804_v36 = vand.u32 4294901760, %v1456_v22  ;;  %v9859_v61 = vsub.f32 %v9764_v9, %v13289_v17  ;;  %v1469_v17 = vld [vmem:[%s13199_s4 + $0xb0] sm:$0xff]  ;;  %v1451_v9 = vld [vmem:[%s13199_s4 + $0x20] sm:$0xff] }
 0x147   :  { %v9853_v14 = vsub.f32 %v1456_v22, %v9804_v36  ;;  %v1671_v22 = vand.u32 4294901760, %v9859_v61 }
 0x149   :  { %13715 = vst [vmem:[#allocation31_spill] sm:$0xff] %v9853_v14 }
 0x1cd   :  { %v955_v56 = vpop.xlane.xlu0 %954 }
 0x1ce   :  { %v956_v18 = vsub.f32 %v949_v3, %v955_v56  ;;  %v9766_v3 = vand.u32 4294901760, %v1473_v23 }
 0x1d0   :  { %v957_v62 = vmul.f32 1.442695, %v956_v18  ;;  %v9774_v18 = vsub.f32 %v9704_v1, %v13283_v55  ;;  %v9815_v57 = vsub.f32 %v1473_v23, %v9766_v3  ;;  %v9832_v23 = vrot.slane %v9793_v26, %v13713_v10 }
 0x1d1   :  { %v9849_v55 = vsub.f32 %v9754_v60, %v13287_v33  ;;  %v1454_v33 = vld [vmem:[%s13199_s4 + $0x38] sm:$0xff]  ;;  %v9928_v10 = vand.u32 4294901760, %v1453_v16  ;;  %v1449_v60 = vld [vmem:[%s13199_s4 + $0x10] sm:$0xff] }
 0x1d2   :  { %8811 = vpow2.f32 %v957_v62  ;;  %v13282_v62 = vand.u32 4294901760, %v9737_v15  ;;  %13710 = vst [vmem:[#allocation14_spill] sm:$0xff] %v9815_v57  ;;  %v13293_v25 = vand.u32 4294901760, %v9815_v57 }
 0x1d3   :  { %v1783_v13 = vand.u32 4294901760, %v9849_v55 }
 0x1d4   :  { %v9825_v32 = vsub.f32 %v9737_v15, %v13282_v62  ;;  %v9910_v55 = vsub.f32 %v9815_v57, %v13293_v25  ;;  %v13722_v57 = vand.u32 4294901760, %v9644_v11  ;;  %v13725_v11 = vand.u32 4294901760, %v9745_v0 }
 0x1d5   :  { %v13728_v0 = vand.u32 4294901760, %v9774_v18  ;;  %v13731_v18 = vmov 0.0  }
 0x1d6   :  { %v13735_v15 = vand.u32 4294901760, %v9825_v32 }
 0x1df   :  { %v8812_v27 = vpop.eup %8811 }
 0x1e0   :  { %v959_v29 = vsel %vm952_vm0, %v8812_v27, 0.0 }
 0x1e1   :  { %960 = vadd.xlane.f32.xlu0 %v959_v29  ;;  %v1471_v29 = vld [vmem:[%s13199_s4 + $0xc0] sm:$0xff] }
 0x1e2   :  { %v9817_v46 = vand.u32 4294901760, %v1471_v29 }
 0x1e4   :  { %13711 = vst [vmem:[#allocation16_spill] sm:$0xff] %v9817_v46  ;;  %v9863_v62 = vsub.f32 %v1471_v29, %v9817_v46  ;;  %v9879_v29 = vcombine.high %v9832_v23, %v9832_v23 }
 0x1e6   :  { %13716 = vst [vmem:[#allocation18_spill] sm:$0xff] %v9863_v62  ;;  %v9934_v26 = vand.u32 4294901760, %v9879_v29 }
 0x1e8   :  { %13721 = vst [vmem:[#allocation23_spill] sm:$0xff] %v9934_v26 }
 0x26a   :  { %v961_v39 = vpop.xlane.xlu0 %960 }
 0x26b   :  { %8813 = vrcp.f32 %v961_v39  ;;  %v1455_v39 = vld [vmem:[%s13199_s4 + $0x40] sm:$0xff] }
 0x26c   :  { %v9840_v52 = vand.u32 4294901760, %v1455_v39 }
 0x26e   :  { %v9888_v37 = vsub.f32 %v1455_v39, %v9840_v52  ;;  %v1468_v39 = vld [vmem:[%s13199_s4 + $0xa8] sm:$0xff] }
 0x270   :  { %13718 = vst [vmem:[#allocation21_spill] sm:$0xff] %v9888_v37 }
 0x278   :  { %v8814_v41 = vpop.eup %8813 }
 0x279   :  { %v963_v45 = vmul.f32 %v8814_v41, %v8812_v27  ;;  %v9777_v27 = vand.u32 4294901760, %v1457_v38 }
 0x27b   :  { %v968_v56 = vsel %vm966_vm1, %v963_v45, 0  ;;  %v9828_v31 = vsub.f32 %v1457_v38, %v9777_v27  ;;  %v13291_v45 = vand.u32 4294901760, %v9786_v20  ;;  %v1470_v38 = vld [vmem:[%s13199_s4 + $0xb8] sm:$0xff] }
 0x27c   :  { %v9782_v35 = vand.u32 4294901760, %v968_v56  ;;  %v9872_v19 = vand.u32 4294901760, %v1470_v38 }
 0x27d   :  { %13712 = vst [vmem:[#allocation6_spill] sm:$0xff] %v9828_v31 }
 0x27e   :  { %v9810_v49 = vsub.f32 %v968_v56, %v9782_v35  ;;  %1124 = vmatmul.mubr.f32.vlgmr.msra.gmra.mxu1 %v9782_v35  ;;  %v9838_v56 = vsub.f32 %v1472_v30, %v9788_v21  ;;  %13717 = vst [vmem:[#allocation19_spill] sm:$0xff] %v9872_v19  ;;  %v9926_v25 = vsub.f32 %v1470_v38, %v9872_v19 }
 0x27f   :  { %1240 = vmatpush1.msra.mxu1 %v9639_v5  ;;  %1273 = vmatprep.mubr.f32.mxu1 %v13297_v6 }
 0x280   :  { %v1039_v41 = vand.u32 4294901760, %v9810_v49  ;;  %1392 = vmatprep.subr.mxu1 %v9637_v4  ;;  %13714 = vst [vmem:[#allocation15_spill] sm:$0xff] %v9838_v56  ;;  %v13292_v4 = vand.u32 4294901760, %v9802_v34  ;;  %13720 = vst [vmem:[#allocation30_spill] sm:$0xff] %v9926_v25  ;;  %v13724_v38 = vand.u32 4294901760, %v9838_v56 }
 0x282   :  { %1277 = vmatmul.mubr.f32.vlgmr.msra.gmra.mxu1 %v1039_v41  ;;  %v1040_v30 = vsub.f32 %v9810_v49, %v1039_v41  ;;  %v9913_v41 = vand.u32 4294901760, %v1469_v17 }
 0x283   :  { %1394 = vmatpush1.msra.mxu1 %v9639_v5  ;;  %1427 = vmatprep.mubr.f32.mxu1 %v13297_v6  ;;  %v9884_v5 = vsub.f32 %v9786_v20, %v13291_v45  ;;  %v9900_v45 = vand.u32 4294901760, %v1454_v33  ;;  %v9947_v20 = vand.u32 4294901760, %v1468_v39 }
 0x284   :  { %v1041_v8 = vand.u32 4294901760, %v1040_v30  ;;  %7746 = vmatprep.subr.mxu1 %v1762_v42  ;;  %v9897_v42 = vsub.f32 %v9802_v34, %v13292_v4  ;;  %v1452_v30 = vld [vmem:[%s13199_s4 + $0x28] sm:$0xff]  ;;  %v1467_v4 = vld [vmem:[%s13199_s4 + $0xa0] sm:$0xff]  ;;  %v1466_v34 = vld [vmem:[%s13199_s4 + $0x98] sm:$0xff] }
 0x286   :  { %1042 = vmatmul.mubr.f32.vlgmr.msra.gmra.mxu0 %v1041_v8  ;;  %1429 = vmatmul.mubr.f32.vlgmr.msra.gmra.mxu1 %v9782_v35  ;;  %v13719_v8 = vand.u32 4294901760, %v9828_v31 }
 0x287   :  { %1165 = vmatpush1.msra.mxu0 %v9647_v12  ;;  %1198 = vmatprep.mubr.f32.mxu0 %v13297_v6  ;;  %v13723_v6 = vand.u32 4294901760, %v9728_v53  ;;  %v13726_v53 = vand.u32 4294901760, %v9853_v14 }
 0x288   :  { %v9923_v61 = vsub.f32 %v9828_v31, %v13719_v8  ;;  %1316 = vmatprep.subr.mxu0 %v13722_v57  ;;  %v1790_v8 = vand.u32 4294901760, %v9884_v5  ;;  %v9944_v31 = vsub.f32 %v9838_v56, %v13724_v38  ;;  %v9961_v5 = vsub.f32 %v1454_v33, %v9900_v45  ;;  %1870 = vmatprep.mubr.f32.mxu1 %v9934_v26  ;;  %v1450_v56 = vld [vmem:[%s13199_s4 + $0x18] sm:$0xff] }
 0x289   :  { %7747 = vmatpush3.msra.mxu1 %v13723_v6  ;;  %v1678_v6 = vand.u32 4294901760, %v9897_v42  ;;  %v9958_v57 = vsub.f32 %v9853_v14, %v13726_v53  ;;  %v9963_v38 = vand.u32 4294901760, %v1452_v30  ;;  %v1797_v42 = vand.u32 4294901760, %v9910_v55 }
 0x28a   :  { %7748 = vmatprep.subr.mxu1 %v13725_v11  ;;  %13727 = vst [vmem:[#allocation24_spill] sm:$0xff] %v9961_v5  ;;  %1201 = vmatmul.mubr.f32.vlgmr.msra.gmra.mxu0 %v9810_v49  ;;  %v13729_v11 = vand.u32 4294901760, %v9863_v62  ;;  %v9979_v53 = vsub.f32 %v1469_v17, %v9913_v41  ;;  %v9981_v14 = vand.u32 4294901760, %v1467_v4  ;;  %v13730_v49 = vand.u32 4294901760, %v9647_v12 }
 0x28b   :  { %7749 = vmatpush3.msra.mxu1 %v13728_v0  ;;  %1353 = vmatprep.mubr.f32.mxu0 %v13731_v18  ;;  %v1685_v55 = vand.u32 4294901760, %v9923_v61  ;;  %v9994_v17 = vand.u32 4294901760, %v1451_v9  ;;  %v13733_v12 = vand.u32 4294901760, %v9798_v28  ;;  %v13734_v61 = vand.u32 4294901760, %v9888_v37 }
 0x28c   :  { %v9976_v33 = vsub.f32 %v9863_v62, %v13729_v11  ;;  %1320 = vmatpush1.msra.mxu0 %v13730_v49  ;;  %v9992_v11 = vsub.f32 %v1453_v16, %v9928_v10  ;;  %v1465_v62 = vld [vmem:[%s13199_s4 + $0x90] sm:$0xff]  ;;  %v1804_v49 = vand.u32 4294901760, %v9944_v31  ;;  %v10009_v16 = vsub.f32 %v1468_v39, %v9947_v20  ;;  %v1464_v39 = vld [vmem:[%s13199_s4 + $0x88] sm:$0xff] }
 0x28d   :  { %7711 = vmatprep.subr.mxu0 %v9670_v40  ;;  %7750 = vmatprep.subr.mxu1 %v13733_v12  ;;  %v10006_v0 = vsub.f32 %v9888_v37, %v13734_v61  ;;  %v10011_v18 = vand.u32 4294901760, %v1466_v34  ;;  %v1692_v28 = vand.u32 4294901760, %v9958_v57  ;;  %v10021_v12 = vsub.f32 %v1452_v30, %v9963_v38  ;;  %v1448_v30 = vld [vmem:[%s13199_s4 + $0x8] sm:$0xff] }
 0x28e   :  { %13732 = vst [vmem:[#allocation26_spill] sm:$0xff] %v9992_v11  ;;  %7751 = vmatpush3.msra.mxu1 %v13735_v15  ;;  %v10023_v61 = vand.u32 4294901760, %v1450_v56  ;;  %1355 = vmatmul.mubr.f32.vlgmr.msra.gmra.mxu0 %v9782_v35  ;;  %v1811_v37 = vand.u32 4294901760, %v9976_v33  ;;  %v10032_v32 = vsub.f32 %v1467_v4, %v9981_v14  ;;  %v10034_v57 = vand.u32 4294901760, %v1465_v62  ;;  %v1463_v15 = vld [vmem:[%s13199_s4 + $0x80] sm:$0xff] }
 0x28f   :  { %7752 = vmatprep.subr.mxu1 %v1783_v13  ;;  %7712 = vmatpush3.msra.mxu0 %v9672_v44  ;;  %v13736_v31 = vand.u32 4294901760, %v9926_v25  ;;  %v10045_v33 = vsub.f32 %v1451_v9, %v9994_v17  ;;  %v10047_v4 = vand.u32 4294901760, %v1449_v60  ;;  %v10058_v35 = vand.u32 4294901760, %v1464_v39 }
 0x290   :  { %7753 = vmatpush3.msra.mxu1 %v1671_v22  ;;  %7713 = vmatprep.subr.mxu0 %v9674_v48  ;;  %v1699_v22 = vand.u32 4294901760, %v10006_v0  ;;  %v13738_v9 = vand.u32 4294901760, %v9961_v5  ;;  %v10068_v0 = vand.u32 4294901760, %v1448_v30  ;;  %v10079_v1 = vsub.f32 %v1465_v62, %v10034_v57 }
 0x291   :  { %v1817_v13 = vsub.f32 %v9926_v25, %v13736_v31  ;;  %7754 = vmatprep.subr.mxu1 %v1790_v8  ;;  %v10056_v31 = vsub.f32 %v1466_v34, %v10011_v18  ;;  %13737 = vst [vmem:[#allocation27_spill] sm:$0xff] %v10058_v35  ;;  %7714 = vmatpush3.msra.mxu0 %v9688_v47  ;;  %v1447_v34 = vld [vmem:[%s13199_s4] sm:$0xff]  ;;  %v13742_v51 = vand.u32 4294901760, %v9992_v11  ;;  %v13743_v62 = vand.u32 4294901760, %v10009_v16 }
 0x292   :  { %7755 = vmatpush3.msra.mxu1 %v1678_v6  ;;  %v1705_v25 = vsub.f32 %v9961_v5, %v13738_v9  ;;  %v10066_v8 = vsub.f32 %v1450_v56, %v10023_v61  ;;  %13739 = vst [vmem:[#allocation32_spill] sm:$0xff] %v10068_v0  ;;  %7715 = vmatprep.subr.mxu0 %v9696_v58  ;;  %v13740_v6 = vand.u32 4294901760, %v9979_v53  ;;  %v10081_v56 = vand.u32 4294901760, %v1463_v15 }
 0x293   :  { %7756 = vmatprep.subr.mxu1 %v1797_v42  ;;  %7716 = vmatpush3.msra.mxu0 %v9706_v59  ;;  %v1818_v5 = vand.u32 4294901760, %v1817_v13  ;;  %v1712_v58 = vsub.f32 %v9992_v11, %v13742_v51  ;;  %v10089_v7 = vsub.f32 %v1449_v60, %v10047_v4  ;;  %v10099_v13 = vand.u32 4294901760, %v1447_v34 }
 0x294   :  { %v1824_v2 = vsub.f32 %v9979_v53, %v13740_v6  ;;  %13741 = vst [vmem:[#allocation33_spill] sm:$0xff] %v10081_v56  ;;  %7757 = vmatpush3.msra.mxu1 %v1685_v55  ;;  %7717 = vmatprep.subr.mxu0 %v9715_v50  ;;  %v1831_v6 = vsub.f32 %v10009_v16, %v13743_v62  ;;  %v1706_v51 = vand.u32 4294901760, %v1705_v25  ;;  %v13744_v60 = vand.u32 4294901760, %v10021_v12 }
 0x295   :  { %7758 = vmatprep.subr.mxu1 %v1804_v49  ;;  %v10097_v55 = vsub.f32 %v1464_v39, %v10058_v35  ;;  %7718 = vmatpush3.msra.mxu0 %v9730_v43  ;;  %v10107_v11 = vsub.f32 %v1448_v30, %v10068_v0  ;;  %v13746_v62 = vand.u32 4294901760, %v10032_v32  ;;  %v10115_v25 = vsub.f32 %v1463_v15, %v10081_v56 }
 0x296   :  { %7759 = vmatpush3.msra.mxu1 %v1692_v28  ;;  %v1719_v42 = vsub.f32 %v10021_v12, %v13744_v60  ;;  %7719 = vmatprep.subr.mxu0 %v9747_v24  ;;  %v1825_v39 = vand.u32 4294901760, %v1824_v2  ;;  %v1713_v60 = vand.u32 4294901760, %v1712_v58  ;;  %v13747_v30 = vand.u32 4294901760, %v10045_v33 }
 0x297   :  { %13745 = vst [vmem:[#allocation34_spill] sm:$0xff] %v10107_v11  ;;  %7760 = vmatprep.subr.mxu1 %v1811_v37  ;;  %v1838_v9 = vsub.f32 %v10032_v32, %v13746_v62  ;;  %7720 = vmatpush3.msra.mxu0 %v9756_v54  ;;  %v10124_v2 = vsub.f32 %v9879_v29, %v9934_v26  ;;  %v1832_v62 = vand.u32 4294901760, %v1831_v6  ;;  %v13748_v15 = vand.u32 4294901760, %v10056_v31 }
 0x298   :  { %7761 = vmatpush3.msra.mxu1 %v1699_v22  ;;  %v1726_v49 = vsub.f32 %v10045_v33, %v13747_v30  ;;  %7721 = vmatprep.subr.mxu0 %v9766_v3  ;;  %v10132_v22 = vsub.f32 %v1447_v34, %v10099_v13  ;;  %v1720_v30 = vand.u32 4294901760, %v1719_v42  ;;  %v13749_v29 = vand.u32 4294901760, %v10066_v8 }
 0x299   :  { %7762 = vmatprep.subr.mxu1 %v1818_v5  ;;  %v1845_v28 = vsub.f32 %v10056_v31, %v13748_v15  ;;  %7722 = vmatpush3.msra.mxu0 %v9777_v27  ;;  %v1839_v6 = vand.u32 4294901760, %v1838_v9  ;;  %v13750_v15 = vand.u32 4294901760, %v10079_v1  ;;  %v10145_v26 = vand.u32 4294901760, %v9832_v23 }
 0x29a   :  { %7763 = vmatpush3.msra.mxu1 %v1706_v51  ;;  %v1733_v37 = vsub.f32 %v10066_v8, %v13749_v29  ;;  %7723 = vmatprep.subr.mxu0 %v9788_v21  ;;  %v1727_v42 = vand.u32 4294901760, %v1726_v49  ;;  %v13752_v51 = vand.u32 4294901760, %v10089_v7  ;;  %v13337_v5 = vand.u32 4294901760, %v10132_v22 }
 0x29b   :  { %7764 = vmatprep.subr.mxu1 %v1825_v39  ;;  %v1852_v58 = vsub.f32 %v10079_v1, %v13750_v15  ;;  %13751 = vst [vmem:[#allocation35_spill] sm:$0xff] %v10145_v26  ;;  %7724 = vmatpush3.msra.mxu0 %v9804_v36  ;;  %v1846_v9 = vand.u32 4294901760, %v1845_v28  ;;  %v13753_v15 = vand.u32 4294901760, %v10097_v55  ;;  %v13755_v28 = vand.u32 4294901760, %v10115_v25 }
 0x29c   :  { %7765 = vmatpush3.msra.mxu1 %v1713_v60  ;;  %v1740_v29 = vsub.f32 %v10089_v7, %v13752_v51  ;;  %7725 = vmatprep.subr.mxu0 %v9817_v46  ;;  %v1734_v49 = vand.u32 4294901760, %v1733_v37  ;;  %v13754_v60 = vand.u32 4294901760, %v10107_v11 }
 0x29d   :  { %7766 = vmatprep.subr.mxu1 %v1832_v62  ;;  %v1859_v34 = vsub.f32 %v10097_v55, %v13753_v15  ;;  %7726 = vmatpush3.msra.mxu0 %v9840_v52  ;;  %v1853_v39 = vand.u32 4294901760, %v1852_v58  ;;  %v1866_v62 = vsub.f32 %v10115_v25, %v13755_v28  ;;  %v10167_v15 = vsub.f32 %v9832_v23, %v10145_v26 }
 0x29e   :  { %7767 = vmatpush3.msra.mxu1 %v1720_v30  ;;  %v1747_v51 = vsub.f32 %v10107_v11, %v13754_v60  ;;  %7727 = vmatprep.subr.mxu0 %v9872_v19  ;;  %v1741_v37 = vand.u32 4294901760, %v1740_v29  ;;  %v13756_v30 = vand.u32 4294901760, %v10124_v2 }
 0x29f   :  { %7768 = vmatprep.subr.mxu1 %v1839_v6  ;;  %7728 = vmatpush3.msra.mxu0 %v9900_v45  ;;  %v1860_v58 = vand.u32 4294901760, %v1859_v34  ;;  %v1754_v6 = vsub.f32 %v10132_v22, %v13337_v5  ;;  %v13338_v29 = vand.u32 4294901760, %v10167_v15  ;;  %v13771_v5 = vld [vmem:[#allocation18_spill] sm:$0xff] }
 0x2a0   :  { %7769 = vmatpush3.msra.mxu1 %v1727_v42  ;;  %v1632_v60 = vsub.f32 %v10124_v2, %v13756_v30  ;;  %7729 = vmatprep.subr.mxu0 %v9913_v41  ;;  %v1748_v23 = vand.u32 4294901760, %v1747_v51  ;;  %v1867_v42 = vand.u32 4294901760, %v1866_v62  ;;  %v13758_v51 = vld [vmem:[#allocation8_spill] sm:$0xff]  ;;  %v13759_v62 = vld [vmem:[#allocation17_spill] sm:$0xff] }
 0x2a1   :  { %7770 = vmatprep.subr.mxu1 %v1846_v9  ;;  %7730 = vmatpush3.msra.mxu0 %v9928_v10  ;;  %v1755_v34 = vand.u32 4294901760, %v1754_v6  ;;  %v13761_v30 = vld [vmem:[#allocation20_spill] sm:$0xff]  ;;  %v13764_v6 = vld [vmem:[#allocation11_spill] sm:$0xff] }
 0x2a2   :  { %7771 = vmatpush3.msra.mxu1 %v1734_v49  ;;  %7731 = vmatprep.subr.mxu0 %v9947_v20  ;;  %v1633_v28 = vand.u32 4294901760, %v1632_v60  ;;  %v13757_v49 = vld [vmem:[#allocation7_spill] sm:$0xff]  ;;  %v13762_v60 = vld [vmem:[#allocation10_spill] sm:$0xff] }
 0x2a3   :  { %7772 = vmatprep.subr.mxu1 %v1853_v39  ;;  %7732 = vmatpush3.msra.mxu0 %v9963_v38  ;;  %v1638_v39 = vsub.f32 %v10167_v15, %v13338_v29  ;;  %v13772_v29 = vld [vmem:[#allocation21_spill] sm:$0xff] }
 0x2a4   :  { %7773 = vmatpush3.msra.mxu1 %v1741_v37  ;;  %7733 = vmatprep.subr.mxu0 %v9981_v14  ;;  %v13760_v37 = vld [vmem:[#allocation9_spill] sm:$0xff] }
 0x2a5   :  { %7774 = vmatprep.subr.mxu1 %v1860_v58  ;;  %7734 = vmatpush3.msra.mxu0 %v9994_v17  ;;  %v1639_v9 = vand.u32 4294901760, %v1638_v39  ;;  %v13763_v58 = vld [vmem:[#allocation22_spill] sm:$0xff]  ;;  %v13769_v39 = vld [vmem:[#allocation15_spill] sm:$0xff] }
 0x2a6   :  { %7775 = vmatpush3.msra.mxu1 %v1748_v23  ;;  %7735 = vmatprep.subr.mxu0 %v10011_v18  ;;  %v13765_v23 = vld [vmem:[#allocation12_spill] sm:$0xff] }
 0x2a7   :  { %7776 = vmatprep.subr.mxu1 %v1867_v42  ;;  %7736 = vmatpush3.msra.mxu0 %v10023_v61  ;;  %v13766_v42 = vld [vmem:[#allocation13_spill] sm:$0xff] }
 0x2a8   :  { %1634 = vmatprep.mubr.f32.mxu0 %v1633_v28  ;;  %7737 = vmatprep.subr.mxu0 %v10034_v57  ;;  %v13767_v28 = vld [vmem:[#allocation14_spill] sm:$0xff] }
 0x2a9   :  { %7777 = vmatpush3.msra.mxu1 %v1755_v34  ;;  %7738 = vmatpush3.msra.mxu0 %v10047_v4  ;;  %v13768_v34 = vld [vmem:[#allocation6_spill] sm:$0xff] }
 0x2aa   :  { %1872 = vmatmul.mubr.f32.vlgmr.msra.gmra.mxu1 %v10145_v26  ;;  %7739 = vmatprep.subr.mxu0 %v10058_v35  ;;  %v13773_v26 = vld [vmem:[#allocation30_spill] sm:$0xff] }
 0x2ab   :  { %7816 = vmatprep.subr.mxu1 %v9670_v40  ;;  %7740 = vmatpush3.msra.mxu0 %v10068_v0 }
 0x2ac   :  { %7817 = vmatpush3.msra.mxu1 %v9672_v44  ;;  %7741 = vmatprep.subr.mxu0 %v10081_v56 }
 0x2ad   :  { %7818 = vmatprep.subr.mxu1 %v9674_v48  ;;  %7742 = vmatpush3.msra.mxu0 %v10099_v13 }
 0x2ae   :  { %7819 = vmatpush3.msra.mxu1 %v9688_v47  ;;  %1640 = vmatmul.mubr.f32.vlgmr.msra.gmra.mxu0 %v1639_v9  ;;  %v13770_v9 = vld [vmem:[#allocation31_spill] sm:$0xff] }
 0x2af   :  { %7781 = vmatprep.subr.mxu0 %v9680_v63  ;;  %7820 = vmatprep.subr.mxu1 %v13758_v51 }
 0x2b0   :  { %7782 = vmatpush3.msra.mxu0 %v13757_v49  ;;  %7821 = vmatpush3.msra.mxu1 %v9706_v59 }
 0x2b1   :  { %7783 = vmatprep.subr.mxu0 %v13759_v62  ;;  %7822 = vmatprep.subr.mxu1 %v9715_v50 }
 0x2b2   :  { %7784 = vmatpush3.msra.mxu0 %v13760_v37  ;;  %7823 = vmatpush3.msra.mxu1 %v9730_v43 }
 0x2b3   :  { %7785 = vmatprep.subr.mxu0 %v13761_v30  ;;  %7824 = vmatprep.subr.mxu1 %v9747_v24 }
 0x2b4   :  { %7786 = vmatpush3.msra.mxu0 %v13762_v60  ;;  %7825 = vmatpush3.msra.mxu1 %v9756_v54 }
 0x2b5   :  { %7787 = vmatprep.subr.mxu0 %v13763_v58  ;;  %7826 = vmatprep.subr.mxu1 %v9766_v3 }
 0x2b6   :  { %7788 = vmatpush3.msra.mxu0 %v13764_v6  ;;  %7827 = vmatpush3.msra.mxu1 %v9777_v27 }
 0x2b7   :  { %7789 = vmatprep.subr.mxu0 %v13765_v23  ;;  %7828 = vmatprep.subr.mxu1 %v9788_v21 }
 0x2b8   :  { %7790 = vmatpush3.msra.mxu0 %v13766_v42  ;;  %7829 = vmatpush3.msra.mxu1 %v9804_v36 }
 0x2b9   :  { %7791 = vmatprep.subr.mxu0 %v13767_v28  ;;  %7830 = vmatprep.subr.mxu1 %v9817_v46  ;;  %v13774_v46 = vld [vmem:[#allocation24_spill] sm:$0xff] }
 0x2ba   :  { %7792 = vmatpush3.msra.mxu0 %v13768_v34  ;;  %7831 = vmatpush3.msra.mxu1 %v9840_v52 }
 0x2bb   :  { %7793 = vmatprep.subr.mxu0 %v13769_v39  ;;  %7832 = vmatprep.subr.mxu1 %v9872_v19  ;;  %v13775_v19 = vld [vmem:[#allocation26_spill] sm:$0xff] }
 0x2bc   :  { %7794 = vmatpush3.msra.mxu0 %v13770_v9  ;;  %7833 = vmatpush3.msra.mxu1 %v9900_v45 }
 0x2bd   :  { %7795 = vmatprep.subr.mxu0 %v13771_v5  ;;  %7834 = vmatprep.subr.mxu1 %v9913_v41 }
 0x2be   :  { %7796 = vmatpush3.msra.mxu0 %v13772_v29  ;;  %7835 = vmatpush3.msra.mxu1 %v9928_v10 }
 0x2bf   :  { %7797 = vmatprep.subr.mxu0 %v13773_v26  ;;  %7836 = vmatprep.subr.mxu1 %v9947_v20 }
 0x2c0   :  { %7798 = vmatpush3.msra.mxu0 %v13774_v46  ;;  %7837 = vmatpush3.msra.mxu1 %v9963_v38 }
 0x2c1   :  { %7799 = vmatprep.subr.mxu0 %v9979_v53  ;;  %7838 = vmatprep.subr.mxu1 %v9981_v14 }
 0x2c2   :  { %7800 = vmatpush3.msra.mxu0 %v13775_v19  ;;  %7839 = vmatpush3.msra.mxu1 %v9994_v17 }
 0x2c3   :  { %7801 = vmatprep.subr.mxu0 %v10009_v16  ;;  %7840 = vmatprep.subr.mxu1 %v10011_v18 }
 0x2c4   :  { %7802 = vmatpush3.msra.mxu0 %v10021_v12  ;;  %7841 = vmatpush3.msra.mxu1 %v10023_v61 }
 0x2c5   :  { %7803 = vmatprep.subr.mxu0 %v10032_v32  ;;  %7842 = vmatprep.subr.mxu1 %v10034_v57 }
 0x2c6   :  { %7804 = vmatpush3.msra.mxu0 %v10045_v33  ;;  %7843 = vmatpush3.msra.mxu1 %v10047_v4 }
 0x2c7   :  { %7805 = vmatprep.subr.mxu0 %v10056_v31  ;;  %7844 = vmatprep.subr.mxu1 %v10058_v35  ;;  %v13776_v35 = vand.u32 4294901760, %v10124_v2 }
 0x2c8   :  { %7806 = vmatpush3.msra.mxu0 %v10066_v8  ;;  %7845 = vmatpush3.msra.mxu1 %v10068_v0  ;;  %v13778_v0 = vand.u32 4294901760, %v10167_v15 }
 0x2c9   :  { %7807 = vmatprep.subr.mxu0 %v10079_v1  ;;  %7846 = vmatprep.subr.mxu1 %v10081_v56  ;;  %v13777_v56 = vand.u32 4294901760, %v9680_v63  ;;  %v1510_v63 = vld [vmem:[%s13199_s4 + $0x1f8] sm:$0xff] }
 0x2ca   :  { %7808 = vmatpush3.msra.mxu0 %v10089_v7  ;;  %2007 = vmatprep.mubr.f32.mxu0 %v10124_v2  ;;  %v13780_v2 = vand.u32 4294901760, %v13759_v62  ;;  %v13789_v62 = vand.u32 4294901760, %v13768_v34  ;;  %v13794_v34 = vand.u32 4294901760, %v13772_v29  ;;  %v1490_v29 = vld [vmem:[%s13199_s4 + $0x158] sm:$0xff] }
 0x2cb   :  { %7809 = vmatprep.subr.mxu0 %v10097_v55  ;;  %7847 = vmatpush3.msra.mxu1 %v10099_v13 }
 0x2cc   :  { %7810 = vmatpush3.msra.mxu0 %v10107_v11  ;;  %2114 = vmatprep.mubr.f32.mxu1 %v13776_v35  ;;  %v13779_v11 = vand.u32 4294901760, %v13757_v49  ;;  %v13782_v35 = vand.u32 4294901760, %v13761_v30  ;;  %v13787_v49 = vand.u32 4294901760, %v13766_v42 }
 0x2cd   :  { %7811 = vmatprep.subr.mxu0 %v10115_v25  ;;  %7886 = vmatprep.subr.mxu1 %v9670_v40  ;;  %v13781_v40 = vand.u32 4294901760, %v13760_v37  ;;  %v13790_v37 = vand.u32 4294901760, %v13769_v39 }
 0x2ce   :  { %7812 = vmatpush3.msra.mxu0 %v10132_v22  ;;  %2118 = vmatmul.mubr.f32.vlgmr.msra.gmra.mxu1 %v13778_v0  ;;  %v10291_v0 = vand.u32 4294901760, %v1510_v63 }
 0x2cf   :  { %2010 = vmatmul.mubr.f32.vlgmr.msra.gmra.mxu0 %v10167_v15  ;;  %7851 = vmatprep.subr.mxu0 %v13777_v56  ;;  %v13786_v56 = vand.u32 4294901760, %v13765_v23 }
 0x2d0   :  { %7852 = vmatpush3.msra.mxu0 %v13779_v11  ;;  %7887 = vmatpush3.msra.mxu1 %v9672_v44  ;;  %v13783_v44 = vand.u32 4294901760, %v13762_v60  ;;  %v13784_v11 = vand.u32 4294901760, %v13763_v58  ;;  %v13791_v60 = vand.u32 4294901760, %v13770_v9  ;;  %v13795_v9 = vand.u32 4294901760, %v13773_v26  ;;  %v1505_v26 = vld [vmem:[%s13199_s4 + $0x1d0] sm:$0xff] }
 0x2d1   :  { %7853 = vmatprep.subr.mxu0 %v13780_v2  ;;  %7888 = vmatprep.subr.mxu1 %v9674_v48  ;;  %v1494_v48 = vld [vmem:[%s13199_s4 + $0x178] sm:$0xff] }
 0x2d2   :  { %7854 = vmatpush3.msra.mxu0 %v13781_v40  ;;  %7889 = vmatpush3.msra.mxu1 %v9688_v47  ;;  %v13785_v47 = vand.u32 4294901760, %v13764_v6  ;;  %v10299_v15 = vand.u32 4294901760, %v1494_v48  ;;  %v13792_v6 = vand.u32 4294901760, %v13771_v5  ;;  %v1506_v5 = vld [vmem:[%s13199_s4 + $0x1d8] sm:$0xff] }
 0x2d3   :  { %7855 = vmatprep.subr.mxu0 %v13782_v35  ;;  %7890 = vmatprep.subr.mxu1 %v13758_v51  ;;  %v1493_v51 = vld [vmem:[%s13199_s4 + $0x170] sm:$0xff]  ;;  %v13797_v35 = vand.u32 4294901760, %v13774_v46 }
 0x2d4   :  { %7856 = vmatpush3.msra.mxu0 %v13783_v44  ;;  %7891 = vmatpush3.msra.mxu1 %v9706_v59  ;;  %v1509_v59 = vld [vmem:[%s13199_s4 + $0x1f0] sm:$0xff]  ;;  %v10328_v30 = vsub.f32 %v1494_v48, %v10299_v15  ;;  %v10336_v58 = vand.u32 4294901760, %v1493_v51  ;;  %v13799_v48 = vand.u32 4294901760, %v9979_v53 }
 0x2d5   :  { %7857 = vmatprep.subr.mxu0 %v13784_v11  ;;  %7892 = vmatprep.subr.mxu1 %v9715_v50  ;;  %v13788_v50 = vand.u32 4294901760, %v13767_v28  ;;  %v13793_v28 = vld [vmem:[#allocation16_spill] sm:$0xff] }
 0x2d6   :  { %7858 = vmatpush3.msra.mxu0 %v13785_v47  ;;  %7893 = vmatpush3.msra.mxu1 %v9730_v43  ;;  %v10311_v43 = vsub.f32 %v1510_v63, %v10291_v0  ;;  %v13352_v2 = vand.u32 4294901760, %v10328_v30  ;;  %v13796_v63 = vld [vmem:[#allocation19_spill] sm:$0xff]  ;;  %v10374_v44 = vsub.f32 %v1493_v51, %v10336_v58  ;;  %v10392_v47 = vand.u32 4294901760, %v1506_v5 }
 0x2d7   :  { %7859 = vmatprep.subr.mxu0 %v13786_v56  ;;  %7894 = vmatprep.subr.mxu1 %v9747_v24  ;;  %v10319_v24 = vand.u32 4294901760, %v1509_v59  ;;  %v1489_v56 = vld [vmem:[%s13199_s4 + $0x150] sm:$0xff]  ;;  %v13803_v51 = vand.u32 4294901760, %v10009_v16 }
 0x2d8   :  { %7860 = vmatpush3.msra.mxu0 %v13787_v49  ;;  %7895 = vmatpush3.msra.mxu1 %v9756_v54  ;;  %v1508_v54 = vld [vmem:[%s13199_s4 + $0x1e8] sm:$0xff]  ;;  %v13356_v23 = vand.u32 4294901760, %v10311_v43  ;;  %13800 = vst [vmem:[#allocation8_spill] sm:$0xff] %v10392_v47  ;;  %v10404_v49 = vand.u32 4294901760, %v1490_v29  ;;  %v13350_v16 = vand.u32 4294901760, %v10374_v44 }
 0x2d9   :  { %7861 = vmatprep.subr.mxu0 %v13788_v50  ;;  %7896 = vmatprep.subr.mxu1 %v9766_v3  ;;  %v1492_v3 = vld [vmem:[%s13199_s4 + $0x168] sm:$0xff]  ;;  %v10345_v42 = vand.u32 4294901760, %v1508_v54  ;;  %v10354_v39 = vsub.f32 %v1509_v59, %v10319_v24 }
 0x2da   :  { %7862 = vmatpush3.msra.mxu0 %v13789_v62  ;;  %7897 = vmatpush3.msra.mxu1 %v9777_v27  ;;  %v1507_v27 = vld [vmem:[%s13199_s4 + $0x1e0] sm:$0xff]  ;;  %v10387_v11 = vsub.f32 %v10311_v43, %v13356_v23  ;;  %13802 = vst [vmem:[#allocation17_spill] sm:$0xff] %v10404_v49  ;;  %v1504_v50 = vld [vmem:[%s13199_s4 + $0x1c8] sm:$0xff]  ;;  %v10420_v62 = vand.u32 4294901760, %v1505_v26 }
 0x2db   :  { %7863 = vmatprep.subr.mxu0 %v13790_v37  ;;  %7898 = vmatprep.subr.mxu1 %v9788_v21  ;;  %v1491_v21 = vld [vmem:[%s13199_s4 + $0x160] sm:$0xff]  ;;  %v10365_v40 = vand.u32 4294901760, %v1507_v27  ;;  %v10390_v46 = vsub.f32 %v1508_v54, %v10345_v42  ;;  %v13351_v53 = vand.u32 4294901760, %v10354_v39  ;;  %v1488_v54 = vld [vmem:[%s13199_s4 + $0x148] sm:$0xff] }
 0x2dc   :  { %7864 = vmatpush3.msra.mxu0 %v13791_v60  ;;  %7899 = vmatpush3.msra.mxu1 %v9804_v36  ;;  %v10356_v36 = vand.u32 4294901760, %v1492_v3  ;;  %13804 = vst [vmem:[#allocation9_spill] sm:$0xff] %v10420_v62  ;;  %v1503_v60 = vld [vmem:[%s13199_s4 + $0x1c0] sm:$0xff]  ;;  %v13835_v23 = vld [vmem:[#allocation35_spill] sm:$0xff] }
 0x2dd   :  { %7865 = vmatprep.subr.mxu0 %v13792_v6  ;;  %7900 = vmatprep.subr.mxu1 %v13793_v28  ;;  %v10443_v6 = vsub.f32 %v1506_v5, %v10392_v47  ;;  %v1487_v28 = vld [vmem:[%s13199_s4 + $0x140] sm:$0xff]  ;;  %v10460_v5 = vsub.f32 %v1490_v29, %v10404_v49  ;;  %v10475_v29 = vand.u32 4294901760, %v1503_v60 }
 0x2de   :  { %7866 = vmatpush3.msra.mxu0 %v13794_v34  ;;  %7901 = vmatpush3.msra.mxu1 %v9840_v52  ;;  %v10376_v52 = vand.u32 4294901760, %v1491_v21  ;;  %v10402_v59 = vsub.f32 %v1492_v3, %v10356_v36  ;;  %v10432_v3 = vand.u32 4294901760, %v1489_v56 }
 0x2df   :  { %7867 = vmatprep.subr.mxu0 %v13795_v9  ;;  %7902 = vmatprep.subr.mxu1 %v13796_v63  ;;  %13809 = vst [vmem:[#allocation22_spill] sm:$0xff] %v10443_v6  ;;  %13811 = vst [vmem:[#allocation11_spill] sm:$0xff] %v10460_v5  ;;  %v10462_v9 = vand.u32 4294901760, %v1488_v54  ;;  %v1502_v63 = vld [vmem:[%s13199_s4 + $0x1b8] sm:$0xff] }
 0x2e0   :  { %7868 = vmatpush3.msra.mxu0 %v13797_v35  ;;  %13798 = vst [vmem:[#allocation7_spill] sm:$0xff] %v10376_v52  ;;  %7903 = vmatpush3.msra.mxu1 %v9900_v45  ;;  %v13801_v45 = vand.u32 4294901760, %v13775_v19  ;;  %v10415_v19 = vsub.f32 %v10328_v30, %v13352_v2  ;;  %v10430_v37 = vsub.f32 %v1491_v21, %v10376_v52  ;;  %13807 = vst [vmem:[#allocation10_spill] sm:$0xff] %v10432_v3 }
 0x2e1   :  { %7869 = vmatprep.subr.mxu0 %v13799_v48  ;;  %7904 = vmatprep.subr.mxu1 %v9913_v41  ;;  %v10418_v41 = vsub.f32 %v1507_v27, %v10365_v40  ;;  %v13808_v27 = vand.u32 4294901760, %v10032_v32  ;;  %v10445_v21 = vand.u32 4294901760, %v1504_v50  ;;  %v10456_v32 = vsub.f32 %v10354_v39, %v13351_v53  ;;  %13812 = vst [vmem:[#allocation12_spill] sm:$0xff] %v10462_v9  ;;  %v13828_v53 = vld [vmem:[#allocation32_spill] sm:$0xff] }
 0x2e2   :  { %7870 = vmatpush3.msra.mxu0 %v13801_v45  ;;  %7905 = vmatpush3.msra.mxu1 %v9928_v10  ;;  %v13805_v10 = vand.u32 4294901760, %v10021_v12  ;;  %13806 = vst [vmem:[#allocation20_spill] sm:$0xff] %v10430_v37  ;;  %v13348_v12 = vand.u32 4294901760, %v10390_v46  ;;  %v13347_v34 = vand.u32 4294901760, %v10402_v59  ;;  %v10473_v48 = vsub.f32 %v1505_v26, %v10420_v62  ;;  %13815 = vst [vmem:[#allocation14_spill] sm:$0xff] %v10475_v29  ;;  %v1486_v26 = vld [vmem:[%s13199_s4 + $0x138] sm:$0xff] }
 0x2e3   :  { %7871 = vmatprep.subr.mxu0 %v13803_v51  ;;  %7906 = vmatprep.subr.mxu1 %v9947_v20  ;;  %v2624_v20 = vand.u32 4294901760, %v10387_v11  ;;  %v13349_v35 = vand.u32 4294901760, %v10418_v41  ;;  %v13816_v45 = vand.u32 4294901760, %v10066_v8  ;;  %v10487_v51 = vsub.f32 %v1489_v56, %v10432_v3 }
 0x2e4   :  { %7872 = vmatpush3.msra.mxu0 %v13805_v10  ;;  %7907 = vmatpush3.msra.mxu1 %v9963_v38  ;;  %v13810_v38 = vand.u32 4294901760, %v10045_v33  ;;  %13814 = vst [vmem:[#allocation13_spill] sm:$0xff] %v10473_v48  ;;  %v10489_v10 = vand.u32 4294901760, %v1487_v28  ;;  %v10500_v8 = vsub.f32 %v10390_v46, %v13348_v12  ;;  %v10504_v56 = vsub.f32 %v1504_v50, %v10445_v21 }
 0x2e5   :  { %7873 = vmatprep.subr.mxu0 %v13808_v27  ;;  %7908 = vmatprep.subr.mxu1 %v9981_v14  ;;  %v13813_v14 = vand.u32 4294901760, %v10056_v31  ;;  %v13354_v31 = vand.u32 4294901760, %v10430_v37  ;;  %13817 = vst [vmem:[#allocation6_spill] sm:$0xff] %v10487_v51  ;;  %v13353_v27 = vand.u32 4294901760, %v10443_v6  ;;  %v13822_v50 = vand.u32 4294901760, %v10097_v55  ;;  %v13825_v55 = vld [vmem:[#allocation34_spill] sm:$0xff] }
 0x2e6   :  { %7874 = vmatpush3.msra.mxu0 %v13810_v38  ;;  %7909 = vmatpush3.msra.mxu1 %v9994_v17  ;;  %v10483_v17 = vsub.f32 %v10374_v44, %v13350_v16  ;;  %13819 = vst [vmem:[#allocation15_spill] sm:$0xff] %v10504_v56  ;;  %v10506_v38 = vand.u32 4294901760, %v1502_v63  ;;  %v10549_v16 = vsub.f32 %v1487_v28, %v10489_v10  ;;  %v13829_v2 = vand.u32 4294901760, %v10115_v25  ;;  %v1485_v28 = vld [vmem:[%s13199_s4 + $0x130] sm:$0xff] }
 0x2e7   :  { %7875 = vmatprep.subr.mxu0 %v13813_v14  ;;  %7910 = vmatprep.subr.mxu1 %v10011_v18  ;;  %v13818_v18 = vand.u32 4294901760, %v10079_v1  ;;  %v13820_v14 = vand.u32 4294901760, %v10089_v7  ;;  %v10527_v7 = vsub.f32 %v10418_v41, %v13349_v35  ;;  %v10545_v35 = vsub.f32 %v10430_v37, %v13354_v31  ;;  %v13833_v31 = vld [vmem:[#allocation23_spill] sm:$0xff]  ;;  %v1479_v37 = vld [vmem:[%s13199_s4 + $0x100] sm:$0xff] }
 0x2e8   :  { %7876 = vmatpush3.msra.mxu0 %v13816_v45  ;;  %7911 = vmatpush3.msra.mxu1 %v10023_v61  ;;  %v10515_v61 = vsub.f32 %v10402_v59, %v13347_v34  ;;  %v13355_v45 = vand.u32 4294901760, %v10460_v5  ;;  %v10533_v34 = vand.u32 4294901760, %v1486_v26  ;;  %v2519_v12 = vand.u32 4294901760, %v10483_v17  ;;  %13827 = vst [vmem:[#allocation21_spill] sm:$0xff] %v10549_v16 }
 0x2e9   :  { %7877 = vmatprep.subr.mxu0 %v13818_v18  ;;  %7912 = vmatprep.subr.mxu1 %v10034_v57  ;;  %v10519_v18 = vsub.f32 %v1488_v54, %v10462_v9  ;;  %v13357_v57 = vand.u32 4294901760, %v10473_v48  ;;  %v1501_v54 = vld [vmem:[%s13199_s4 + $0x1b0] sm:$0xff]  ;;  %v10558_v17 = vsub.f32 %v10443_v6, %v13353_v27  ;;  %v13832_v25 = vand.u32 4294901760, %v10132_v22 }
 0x2ea   :  { %7878 = vmatpush3.msra.mxu0 %v13820_v14  ;;  %7913 = vmatpush3.msra.mxu1 %v10047_v4  ;;  %v10531_v14 = vsub.f32 %v1503_v60, %v10475_v29  ;;  %v13824_v4 = vld [vmem:[#allocation27_spill] sm:$0xff]  ;;  %v13358_v60 = vand.u32 4294901760, %v10487_v51  ;;  %v10603_v1 = vand.u32 4294901760, %v1485_v28 }
 0x2eb   :  { %13821 = vst [vmem:[#allocation31_spill] sm:$0xff] %v10519_v18  ;;  %7879 = vmatprep.subr.mxu0 %v13822_v50  ;;  %7914 = vmatprep.subr.mxu1 %v13824_v4  ;;  %v13826_v50 = vand.u32 4294901760, %v13825_v55  ;;  %v2638_v4 = vand.u32 4294901760, %v10500_v8  ;;  %v13359_v55 = vand.u32 4294901760, %v10504_v56  ;;  %v10574_v8 = vsub.f32 %v10460_v5, %v13355_v45  ;;  %v1500_v45 = vld [vmem:[%s13199_s4 + $0x1a8] sm:$0xff] }
 0x2ec   :  { %13823 = vst [vmem:[#allocation18_spill] sm:$0xff] %v10531_v14  ;;  %7915 = vmatpush3.msra.mxu1 %v13828_v53  ;;  %v13831_v53 = vld [vmem:[#allocation33_spill] sm:$0xff]  ;;  %v13360_v27 = vand.u32 4294901760, %v10519_v18  ;;  %2284 = vmatprep.mubr.f32.mxu0 %v13833_v31  ;;  %v10585_v22 = vsub.f32 %v10473_v48, %v13357_v57 }
 0x2ed   :  { %7880 = vmatpush3.msra.mxu0 %v13826_v50  ;;  %v10562_v50 = vsub.f32 %v1502_v63, %v10506_v38  ;;  %7916 = vmatprep.subr.mxu1 %v13831_v53  ;;  %v10577_v63 = vand.u32 4294901760, %v1501_v54  ;;  %v2645_v53 = vand.u32 4294901760, %v10527_v7  ;;  %v10600_v7 = vsub.f32 %v10487_v51, %v13358_v60  ;;  %v1499_v57 = vld [vmem:[%s13199_s4 + $0x1a0] sm:$0xff]  ;;  %v1482_v51 = vld [vmem:[%s13199_s4 + $0x118] sm:$0xff] }
 0x2ee   :  { %7881 = vmatprep.subr.mxu0 %v13829_v2  ;;  %v2526_v2 = vand.u32 4294901760, %v10515_v61  ;;  %7917 = vmatpush3.msra.mxu1 %v10099_v13  ;;  %v2533_v13 = vand.u32 4294901760, %v10545_v35  ;;  %v2652_v35 = vand.u32 4294901760, %v10558_v17  ;;  %v13836_v61 = vld [vmem:[#allocation25_spill] sm:$0xff]  ;;  %v2540_v11 = vand.u32 4294901760, %v10574_v8 }
 0x2ef   :  { %13830 = vst [vmem:[#allocation30_spill] sm:$0xff] %v10562_v50  ;;  %7882 = vmatpush3.msra.mxu0 %v13832_v25  ;;  %v10589_v25 = vsub.f32 %v1486_v26, %v10533_v34  ;;  %2388 = vmatprep.mubr.f32.mxu1 %v13833_v31  ;;  %v1484_v26 = vld [vmem:[%s13199_s4 + $0x128] sm:$0xff]  ;;  %v10615_v31 = vsub.f32 %v10504_v56, %v13359_v55  ;;  %v10634_v55 = vand.u32 4294901760, %v1500_v45  ;;  %v2659_v8 = vand.u32 4294901760, %v10585_v22  ;;  %v1498_v56 = vld [vmem:[%s13199_s4 + $0x198] sm:$0xff] }
 0x2f0   :  { %2286 = vmatmul.mubr.f32.vlgmr.msra.gmra.mxu0 %v13835_v23  ;;  %7921 = vmatprep.subr.mxu0 %v10291_v0  ;;  %v1512_v33 = vcombine.high %v13836_v61, %v13836_v61  ;;  %v10632_v17 = vsub.f32 %v1501_v54, %v10577_v63  ;;  %v1483_v61 = vld [vmem:[%s13199_s4 + $0x120] sm:$0xff]  ;;  %v13839_v60 = vand.u32 4294901760, %v10531_v14  ;;  %v2547_v22 = vand.u32 4294901760, %v10600_v7 }
 0x2f1   :  { %13834 = vst [vmem:[#allocation24_spill] sm:$0xff] %v10589_v25  ;;  %7956 = vmatprep.subr.mxu1 %v2624_v20  ;;  %2390 = vmatmul.mubr.f32.vlgmr.msra.gmra.mxu1 %v13835_v23  ;;  %v10629_v20 = vsub.f32 %v10519_v18, %v13360_v27  ;;  %v13838_v23 = vand.u32 4294901760, %v10415_v19  ;;  %v10649_v18 = vand.u32 4294901760, %v1484_v26  ;;  %v13840_v19 = vand.u32 4294901760, %v10456_v32 }
 0x2f2   :  { %7922 = vmatpush3.msra.mxu0 %v10299_v15  ;;  %13837 = vst [vmem:[#allocation26_spill] sm:$0xff] %v10632_v17  ;;  %v10646_v27 = vsub.f32 %v10531_v14, %v13839_v60  ;;  %v10664_v54 = vsub.f32 %v1485_v28, %v10603_v1  ;;  %v10666_v14 = vand.u32 4294901760, %v1499_v57  ;;  %v2666_v32 = vand.u32 4294901760, %v10615_v31  ;;  %v1497_v28 = vld [vmem:[%s13199_s4 + $0x190] sm:$0xff] }
 0x2f3   :  { %7957 = vmatpush3.msra.mxu1 %v13838_v23  ;;  %7923 = vmatprep.subr.mxu0 %v10319_v24  ;;  %v13841_v23 = vand.u32 4294901760, %v10549_v16  ;;  %v13843_v7 = vand.u32 4294901760, %v10562_v50  ;;  %v10690_v5 = vsub.f32 %v1500_v45, %v10634_v55  ;;  %v10705_v31 = vsub.f32 %v1484_v26, %v10649_v18  ;;  %v1480_v26 = vld [vmem:[%s13199_s4 + $0x108] sm:$0xff] }
 0x2f4   :  { %7958 = vmatprep.subr.mxu1 %v13840_v19  ;;  %7924 = vmatpush3.msra.mxu0 %v10336_v58  ;;  %13842 = vst [vmem:[#allocation16_spill] sm:$0xff] %v10664_v54  ;;  %v10707_v45 = vand.u32 4294901760, %v1482_v51  ;;  %v10716_v6 = vsub.f32 %v1499_v57, %v10666_v14  ;;  %v1495_v57 = vld [vmem:[%s13199_s4 + $0x180] sm:$0xff] }
 0x2f5   :  { %v10661_v60 = vsub.f32 %v10549_v16, %v13841_v23  ;;  %7959 = vmatpush3.msra.mxu1 %v2519_v12  ;;  %7925 = vmatprep.subr.mxu0 %v10345_v42  ;;  %v10676_v19 = vsub.f32 %v10562_v50, %v13843_v7  ;;  %v10678_v23 = vand.u32 4294901760, %v1483_v61  ;;  %v13844_v16 = vld [vmem:[#allocation29_spill] sm:$0xff]  ;;  %v2554_v12 = vand.u32 4294901760, %v10629_v20  ;;  %13845 = vst [vmem:[#allocation19_spill] sm:$0xff] %v10690_v5  ;;  %v1481_v50 = vld [vmem:[%s13199_s4 + $0x110] sm:$0xff] }
 0x2f6   :  { %v10684_v48 = vrot.slane %v1512_v33, %v13844_v16  ;;  %7960 = vmatprep.subr.mxu1 %v2638_v4  ;;  %7926 = vmatpush3.msra.mxu0 %v10356_v36  ;;  %v10692_v7 = vand.u32 4294901760, %v1498_v56  ;;  %v2673_v33 = vand.u32 4294901760, %v10646_v27  ;;  %v13846_v4 = vand.u32 4294901760, %v10589_v25  ;;  %v1496_v16 = vld [vmem:[%s13199_s4 + $0x188] sm:$0xff] }
 0x2f7   :  { %7961 = vmatpush3.msra.mxu1 %v2526_v2  ;;  %7927 = vmatprep.subr.mxu0 %v10365_v40  ;;  %v2561_v2 = vand.u32 4294901760, %v10661_v60  ;;  %v10728_v60 = vand.u32 4294901760, %v1481_v50 }
 0x2f8   :  { %v10702_v20 = vsub.f32 %v10589_v25, %v13846_v4  ;;  %7962 = vmatprep.subr.mxu1 %v2645_v53  ;;  %7928 = vmatpush3.msra.mxu0 %v10376_v52  ;;  %v10718_v4 = vand.u32 4294901760, %v1497_v28  ;;  %v2680_v53 = vand.u32 4294901760, %v10676_v19  ;;  %v10726_v25 = vsub.f32 %v1483_v61, %v10678_v23 }
 0x2f9   :  { %7963 = vmatpush3.msra.mxu1 %v2533_v13  ;;  %7929 = vmatprep.subr.mxu0 %v10392_v47  ;;  %v1528_v27 = vcombine.high %v10684_v48, %v10684_v48  ;;  %v13847_v13 = vand.u32 4294901760, %v10632_v17  ;;  %v10741_v61 = vsub.f32 %v1498_v56, %v10692_v7  ;;  %v10743_v52 = vand.u32 4294901760, %v1496_v16 }
 0x2fa   :  { %7964 = vmatprep.subr.mxu1 %v2652_v35  ;;  %7930 = vmatpush3.msra.mxu0 %v10404_v49  ;;  %v2568_v35 = vand.u32 4294901760, %v10702_v20  ;;  %v10754_v19 = vand.u32 4294901760, %v1480_v26  ;;  %v13849_v56 = vand.u32 4294901760, %v10664_v54  ;;  %v10764_v20 = vand.u32 4294901760, %v1495_v57 }
 0x2fb   :  { %v2686_v47 = vsub.f32 %v10632_v17, %v13847_v13  ;;  %13848 = vst [vmem:[#allocation27_spill] sm:$0xff] %v10743_v52  ;;  %7965 = vmatpush3.msra.mxu1 %v2540_v11  ;;  %7931 = vmatprep.subr.mxu0 %v10420_v62  ;;  %v10752_v13 = vsub.f32 %v1482_v51, %v10707_v45  ;;  %v10771_v49 = vand.u32 4294901760, %v1479_v37  ;;  %v10784_v51 = vand.u32 4294901760, %v10684_v48 }
 0x2fc   :  { %7966 = vmatprep.subr.mxu1 %v2659_v8  ;;  %7932 = vmatpush3.msra.mxu0 %v10432_v3  ;;  %v2574_v17 = vsub.f32 %v10664_v54, %v13849_v56  ;;  %v10762_v62 = vsub.f32 %v1497_v28, %v10718_v4  ;;  %13850 = vst [vmem:[#allocation34_spill] sm:$0xff] %v10764_v20  ;;  %v10773_v3 = vand.u32 4294901760, %v1528_v27  ;;  %v13853_v28 = vand.u32 4294901760, %v10690_v5 }
 0x2fd   :  { %7967 = vmatpush3.msra.mxu1 %v2547_v22  ;;  %7933 = vmatprep.subr.mxu0 %v10445_v21  ;;  %v10769_v8 = vsub.f32 %v1481_v50, %v10728_v60  ;;  %13851 = vst [vmem:[#allocation32_spill] sm:$0xff] %v10771_v49  ;;  %v10781_v11 = vsub.f32 %v1496_v16, %v10743_v52  ;;  %13855 = vst [vmem:[#allocation35_spill] sm:$0xff] %v10784_v51  ;;  %v2687_v50 = vand.u32 4294901760, %v2686_v47 }
 0x2fe   :  { %13852 = vst [vmem:[#allocation33_spill] sm:$0xff] %v10773_v3  ;;  %7968 = vmatprep.subr.mxu1 %v2666_v32  ;;  %7934 = vmatpush3.msra.mxu0 %v10462_v9  ;;  %v2693_v56 = vsub.f32 %v10690_v5, %v13853_v28  ;;  %v13856_v32 = vand.u32 4294901760, %v10705_v31  ;;  %v10792_v28 = vsub.f32 %v1480_v26, %v10754_v19  ;;  %v2575_v16 = vand.u32 4294901760, %v2574_v17 }
 0x2ff   :  { %13854 = vst [vmem:[#allocation23_spill] sm:$0xff] %v10781_v11  ;;  %7969 = vmatpush3.msra.mxu1 %v2554_v12  ;;  %7935 = vmatprep.subr.mxu0 %v10475_v29  ;;  %v13857_v22 = vand.u32 4294901760, %v10716_v6  ;;  %v10800_v47 = vsub.f32 %v1495_v57, %v10764_v20  ;;  %v10808_v17 = vsub.f32 %v1479_v37, %v10771_v49  ;;  %v13862_v5 = vand.u32 4294901760, %v10762_v62 }
 0x300   :  { %v2581_v54 = vsub.f32 %v10705_v31, %v13856_v32  ;;  %7970 = vmatprep.subr.mxu1 %v2673_v33  ;;  %7936 = vmatpush3.msra.mxu0 %v10489_v10  ;;  %v13859_v32 = vand.u32 4294901760, %v10726_v25  ;;  %v10811_v9 = vsub.f32 %v1528_v27, %v10773_v3  ;;  %v2694_v57 = vand.u32 4294901760, %v2693_v56 }
 0x301   :  { %v2700_v12 = vsub.f32 %v10716_v6, %v13857_v22  ;;  %13858 = vst [vmem:[#allocation25_spill] sm:$0xff] %v10800_v47  ;;  %7971 = vmatpush3.msra.mxu1 %v2561_v2  ;;  %7937 = vmatprep.subr.mxu0 %v10506_v38  ;;  %v13860_v2 = vand.u32 4294901760, %v10741_v61  ;;  %v13861_v27 = vand.u32 4294901760, %v10752_v13  ;;  %v2714_v33 = vsub.f32 %v10762_v62, %v13862_v5 }
 0x302   :  { %v2588_v26 = vsub.f32 %v10726_v25, %v13859_v32  ;;  %7972 = vmatprep.subr.mxu1 %v2680_v53  ;;  %7938 = vmatpush3.msra.mxu0 %v10533_v34  ;;  %v10820_v32 = vsub.f32 %v10684_v48, %v10784_v51  ;;  %v2582_v37 = vand.u32 4294901760, %v2581_v54  ;;  %v13864_v5 = vand.u32 4294901760, %v10781_v11 }
 0x303   :  { %v2707_v22 = vsub.f32 %v10741_v61, %v13860_v2  ;;  %7973 = vmatpush3.msra.mxu1 %v2568_v35  ;;  %7939 = vmatprep.subr.mxu0 %v10577_v63  ;;  %v2595_v53 = vsub.f32 %v10752_v13, %v13861_v27  ;;  %v2701_v2 = vand.u32 4294901760, %v2700_v12  ;;  %v13863_v35 = vand.u32 4294901760, %v10769_v8 }
 0x304   :  { %7974 = vmatprep.subr.mxu1 %v2687_v50  ;;  %7940 = vmatpush3.msra.mxu0 %v10603_v1  ;;  %v2589_v54 = vand.u32 4294901760, %v2588_v26  ;;  %v2721_v48 = vsub.f32 %v10781_v11, %v13864_v5 }
 0x305   :  { %7975 = vmatpush3.msra.mxu1 %v2575_v16  ;;  %7941 = vmatprep.subr.mxu0 %v10634_v55  ;;  %v2602_v27 = vsub.f32 %v10769_v8, %v13863_v35  ;;  %v2708_v12 = vand.u32 4294901760, %v2707_v22  ;;  %v2596_v26 = vand.u32 4294901760, %v2595_v53  ;;  %v13865_v35 = vand.u32 4294901760, %v10792_v28 }
 0x306   :  { %7976 = vmatprep.subr.mxu1 %v2694_v57  ;;  %7942 = vmatpush3.msra.mxu0 %v10649_v18  ;;  %v2715_v57 = vand.u32 4294901760, %v2714_v33  ;;  %v13866_v22 = vand.u32 4294901760, %v10800_v47  ;;  %v13868_v16 = vand.u32 4294901760, %v10808_v17  ;;  %v2722_v33 = vand.u32 4294901760, %v2721_v48 }
 0x307   :  { %7977 = vmatpush3.msra.mxu1 %v2582_v37  ;;  %7943 = vmatprep.subr.mxu0 %v10666_v14  ;;  %v2609_v56 = vsub.f32 %v10792_v28, %v13865_v35  ;;  %v2603_v5 = vand.u32 4294901760, %v2602_v27  ;;  %v13867_v37 = vand.u32 4294901760, %v10811_v9 }
 0x308   :  { %7978 = vmatprep.subr.mxu1 %v2701_v2  ;;  %7944 = vmatpush3.msra.mxu0 %v10678_v23  ;;  %v2728_v50 = vsub.f32 %v10800_v47, %v13866_v22  ;;  %v2616_v35 = vsub.f32 %v10808_v17, %v13868_v16  ;;  %v13869_v2 = vand.u32 4294901760, %v10820_v32 }
 0x309   :  { %7979 = vmatpush3.msra.mxu1 %v2589_v54  ;;  %7945 = vmatprep.subr.mxu0 %v10692_v7  ;;  %v2494_v53 = vsub.f32 %v10811_v9, %v13867_v37  ;;  %v2610_v54 = vand.u32 4294901760, %v2609_v56  ;;  %v13870_v56 = vld [vmem:[#allocation20_spill] sm:$0xff]  ;;  %v13875_v37 = vld [vmem:[#allocation17_spill] sm:$0xff] }
 0x30a   :  { %7980 = vmatprep.subr.mxu1 %v2708_v12  ;;  %7946 = vmatpush3.msra.mxu0 %v10707_v45  ;;  %v2500_v22 = vsub.f32 %v10820_v32, %v13869_v2  ;;  %v2729_v27 = vand.u32 4294901760, %v2728_v50  ;;  %v2617_v12 = vand.u32 4294901760, %v2616_v35  ;;  %v13871_v50 = vld [vmem:[#allocation7_spill] sm:$0xff]  ;;  %v13877_v35 = vld [vmem:[#allocation9_spill] sm:$0xff]  ;;  %v13879_v2 = vld [vmem:[#allocation10_spill] sm:$0xff] }
 0x30b   :  { %7981 = vmatpush3.msra.mxu1 %v2596_v26  ;;  %7947 = vmatprep.subr.mxu0 %v10718_v4  ;;  %v2495_v16 = vand.u32 4294901760, %v2494_v53  ;;  %v13872_v26 = vld [vmem:[#allocation22_spill] sm:$0xff]  ;;  %v13876_v53 = vld [vmem:[#allocation13_spill] sm:$0xff] }
 0x30c   :  { %7982 = vmatprep.subr.mxu1 %v2715_v57  ;;  %7948 = vmatpush3.msra.mxu0 %v10728_v60  ;;  %v2501_v48 = vand.u32 4294901760, %v2500_v22  ;;  %v13873_v57 = vld [vmem:[#allocation8_spill] sm:$0xff]  ;;  %v13880_v22 = vld [vmem:[#allocation15_spill] sm:$0xff] }
 0x30d   :  { %7983 = vmatpush3.msra.mxu1 %v2603_v5  ;;  %7949 = vmatprep.subr.mxu0 %v10743_v52  ;;  %v13874_v5 = vld [vmem:[#allocation11_spill] sm:$0xff] }
 0x30e   :  { %7984 = vmatprep.subr.mxu1 %v2722_v33  ;;  %7950 = vmatpush3.msra.mxu0 %v10754_v19  ;;  %v13878_v33 = vld [vmem:[#allocation6_spill] sm:$0xff] }
 0x30f   :  { %7985 = vmatpush3.msra.mxu1 %v2610_v54  ;;  %7951 = vmatprep.subr.mxu0 %v10764_v20  ;;  %v13881_v54 = vld [vmem:[#allocation31_spill] sm:$0xff] }
 0x310   :  { %7986 = vmatprep.subr.mxu1 %v2729_v27  ;;  %7952 = vmatpush3.msra.mxu0 %v10771_v49  ;;  %v13882_v27 = vld [vmem:[#allocation12_spill] sm:$0xff] }
 0x311   :  { %2496 = vmatprep.mubr.f32.mxu0 %v2495_v16  ;;  %7987 = vmatpush3.msra.mxu1 %v2617_v12  ;;  %v13883_v16 = vld [vmem:[#allocation18_spill] sm:$0xff]  ;;  %v13884_v12 = vld [vmem:[#allocation21_spill] sm:$0xff] }
 0x312   :  { %2502 = vmatmul.mubr.f32.vlgmr.msra.gmra.mxu0 %v2501_v48  ;;  %2732 = vmatprep.mubr.f32.mxu1 %v10773_v3  ;;  %v13885_v48 = vld [vmem:[#allocation30_spill] sm:$0xff] }
 0x313   :  { %7991 = vmatprep.subr.mxu0 %v10311_v43  ;;  %8026 = vmatprep.subr.mxu1 %v10291_v0  ;;  %v13887_v3 = vld [vmem:[#allocation26_spill] sm:$0xff] }
 0x314   :  { %2734 = vmatmul.mubr.f32.vlgmr.msra.gmra.mxu1 %v10784_v51  ;;  %7992 = vmatpush3.msra.mxu0 %v10328_v30  ;;  %v13886_v51 = vld [vmem:[#allocation24_spill] sm:$0xff] }
 0x315   :  { %8027 = vmatpush3.msra.mxu1 %v10299_v15  ;;  %7993 = vmatprep.subr.mxu0 %v10354_v39 }
 0x316   :  { %8028 = vmatprep.subr.mxu1 %v10319_v24  ;;  %7994 = vmatpush3.msra.mxu0 %v10374_v44 }
 0x317   :  { %8029 = vmatpush3.msra.mxu1 %v10336_v58  ;;  %7995 = vmatprep.subr.mxu0 %v10390_v46 }
 0x318   :  { %8030 = vmatprep.subr.mxu1 %v10345_v42  ;;  %7996 = vmatpush3.msra.mxu0 %v10402_v59 }
 0x319   :  { %8031 = vmatpush3.msra.mxu1 %v10356_v36  ;;  %7997 = vmatprep.subr.mxu0 %v10418_v41 }
 0x31a   :  { %8032 = vmatprep.subr.mxu1 %v10365_v40  ;;  %7998 = vmatpush3.msra.mxu0 %v13870_v56 }
 0x31b   :  { %8033 = vmatpush3.msra.mxu1 %v13871_v50  ;;  %7999 = vmatprep.subr.mxu0 %v13872_v26 }
 0x31c   :  { %8034 = vmatprep.subr.mxu1 %v13873_v57  ;;  %8000 = vmatpush3.msra.mxu0 %v13874_v5 }
 0x31d   :  { %8035 = vmatpush3.msra.mxu1 %v13875_v37  ;;  %8001 = vmatprep.subr.mxu0 %v13876_v53 }
 0x31e   :  { %8036 = vmatprep.subr.mxu1 %v13877_v35  ;;  %8002 = vmatpush3.msra.mxu0 %v13878_v33 }
 0x31f   :  { %8037 = vmatpush3.msra.mxu1 %v13879_v2  ;;  %8003 = vmatprep.subr.mxu0 %v13880_v22 }
 0x320   :  { %8038 = vmatprep.subr.mxu1 %v10445_v21  ;;  %8004 = vmatpush3.msra.mxu0 %v13881_v54 }
 0x321   :  { %8039 = vmatpush3.msra.mxu1 %v13882_v27  ;;  %8005 = vmatprep.subr.mxu0 %v13883_v16  ;;  %v13888_v27 = vld [vmem:[#allocation16_spill] sm:$0xff] }
 0x322   :  { %8040 = vmatprep.subr.mxu1 %v10475_v29  ;;  %8006 = vmatpush3.msra.mxu0 %v13884_v12  ;;  %v13889_v29 = vld [vmem:[#allocation19_spill] sm:$0xff] }
 0x323   :  { %8041 = vmatpush3.msra.mxu1 %v10489_v10  ;;  %8007 = vmatprep.subr.mxu0 %v13885_v48 }
 0x324   :  { %8042 = vmatprep.subr.mxu1 %v10506_v38  ;;  %8008 = vmatpush3.msra.mxu0 %v13886_v51 }
 0x325   :  { %8043 = vmatpush3.msra.mxu1 %v10533_v34  ;;  %8009 = vmatprep.subr.mxu0 %v13887_v3 }
 0x326   :  { %8044 = vmatprep.subr.mxu1 %v10577_v63  ;;  %8010 = vmatpush3.msra.mxu0 %v13888_v27 }
 0x327   :  { %8045 = vmatpush3.msra.mxu1 %v10603_v1  ;;  %8011 = vmatprep.subr.mxu0 %v13889_v29 }
 0x328   :  { %8046 = vmatprep.subr.mxu1 %v10634_v55  ;;  %8012 = vmatpush3.msra.mxu0 %v10705_v31 }
 0x329   :  { %8047 = vmatpush3.msra.mxu1 %v10649_v18  ;;  %8013 = vmatprep.subr.mxu0 %v10716_v6 }
 0x32a   :  { %8048 = vmatprep.subr.mxu1 %v10666_v14  ;;  %8014 = vmatpush3.msra.mxu0 %v10726_v25 }
 0x32b   :  { %8049 = vmatpush3.msra.mxu1 %v10678_v23  ;;  %8015 = vmatprep.subr.mxu0 %v10741_v61 }
 0x32c   :  { %8050 = vmatprep.subr.mxu1 %v10692_v7  ;;  %8016 = vmatpush3.msra.mxu0 %v10752_v13 }
 0x32d   :  { %8051 = vmatpush3.msra.mxu1 %v10707_v45  ;;  %8017 = vmatprep.subr.mxu0 %v10762_v62 }
 0x32e   :  { %8052 = vmatprep.subr.mxu1 %v10718_v4  ;;  %8018 = vmatpush3.msra.mxu0 %v10769_v8 }
 0x32f   :  { %8053 = vmatpush3.msra.mxu1 %v10728_v60  ;;  %8019 = vmatprep.subr.mxu0 %v10781_v11  ;;  %v13890_v11 = vand.u32 4294901760, %v10811_v9 }
 0x330   :  { %8054 = vmatprep.subr.mxu1 %v10743_v52  ;;  %8020 = vmatpush3.msra.mxu0 %v10792_v28  ;;  %v13891_v52 = vand.u32 4294901760, %v10311_v43  ;;  %v13897_v43 = vand.u32 4294901760, %v10402_v59 }
 0x331   :  { %8055 = vmatpush3.msra.mxu1 %v10754_v19  ;;  %8021 = vmatprep.subr.mxu0 %v10800_v47  ;;  %v13892_v47 = vand.u32 4294901760, %v10820_v32 }
 0x332   :  { %8056 = vmatprep.subr.mxu1 %v10764_v20  ;;  %8022 = vmatpush3.msra.mxu0 %v10808_v17  ;;  %v13893_v20 = vand.u32 4294901760, %v10328_v30  ;;  %v13900_v30 = vand.u32 4294901760, %v13872_v26 }
 0x333   :  { %2869 = vmatprep.mubr.f32.mxu0 %v10811_v9  ;;  %8057 = vmatpush3.msra.mxu1 %v10771_v49  ;;  %v13894_v49 = vand.u32 4294901760, %v10354_v39  ;;  %v13895_v9 = vand.u32 4294901760, %v10374_v44  ;;  %v13905_v44 = vand.u32 4294901760, %v13881_v54 }
 0x334   :  { %2872 = vmatmul.mubr.f32.vlgmr.msra.gmra.mxu0 %v10820_v32  ;;  %2976 = vmatprep.mubr.f32.mxu1 %v13890_v11  ;;  %v13910_v11 = vand.u32 4294901760, %v13885_v48  ;;  %v13935_v48 = vmov 0.0  }
 0x335   :  { %8061 = vmatprep.subr.mxu0 %v13891_v52  ;;  %8096 = vmatprep.subr.mxu1 %v10291_v0  ;;  %v13896_v0 = vand.u32 4294901760, %v10390_v46  ;;  %v13906_v52 = vld [vmem:[#allocation12_spill] sm:$0xff]  ;;  %v13907_v46 = vand.u32 4294901760, %v13883_v16  ;;  %v46_v16 = vld [vmem:[%s13197_s2] sm:$0x3] }
 0x336   :  { %2980 = vmatmul.mubr.f32.vlgmr.msra.gmra.mxu1 %v13892_v47  ;;  %8062 = vmatpush3.msra.mxu0 %v13893_v20  ;;  %v13912_v20 = vand.u32 4294901760, %v13887_v3 }
 0x337   :  { %8097 = vmatpush3.msra.mxu1 %v10299_v15  ;;  %8063 = vmatprep.subr.mxu0 %v13894_v49  ;;  %v13898_v15 = vand.u32 4294901760, %v10418_v41  ;;  %v13908_v49 = vld [vmem:[#allocation14_spill] sm:$0xff]  ;;  %v13909_v41 = vand.u32 4294901760, %v13884_v12 }
 0x338   :  { %8098 = vmatprep.subr.mxu1 %v10319_v24  ;;  %8064 = vmatpush3.msra.mxu0 %v13895_v9  ;;  %v13899_v24 = vand.u32 4294901760, %v13870_v56  ;;  %v13913_v56 = vand.u32 4294901760, %v13888_v27  ;;  %v13932_v27 = vld [vmem:[#allocation33_spill] sm:$0xff]  ;;  %v4348_v12 = vld [vmem:[%s13203_s8 + $0xa8] sm:$0xff] }
 0x339   :  { %8099 = vmatpush3.msra.mxu1 %v10336_v58  ;;  %8065 = vmatprep.subr.mxu0 %v13896_v0  ;;  %v13901_v58 = vand.u32 4294901760, %v13874_v5 }
 0x33a   :  { %8100 = vmatprep.subr.mxu1 %v10345_v42  ;;  %8066 = vmatpush3.msra.mxu0 %v13897_v43  ;;  %v13902_v42 = vand.u32 4294901760, %v13876_v53 }
 0x33b   :  { %8101 = vmatpush3.msra.mxu1 %v10356_v36  ;;  %8067 = vmatprep.subr.mxu0 %v13898_v15  ;;  %v13903_v36 = vand.u32 4294901760, %v13878_v33 }
 0x33c   :  { %8102 = vmatprep.subr.mxu1 %v10365_v40  ;;  %8068 = vmatpush3.msra.mxu0 %v13899_v24  ;;  %v13904_v40 = vand.u32 4294901760, %v13880_v22  ;;  %v13929_v22 = vld [vmem:[#allocation34_spill] sm:$0xff] }
 0x33d   :  { %8103 = vmatpush3.msra.mxu1 %v13871_v50  ;;  %8069 = vmatprep.subr.mxu0 %v13900_v30 }
 0x33e   :  { %8104 = vmatprep.subr.mxu1 %v13873_v57  ;;  %8070 = vmatpush3.msra.mxu0 %v13901_v58  ;;  %v1125_v39 = vpop.f32.mrf.mxu1 }
 0x33f   :  { %8105 = vmatpush3.msra.mxu1 %v13875_v37  ;;  %8071 = vmatprep.subr.mxu0 %v13902_v42 }
 0x340   :  { %8106 = vmatprep.subr.mxu1 %v13877_v35  ;;  %8072 = vmatpush3.msra.mxu0 %v13903_v36  ;;  %v1127_v59 = vpop.f32.mrf.mxu1  ;;  %v13924_v35 = vld [vmem:[#allocation27_spill] sm:$0xff] }
 0x341   :  { %8107 = vmatpush3.msra.mxu1 %v13879_v2  ;;  %8073 = vmatprep.subr.mxu0 %v13904_v40 }
 0x342   :  { %8108 = vmatprep.subr.mxu1 %v10445_v21  ;;  %8074 = vmatpush3.msra.mxu0 %v13905_v44  ;;  %v13911_v21 = vand.u32 4294901760, %v13886_v51  ;;  %v1278_v47 = vpop.f32.mrf.mxu1 }
 0x343   :  { %8109 = vmatpush3.msra.mxu1 %v13906_v52  ;;  %8075 = vmatprep.subr.mxu0 %v13907_v46 }
 0x344   :  { %8110 = vmatprep.subr.mxu1 %v13908_v49  ;;  %8076 = vmatpush3.msra.mxu0 %v13909_v41  ;;  %v1280_v50 = vpop.f32.mrf.mxu1 }
 0x345   :  { %8111 = vmatpush3.msra.mxu1 %v10489_v10  ;;  %8077 = vmatprep.subr.mxu0 %v13910_v11 }
 0x346   :  { %8112 = vmatprep.subr.mxu1 %v10506_v38  ;;  %8078 = vmatpush3.msra.mxu0 %v13911_v21  ;;  %v1043_v32 = vpop.f32.mrf.mxu0  ;;  %v13914_v38 = vand.u32 4294901760, %v13889_v29  ;;  %v1430_v5 = vpop.f32.mrf.mxu1 }
 0x347   :  { %8113 = vmatpush3.msra.mxu1 %v10533_v34  ;;  %8079 = vmatprep.subr.mxu0 %v13912_v20  ;;  %v1126_v10 = vadd.f32 %v1125_v39, %v1043_v32  ;;  %v13915_v34 = vand.u32 4294901760, %v10705_v31 }
 0x348   :  { %8114 = vmatprep.subr.mxu1 %v10577_v63  ;;  %8080 = vmatpush3.msra.mxu0 %v13913_v56  ;;  %v1045_v51 = vpop.f32.mrf.mxu0  ;;  %v13916_v63 = vand.u32 4294901760, %v10716_v6 }
 0x349   :  { %8115 = vmatpush3.msra.mxu1 %v10603_v1  ;;  %8081 = vmatprep.subr.mxu0 %v13914_v38  ;;  %v1128_v3 = vadd.f32 %v1127_v59, %v1045_v51  ;;  %v13917_v1 = vand.u32 4294901760, %v10726_v25 }
 0x34a   :  { %8116 = vmatprep.subr.mxu1 %v10634_v55  ;;  %8082 = vmatpush3.msra.mxu0 %v13915_v34  ;;  %v1202_v26 = vpop.f32.mrf.mxu0  ;;  %v13918_v55 = vand.u32 4294901760, %v10741_v61 }
 0x34b   :  { %8117 = vmatpush3.msra.mxu1 %v10649_v18  ;;  %8083 = vmatprep.subr.mxu0 %v13916_v63  ;;  %v1203_v29 = vadd.f32 %v1202_v26, %v1126_v10  ;;  %v13919_v18 = vand.u32 4294901760, %v10752_v13 }
 0x34c   :  { %8118 = vmatprep.subr.mxu1 %v10666_v14  ;;  %8084 = vmatpush3.msra.mxu0 %v13917_v1  ;;  %v1204_v31 = vpop.f32.mrf.mxu0  ;;  %v13920_v14 = vand.u32 4294901760, %v10762_v62 }
 0x34d   :  { %8119 = vmatpush3.msra.mxu1 %v10678_v23  ;;  %8085 = vmatprep.subr.mxu0 %v13918_v55  ;;  %v1205_v6 = vadd.f32 %v1204_v31, %v1128_v3  ;;  %v1279_v57 = vadd.f32 %v1278_v47, %v1203_v29  ;;  %v13921_v23 = vand.u32 4294901760, %v10769_v8  ;;  %v13927_v8 = vld [vmem:[#allocation25_spill] sm:$0xff] }
 0x34e   :  { %8120 = vmatprep.subr.mxu1 %v10692_v7  ;;  %8086 = vmatpush3.msra.mxu0 %v13919_v18  ;;  %v1356_v25 = vpop.f32.mrf.mxu0  ;;  %v13922_v7 = vld [vmem:[#allocation23_spill] sm:$0xff]  ;;  %v13928_v2 = vand.u32 4294901760, %v13927_v8 }
 0x34f   :  { %8121 = vmatpush3.msra.mxu1 %v10707_v45  ;;  %8087 = vmatprep.subr.mxu0 %v13920_v14  ;;  %v1357_v61 = vadd.f32 %v1356_v25, %v1279_v57  ;;  %v1281_v37 = vadd.f32 %v1280_v50, %v1205_v6  ;;  %v13923_v13 = vand.u32 4294901760, %v13922_v7  ;;  %v13925_v45 = vand.u32 4294901760, %v10792_v28  ;;  %v13933_v28 = vld [vmem:[#allocation32_spill] sm:$0xff] }
 0x350   :  { %8122 = vmatprep.subr.mxu1 %v10718_v4  ;;  %8088 = vmatpush3.msra.mxu0 %v13921_v23  ;;  %v1358_v53 = vpop.f32.mrf.mxu0  ;;  %v1432_v4 = vpop.f32.mrf.mxu1  ;;  %v13936_v23 = vlaneseq }
 0x351   :  { %8123 = vmatpush3.msra.mxu1 %v10728_v60  ;;  %8089 = vmatprep.subr.mxu0 %v13923_v13  ;;  %v11029_v62 = vadd.f32 %v1430_v5, %v1357_v61  ;;  %v1359_v33 = vadd.f32 %v1358_v53, %v1281_v37  ;;  %v13930_v60 = vand.u32 4294901760, %v10808_v17  ;;  %v8846_v17 = vmov 0  }
 0x352   :  { %8124 = vmatprep.subr.mxu1 %v13924_v35  ;;  %8090 = vmatpush3.msra.mxu0 %v13925_v45  ;;  %v3258_v61 = vand.u32 127, %v13936_v23 }
 0x353   :  { %13926 = vst [vmem:[#allocation20_spill] sm:$0xff] %v11029_v62  ;;  %8125 = vmatpush3.msra.mxu1 %v10754_v19  ;;  %8091 = vmatprep.subr.mxu0 %v13928_v2  ;;  %v11037_v54 = vadd.f32 %v1432_v4, %v1359_v33  ;;  %v13934_v19 = vld [vmem:[#allocation35_spill] sm:$0xff] }
 0x354   :  { %8126 = vmatprep.subr.mxu1 %v13929_v22  ;;  %8092 = vmatpush3.msra.mxu0 %v13930_v60 }
 0x355   :  { %13931 = vst [vmem:[#allocation7_spill] sm:$0xff] %v11037_v54  ;;  %3146 = vmatprep.mubr.f32.mxu0 %v13932_v27  ;;  %8127 = vmatpush3.msra.mxu1 %v13933_v28 }
 0x356   :  { %3250 = vmatprep.mubr.f32.mxu1 %v13932_v27  ;;  %3148 = vmatmul.mubr.f32.vlgmr.msra.gmra.mxu0 %v13934_v19 }
 0x357   :  { %3252 = vmatmul.mubr.f32.vlgmr.msra.gmra.mxu1 %v13934_v19  ;;  %8808 = vset.pattern.permute.xlu1 %v8846_v17  ;;  %v3283_v19 = vld [vmem:[%s13201_s6 + $0x28] sm:$0xff] }
 0x358   :  { %3260 = vperm.xlu1 %8808, %v46_v16   ;;  %3454 = vmatprep.mubr.f32.mxu1 %v13935_v48 }
 0x359   :  { %3358 = vmatprep.mubr.f32.mxu0 %v13935_v48  ;;  %8809 = vset.pattern.permute.xlu0 %v8846_v17  ;;  %v11055_v17 = vand.u32 4294901760, %v3283_v19 }
 0x35b   :  { %3319 = vmatprep.subr.mxu0 %v11055_v17 }
 0x36a   :  { %v7778_v0 = vpop.f32.mrf.mxu1 }
 0x36c   :  { %v7779_v24 = vpop.f32.mrf.mxu1 }
 0x36d   :  { %v7780_v39 = vadd.f32 %v7779_v24, %v7778_v0 }
 0x36e   :  { %v7743_v9 = vpop.f32.mrf.mxu0 }
 0x370   :  { %v7744_v43 = vpop.f32.mrf.mxu0 }
 0x371   :  { %v7745_v42 = vadd.f32 %v7744_v43, %v7743_v9  ;;  %v3282_v9 = vld [vmem:[%s13201_s6 + $0x20] sm:$0xff]  ;;  %v3279_v43 = vld [vmem:[%s13201_s6 + $0x8] sm:$0xff] }
 0x372   :  { %v11060_v0 = vand.u32 4294901760, %v3282_v9  ;;  %v11068_v24 = vand.u32 4294901760, %v3279_v43 }
 0x373   :  { %v1874_v52 = vadd.f32 %v7780_v39, %v7745_v42 }
 0x374   :  { %3321 = vmatpush1.msra.mxu0 %v11060_v0 }
 0x375   :  { %3323 = vmatprep.subr.mxu0 %v11068_v24 }
 0x38e   :  { %v7848_v30 = vpop.f32.mrf.mxu1 }
 0x38f   :  { %v7813_v15 = vpop.f32.mrf.mxu0 }
 0x390   :  { %v7849_v44 = vpop.f32.mrf.mxu1 }
 0x391   :  { %v7814_v58 = vpop.f32.mrf.mxu0  ;;  %v7850_v41 = vadd.f32 %v7849_v44, %v7848_v30  ;;  %v3278_v30 = vld [vmem:[%s13201_s6] sm:$0xff] }
 0x392   :  { %v7815_v40 = vadd.f32 %v7814_v58, %v7813_v15  ;;  %v11066_v15 = vsub.f32 %v3283_v19, %v11055_v17  ;;  %v11075_v58 = vsub.f32 %v3282_v9, %v11060_v0  ;;  %v11077_v42 = vand.u32 4294901760, %v3278_v30  ;;  %v4342_v19 = vld [vmem:[%s13203_s8 + $0x78] sm:$0xff]  ;;  %v4357_v9 = vld [vmem:[%s13203_s8 + $0xf0] sm:$0xff] }
 0x394   :  { %v2012_v49 = vadd.f32 %v7815_v40, %v1874_v52  ;;  %v3400_v39 = vand.u32 4294901760, %v11066_v15  ;;  %v3406_v40 = vand.u32 4294901760, %v11075_v58  ;;  %v11087_v44 = vsub.f32 %v3278_v30, %v11077_v42  ;;  %3325 = vmatpush1.msra.mxu0 %v11077_v42 }
 0x395   :  { %3492 = vmatprep.subr.mxu0 %v11066_v15 }
 0x396   :  { %v2120_v47 = vadd.f32 %v7850_v41, %v2012_v49  ;;  %v3401_v52 = vsub.f32 %v11066_v15, %v3400_v39  ;;  %v3418_v49 = vand.u32 4294901760, %v11087_v44  ;;  %v4341_v15 = vld [vmem:[%s13203_s8 + $0x70] sm:$0xff] }
 0x397   :  { %v11246_v30 = vand.u32 4294901760, %v4341_v15 }
 0x398   :  { %v3402_v41 = vand.u32 4294901760, %v3401_v52 }
 0x399   :  { %v11264_v52 = vsub.f32 %v4341_v15, %v11246_v30  ;;  %v4335_v15 = vld [vmem:[%s13203_s8 + $0x40] sm:$0xff] }
 0x39a   :  { %3403 = vmatprep.subr.mxu1 %v3402_v41 }
 0x3b0   :  { %v7883_v36 = vpop.f32.mrf.mxu0 }
 0x3b1   :  { %v7918_v46 = vpop.f32.mrf.mxu1 }
 0x3b2   :  { %v7884_v59 = vpop.f32.mrf.mxu0 }
 0x3b3   :  { %v7885_v21 = vadd.f32 %v7884_v59, %v7883_v36  ;;  %v7919_v20 = vpop.f32.mrf.mxu1  ;;  %v11082_v36 = vsub.f32 %v3279_v43, %v11068_v24  ;;  %v3407_v59 = vsub.f32 %v11075_v58, %v3406_v40  ;;  %v11237_v43 = vand.u32 4294901760, %v4357_v9 }
 0x3b4   :  { %v7920_v38 = vadd.f32 %v7919_v20, %v7918_v46  ;;  %v3419_v20 = vsub.f32 %v11087_v44, %v3418_v49 }
 0x3b5   :  { %v2288_v10 = vadd.f32 %v7885_v21, %v2120_v47  ;;  %v3412_v46 = vand.u32 4294901760, %v11082_v36  ;;  %v3408_v21 = vand.u32 4294901760, %v3407_v59  ;;  %v4355_v59 = vld [vmem:[%s13203_s8 + $0xe0] sm:$0xff] }
 0x3b7   :  { %v2392_v63 = vadd.f32 %v7920_v38, %v2288_v10  ;;  %3409 = vmatpush1.msra.mxu1 %v3408_v21  ;;  %v3285_v38 = vld [vmem:[%s13201_s6 + $0x38] sm:$0xff]  ;;  %v11279_v21 = vand.u32 4294901760, %v4355_v59 }
 0x3d2   :  { %v7953_v11 = vpop.f32.mrf.mxu0 }
 0x3d3   :  { %v3261_v53 = vpop.permute.xlu1 %3260 }
 0x3d4   :  { %v7988_v32 = vpop.f32.mrf.mxu1  ;;  %v7954_v56 = vpop.f32.mrf.mxu0  ;;  %vm3262_vm2 = vcmp.lt.s32.totalorder %v3258_v61, %v3261_v53 }
 0x3d5   :  { %v7955_v34 = vadd.f32 %v7954_v56, %v7953_v11  ;;  %v3413_v11 = vsub.f32 %v11082_v36, %v3412_v46 }
 0x3d6   :  { %v7989_v3 = vpop.f32.mrf.mxu1 }
 0x3d7   :  { %v2504_v1 = vadd.f32 %v7955_v34, %v2392_v63  ;;  %v7990_v29 = vadd.f32 %v7989_v3, %v7988_v32  ;;  %v3414_v47 = vand.u32 4294901760, %v3413_v11  ;;  %v3420_v32 = vand.u32 4294901760, %v3419_v20  ;;  %v3281_v34 = vld [vmem:[%s13201_s6 + $0x18] sm:$0xff]  ;;  %v3280_v63 = vld [vmem:[%s13201_s6 + $0x10] sm:$0xff]  ;;  %v4339_v20 = vld [vmem:[%s13203_s8 + $0x60] sm:$0xff] }
 0x3d8   :  { %v11115_v3 = vand.u32 4294901760, %v3285_v38 }
 0x3d9   :  { %v2736_v18 = vadd.f32 %v7990_v29, %v2504_v1  ;;  %3415 = vmatprep.subr.mxu1 %v3414_v47  ;;  %v11124_v1 = vand.u32 4294901760, %v3280_v63 }
 0x3da   :  { %3421 = vmatpush1.msra.mxu1 %v3420_v32  ;;  %v11127_v29 = vsub.f32 %v3285_v38, %v11115_v3  ;;  %v13425_v32 = vand.u32 4294901760, %v11264_v52  ;;  %v4354_v38 = vld [vmem:[%s13203_s8 + $0xd8] sm:$0xff] }
 0x3db   :  { %3572 = vmatprep.subr.mxu1 %v11055_v17 }
 0x3f4   :  { %v8023_v51 = vpop.f32.mrf.mxu0 }
 0x3f6   :  { %v8058_v50 = vpop.f32.mrf.mxu1  ;;  %v8024_v26 = vpop.f32.mrf.mxu0 }
 0x3f7   :  { %v8025_v55 = vadd.f32 %v8024_v26, %v8023_v51  ;;  %v3284_v51 = vld [vmem:[%s13201_s6 + $0x30] sm:$0xff]  ;;  %v11122_v26 = vand.u32 4294901760, %v3281_v34 }
 0x3f8   :  { %v8059_v31 = vpop.f32.mrf.mxu1 }
 0x3f9   :  { %v2874_v6 = vadd.f32 %v8025_v55, %v2736_v18  ;;  %v8060_v57 = vadd.f32 %v8059_v31, %v8058_v50  ;;  %v11120_v50 = vand.u32 4294901760, %v3284_v51 }
 0x3fb   :  { %v2982_v37 = vadd.f32 %v8060_v57, %v2874_v6  ;;  %v11130_v31 = vsub.f32 %v3284_v51, %v11120_v50  ;;  %v11133_v6 = vsub.f32 %v3281_v34, %v11122_v26  ;;  %v11136_v57 = vsub.f32 %v3280_v63, %v11124_v1 }
 0x3fc   :  { %v11303_v63 = vsub.f32 %v4355_v59, %v11279_v21 }
 0x3fd   :  { %v3897_v23 = vand.u32 4294901760, %v11130_v31  ;;  %v3903_v61 = vand.u32 4294901760, %v11133_v6 }
 0x416   :  { %v8093_v5 = vpop.f32.mrf.mxu0 }
 0x417   :  { %v8128_v14 = vpop.f32.mrf.mxu1 }
 0x418   :  { %v8094_v25 = vpop.f32.mrf.mxu0 }
 0x419   :  { %v8095_v7 = vadd.f32 %v8094_v25, %v8093_v5  ;;  %v8129_v13 = vpop.f32.mrf.mxu1 }
 0x41a   :  { %v8130_v45 = vadd.f32 %v8129_v13, %v8128_v14  ;;  %v3891_v14 = vand.u32 4294901760, %v11127_v29 }
 0x41b   :  { %v3150_v35 = vadd.f32 %v8095_v7, %v2982_v37  ;;  %v3909_v7 = vand.u32 4294901760, %v11136_v57 }
 0x41c   :  { %v3892_v13 = vsub.f32 %v11127_v29, %v3891_v14 }
 0x41d   :  { %v3254_v33 = vadd.f32 %v8130_v45, %v3150_v35  ;;  %v3898_v35 = vsub.f32 %v11130_v31, %v3897_v23  ;;  %v3904_v45 = vsub.f32 %v11133_v6, %v3903_v61 }
 0x41f   :  { %v3263_v4 = vsel %vm3262_vm2, %v3254_v33, -1e+30 }
 0x420   :  { %v3265_v8 = vsel %vm3264_vm3, %v3263_v4, -inf }
 0x421   :  { %3266 = vmax.xlane.f32.xlu1 %v3265_v8  ;;  %v3893_v8 = vand.u32 4294901760, %v3892_v13 }
 0x4aa   :  { %v3267_v2 = vpop.xlane.xlu1 %3266 }
 0x4ab   :  { %v3268_v22 = vsub.f32 %v3263_v4, %v3267_v2  ;;  %v3910_v4 = vsub.f32 %v11136_v57, %v3909_v7 }
 0x4ad   :  { %v3269_v60 = vmul.f32 1.442695, %v3268_v22  ;;  %v3899_v22 = vand.u32 4294901760, %v3898_v35 }
 0x4af   :  { %8815 = vpow2.f32 %v3269_v60  ;;  %v3905_v60 = vand.u32 4294901760, %v3904_v45 }
 0x4bc   :  { %v8816_v27 = vpop.eup %8815 }
 0x4bd   :  { %v3271_v28 = vsel %vm3262_vm2, %v8816_v27, 0.0  ;;  %v3911_v27 = vand.u32 4294901760, %v3910_v4 }
 0x4be   :  { %v3272_v16 = vsel %vm3264_vm3, %v3271_v28, 0.0 }
 0x4bf   :  { %3273 = vadd.xlane.f32.xlu0 %v3272_v16 }
 0x548   :  { %v3274_v56 = vpop.xlane.xlu0 %3273 }
 0x549   :  { %v3275_v10 = vmax.f32 %v3274_v56, 1e-30 }
 0x54b   :  { %8817 = vrcp.f32 %v3275_v10  ;;  %v11292_v10 = vand.u32 4294901760, %v4339_v20 }
 0x558   :  { %v8818_v55 = vpop.eup %8817 }
 0x559   :  { %v3277_v18 = vmul.f32 %v8818_v55, %v3271_v28  ;;  %v4358_v28 = vld [vmem:[%s13203_s8 + $0xf8] sm:$0xff]  ;;  %v11314_v55 = vsub.f32 %v4339_v20, %v11292_v10 }
 0x55a   :  { %v11224_v16 = vand.u32 4294901760, %v4358_v28 }
 0x55b   :  { %v3288_v5 = vsel %vm3286_vm4, %v3277_v18, 0 }
 0x55c   :  { %v11139_v25 = vand.u32 4294901760, %v3288_v5  ;;  %13937 = vst [vmem:[#allocation22_spill] sm:$0xff] %v11224_v16 }
 0x55e   :  { %3456 = vmatmul.mubr.f32.vlgmr.msra.gmra.mxu1 %v11139_v25  ;;  %v11145_v37 = vsub.f32 %v3288_v5, %v11139_v25  ;;  %v11324_v5 = vand.u32 4294901760, %v4354_v38 }
 0x55f   :  { %3574 = vmatpush1.msra.mxu1 %v11060_v0  ;;  %3611 = vmatprep.mubr.f32.mxu1 %v13935_v48 }
 0x560   :  { %3576 = vmatprep.subr.mxu1 %v11068_v24  ;;  %v3361_v53 = vand.u32 4294901760, %v11145_v37  ;;  %v11342_v35 = vsub.f32 %v4354_v38, %v11324_v5 }
 0x561   :  { %3578 = vmatpush1.msra.mxu1 %v11077_v42 }
 0x562   :  { %3615 = vmatmul.mubr.f32.vlgmr.msra.gmra.mxu1 %v3361_v53  ;;  %3734 = vmatprep.subr.mxu1 %v11055_v17  ;;  %v3362_v33 = vsub.f32 %v11145_v37, %v3361_v53  ;;  %v11229_v17 = vand.u32 4294901760, %v4342_v19 }
 0x563   :  { %3736 = vmatpush1.msra.mxu1 %v11060_v0  ;;  %3773 = vmatprep.mubr.f32.mxu1 %v13935_v48  ;;  %v11235_v0 = vsub.f32 %v4358_v28, %v11224_v16  ;;  %v13417_v28 = vand.u32 4294901760, %v11342_v35 }
 0x564   :  { %3738 = vmatprep.subr.mxu1 %v11068_v24  ;;  %v3363_v2 = vand.u32 4294901760, %v3362_v33  ;;  %v11244_v24 = vsub.f32 %v4342_v19, %v11229_v17  ;;  %v4336_v33 = vld [vmem:[%s13203_s8 + $0x48] sm:$0xff] }
 0x565   :  { %3740 = vmatpush1.msra.mxu1 %v11077_v42  ;;  %13938 = vst [vmem:[#allocation8_spill] sm:$0xff] %v11235_v0  ;;  %v13429_v42 = vand.u32 4294901760, %v11235_v0  ;;  %v4669_v20 = vsub.f32 %v11342_v35, %v13417_v28  ;;  %v11470_v28 = vand.u32 4294901760, %v4348_v12 }
 0x566   :  { %3364 = vmatmul.mubr.f32.vlgmr.msra.gmra.mxu0 %v3363_v2  ;;  %3775 = vmatmul.mubr.f32.vlgmr.msra.gmra.mxu1 %v11139_v25 }
 0x567   :  { %3894 = vmatprep.subr.mxu1 %v3893_v8  ;;  %3495 = vmatpush1.msra.mxu0 %v11075_v58  ;;  %v4356_v58 = vld [vmem:[%s13203_s8 + $0xe8] sm:$0xff]  ;;  %13945 = vst [vmem:[#allocation15_spill] sm:$0xff] %v11470_v28 }
 0x568   :  { %3900 = vmatpush1.msra.mxu1 %v3899_v22  ;;  %3498 = vmatprep.subr.mxu0 %v11082_v36  ;;  %v11256_v36 = vand.u32 4294901760, %v4356_v58 }
 0x569   :  { %3906 = vmatprep.subr.mxu1 %v3905_v60  ;;  %3501 = vmatpush1.msra.mxu0 %v11087_v44  ;;  %v13427_v44 = vand.u32 4294901760, %v11244_v24  ;;  %v4351_v60 = vld [vmem:[%s13203_s8 + $0xc0] sm:$0xff] }
 0x56a   :  { %3534 = vmatprep.mubr.f32.mxu0 %v13935_v48  ;;  %3912 = vmatpush1.msra.mxu1 %v3911_v27  ;;  %v11277_v11 = vsub.f32 %v4356_v58, %v11256_v36 }
 0x56b   :  { %3945 = vmatprep.mubr.f32.mxu1 %v13935_v48  ;;  %3537 = vmatmul.mubr.f32.vlgmr.msra.gmra.mxu0 %v11145_v37  ;;  %v4529_v47 = vsub.f32 %v11244_v24, %v13427_v44 }
 0x56c   :  { %3652 = vmatprep.subr.mxu0 %v3400_v39  ;;  %3947 = vmatmul.mubr.f32.vlgmr.msra.gmra.mxu1 %v11139_v25  ;;  %v11254_v39 = vsub.f32 %v4357_v9, %v11237_v43 }
 0x56d   :  { %4063 = vmatprep.subr.mxu1 %v11115_v3  ;;  %3656 = vmatpush1.msra.mxu0 %v3406_v40  ;;  %v4340_v40 = vld [vmem:[%s13203_s8 + $0x68] sm:$0xff] }
 0x56e   :  { %4065 = vmatpush1.msra.mxu1 %v11120_v50  ;;  %3660 = vmatprep.subr.mxu0 %v3412_v46  ;;  %v11266_v46 = vand.u32 4294901760, %v4340_v40  ;;  %v13426_v41 = vand.u32 4294901760, %v11254_v39 }
 0x56f   :  { %4067 = vmatprep.subr.mxu1 %v11122_v26  ;;  %3664 = vmatpush1.msra.mxu0 %v3418_v49  ;;  %v4641_v49 = vsub.f32 %v11235_v0, %v13429_v42 }
 0x570   :  { %3697 = vmatprep.mubr.f32.mxu0 %v13935_v48  ;;  %4069 = vmatpush1.msra.mxu1 %v11124_v1  ;;  %v11290_v56 = vsub.f32 %v4340_v40, %v11266_v46  ;;  %v4648_v34 = vsub.f32 %v11254_v39, %v13426_v41 }
 0x571   :  { %4102 = vmatprep.mubr.f32.mxu1 %v13935_v48  ;;  %3699 = vmatmul.mubr.f32.vlgmr.msra.gmra.mxu0 %v11139_v25  ;;  %v4642_v51 = vand.u32 4294901760, %v4641_v49  ;;  %v11376_v49 = vand.u32 4294901760, %v4336_v33 }
 0x572   :  { %3810 = vmatprep.subr.mxu0 %v11115_v3  ;;  %4106 = vmatmul.mubr.f32.vlgmr.msra.gmra.mxu1 %v3361_v53  ;;  %v4649_v18 = vand.u32 4294901760, %v4648_v34 }
 0x573   :  { %4225 = vmatprep.subr.mxu1 %v11115_v3  ;;  %3812 = vmatpush1.msra.mxu0 %v11120_v50  ;;  %v13423_v3 = vand.u32 4294901760, %v11277_v11 }
 0x574   :  { %4227 = vmatpush1.msra.mxu1 %v11120_v50  ;;  %3814 = vmatprep.subr.mxu0 %v11122_v26  ;;  %v4338_v50 = vld [vmem:[%s13203_s8 + $0x58] sm:$0xff] }
 0x575   :  { %4229 = vmatprep.subr.mxu1 %v11122_v26  ;;  %3816 = vmatpush1.msra.mxu0 %v11124_v1  ;;  %v4530_v26 = vand.u32 4294901760, %v4529_v47 }
 0x576   :  { %3849 = vmatprep.mubr.f32.mxu0 %v13935_v48  ;;  %4231 = vmatpush1.msra.mxu1 %v11124_v1  ;;  %v4536_v1 = vsub.f32 %v11264_v52, %v13425_v32 }
 0x577   :  { %4264 = vmatprep.mubr.f32.mxu1 %v13935_v48  ;;  %3855 = vmatmul.mubr.f32.vlgmr.msra.gmra.mxu0 %v3363_v2 }
 0x578   :  { %3983 = vmatprep.subr.mxu0 %v11127_v29  ;;  %4266 = vmatmul.mubr.f32.vlgmr.msra.gmra.mxu1 %v11139_v25  ;;  %v13421_v29 = vand.u32 4294901760, %v11290_v56 }
 0x579   :  { %3986 = vmatpush1.msra.mxu0 %v11130_v31  ;;  %4025 = vmatprep.mubr.f32.mxu0 %v13935_v48  ;;  %v4353_v31 = vld [vmem:[%s13203_s8 + $0xd0] sm:$0xff] }
 0x57a   :  { %3989 = vmatprep.subr.mxu0 %v11133_v6  ;;  %8166 = vmatprep.subr.mxu1 %v4642_v51  ;;  %v4655_v6 = vsub.f32 %v11277_v11, %v13423_v3  ;;  %v11344_v45 = vand.u32 4294901760, %v4353_v31  ;;  %v11386_v51 = vand.u32 4294901760, %v4351_v60 }
 0x57b   :  { %3992 = vmatpush1.msra.mxu0 %v11136_v57  ;;  %v13420_v57 = vand.u32 4294901760, %v11303_v63  ;;  %8167 = vmatpush3.msra.mxu1 %v4530_v26  ;;  %v11394_v26 = vsub.f32 %v4336_v33, %v11376_v49 }
 0x57c   :  { %4028 = vmatmul.mubr.f32.vlgmr.msra.gmra.mxu0 %v11145_v37  ;;  %4143 = vmatprep.subr.mxu0 %v3891_v14  ;;  %v4337_v14 = vld [vmem:[%s13203_s8 + $0x50] sm:$0xff]  ;;  %v11333_v37 = vand.u32 4294901760, %v4338_v50  ;;  %v4656_v13 = vand.u32 4294901760, %v4655_v6  ;;  %v11364_v19 = vsub.f32 %v4353_v31, %v11344_v45  ;;  %v4350_v31 = vld [vmem:[%s13203_s8 + $0xb8] sm:$0xff] }
 0x57d   :  { %4147 = vmatpush1.msra.mxu0 %v3897_v23  ;;  %4188 = vmatprep.mubr.f32.mxu0 %v13935_v48  ;;  %v4543_v23 = vsub.f32 %v11290_v56, %v13421_v29  ;;  %v4662_v53 = vsub.f32 %v11303_v63, %v13420_v57  ;;  %v11356_v22 = vand.u32 4294901760, %v4337_v14  ;;  %13939 = vst [vmem:[#allocation11_spill] sm:$0xff] %v11394_v26 }
 0x57e   :  { %4151 = vmatprep.subr.mxu0 %v3903_v61  ;;  %v13419_v61 = vand.u32 4294901760, %v11314_v55  ;;  %8168 = vmatprep.subr.mxu1 %v4649_v18  ;;  %v11354_v2 = vsub.f32 %v4338_v50, %v11333_v37  ;;  %v13414_v47 = vand.u32 4294901760, %v11364_v19  ;;  %v4670_v18 = vand.u32 4294901760, %v4669_v20 }
 0x57f   :  { %4155 = vmatpush1.msra.mxu0 %v3909_v7  ;;  %v4352_v7 = vld [vmem:[%s13203_s8 + $0xc8] sm:$0xff]  ;;  %v4544_v4 = vand.u32 4294901760, %v4543_v23  ;;  %v4663_v27 = vand.u32 4294901760, %v4662_v53  ;;  %v11374_v59 = vsub.f32 %v4337_v14, %v11356_v22  ;;  %v4334_v23 = vld [vmem:[%s13203_s8 + $0x38] sm:$0xff]  ;;  %v13413_v53 = vand.u32 4294901760, %v11394_v26 }
 0x580   :  { %4190 = vmatmul.mubr.f32.vlgmr.msra.gmra.mxu0 %v11139_v25  ;;  %8131 = vmatprep.subr.mxu0 %v11224_v16  ;;  %v4537_v25 = vand.u32 4294901760, %v4536_v1  ;;  %v4550_v8 = vsub.f32 %v11314_v55, %v13419_v61  ;;  %v11366_v9 = vand.u32 4294901760, %v4352_v7  ;;  %v13416_v40 = vand.u32 4294901760, %v11354_v2 }
 0x581   :  { %8132 = vmatpush3.msra.mxu0 %v11229_v17  ;;  %v13412_v50 = vand.u32 4294901760, %v11374_v59  ;;  %v11396_v1 = vand.u32 4294901760, %v4335_v15  ;;  %v4676_v6 = vsub.f32 %v11364_v19, %v13414_v47  ;;  %v11488_v29 = vsub.f32 %v4348_v12, %v11470_v28  ;;  %v4346_v12 = vld [vmem:[%s13203_s8 + $0x98] sm:$0xff] }
 0x582   :  { %8133 = vmatprep.subr.mxu0 %v11237_v43  ;;  %8169 = vmatpush3.msra.mxu1 %v4537_v25  ;;  %v4551_v58 = vand.u32 4294901760, %v4550_v8  ;;  %v11384_v38 = vsub.f32 %v4352_v7, %v11366_v9  ;;  %v4557_v34 = vsub.f32 %v11354_v2, %v13416_v40  ;;  %v11407_v25 = vsub.f32 %v4351_v60, %v11386_v51 }
 0x583   :  { %8134 = vmatpush3.msra.mxu0 %v11246_v30  ;;  %8170 = vmatprep.subr.mxu1 %v4656_v13  ;;  %v4564_v13 = vsub.f32 %v11374_v59, %v13412_v50  ;;  %v11418_v33 = vsub.f32 %v4335_v15, %v11396_v1  ;;  %v4677_v8 = vand.u32 4294901760, %v4676_v6  ;;  %v4333_v15 = vld [vmem:[%s13203_s8 + $0x30] sm:$0xff]  ;;  %v11437_v6 = vand.u32 4294901760, %v4334_v23  ;;  %13948 = vst [vmem:[#allocation21_spill] sm:$0xff] %v11488_v29 }
 0x584   :  { %8135 = vmatprep.subr.mxu0 %v11256_v36  ;;  %8171 = vmatpush3.msra.mxu1 %v4544_v4  ;;  %v13411_v14 = vand.u32 4294901760, %v11384_v38  ;;  %13940 = vst [vmem:[#allocation17_spill] sm:$0xff] %v11407_v25  ;;  %v4558_v7 = vand.u32 4294901760, %v4557_v34  ;;  %v4349_v4 = vld [vmem:[%s13203_s8 + $0xb0] sm:$0xff]  ;;  %v4571_v34 = vsub.f32 %v11394_v26, %v13413_v53  ;;  %v4332_v53 = vld [vmem:[%s13203_s8 + $0x28] sm:$0xff] }
 0x585   :  { %8136 = vmatpush3.msra.mxu0 %v11266_v46  ;;  %8172 = vmatprep.subr.mxu1 %v4663_v27  ;;  %13941 = vst [vmem:[#allocation13_spill] sm:$0xff] %v11418_v33  ;;  %v13415_v27 = vand.u32 4294901760, %v11407_v25  ;;  %v4565_v20 = vand.u32 4294901760, %v4564_v13  ;;  %v11448_v13 = vand.u32 4294901760, %v4349_v4 }
 0x586   :  { %8137 = vmatprep.subr.mxu0 %v11279_v21  ;;  %8173 = vmatpush3.msra.mxu1 %v4551_v58  ;;  %v4683_v60 = vsub.f32 %v11384_v38, %v13411_v14  ;;  %v11428_v58 = vand.u32 4294901760, %v4350_v31  ;;  %v4572_v47 = vand.u32 4294901760, %v4571_v34 }
 0x587   :  { %8138 = vmatpush3.msra.mxu0 %v11292_v10  ;;  %8174 = vmatprep.subr.mxu1 %v4670_v18  ;;  %v13418_v18 = vand.u32 4294901760, %v11418_v33  ;;  %v4690_v50 = vsub.f32 %v11407_v25, %v13415_v27  ;;  %v11460_v27 = vand.u32 4294901760, %v4333_v15  ;;  %v11468_v34 = vsub.f32 %v4349_v4, %v11448_v13 }
 0x588   :  { %8139 = vmatprep.subr.mxu0 %v11324_v5  ;;  %8175 = vmatpush3.msra.mxu1 %v4558_v7  ;;  %v4684_v14 = vand.u32 4294901760, %v4683_v60  ;;  %v11446_v7 = vsub.f32 %v4350_v31, %v11428_v58  ;;  %v11458_v60 = vsub.f32 %v4334_v23, %v11437_v6  ;;  %v4347_v31 = vld [vmem:[%s13203_s8 + $0xa0] sm:$0xff] }
 0x589   :  { %8140 = vmatpush3.msra.mxu0 %v11333_v37  ;;  %8176 = vmatprep.subr.mxu1 %v4677_v8  ;;  %v4578_v8 = vsub.f32 %v11418_v33, %v13418_v18  ;;  %v4691_v40 = vand.u32 4294901760, %v4690_v50  ;;  %13944 = vst [vmem:[#allocation10_spill] sm:$0xff] %v11468_v34  ;;  %v4331_v23 = vld [vmem:[%s13203_s8 + $0x20] sm:$0xff]  ;;  %v11480_v50 = vand.u32 4294901760, %v4332_v53  ;;  %v13428_v57 = vand.u32 4294901760, %v11468_v34 }
 0x58a   :  { %8141 = vmatprep.subr.mxu0 %v11344_v45  ;;  %13942 = vst [vmem:[#allocation9_spill] sm:$0xff] %v11446_v7  ;;  %8177 = vmatpush3.msra.mxu1 %v4565_v20  ;;  %13943 = vst [vmem:[#allocation6_spill] sm:$0xff] %v11458_v60  ;;  %v13422_v20 = vand.u32 4294901760, %v11446_v7  ;;  %v13424_v61 = vand.u32 4294901760, %v11458_v60 }
 0x58b   :  { %8142 = vmatpush3.msra.mxu0 %v11356_v22  ;;  %8178 = vmatprep.subr.mxu1 %v4684_v14  ;;  %v4579_v18 = vand.u32 4294901760, %v4578_v8  ;;  %v11478_v14 = vsub.f32 %v4333_v15, %v11460_v27  ;;  %13947 = vst [vmem:[#allocation18_spill] sm:$0xff] %v11480_v50  ;;  %v11498_v8 = vsub.f32 %v4332_v53, %v11480_v50  ;;  %v4330_v53 = vld [vmem:[%s13203_s8 + $0x18] sm:$0xff] }
 0x58c   :  { %8143 = vmatprep.subr.mxu0 %v11366_v9  ;;  %8179 = vmatpush3.msra.mxu1 %v4572_v47  ;;  %v4697_v4 = vsub.f32 %v11446_v7, %v13422_v20  ;;  %v11490_v47 = vand.u32 4294901760, %v4347_v31  ;;  %v4585_v15 = vsub.f32 %v11458_v60, %v13424_v61  ;;  %v11500_v20 = vand.u32 4294901760, %v4331_v23 }
 0x58d   :  { %8144 = vmatpush3.msra.mxu0 %v11376_v49  ;;  %13946 = vst [vmem:[#allocation31_spill] sm:$0xff] %v11478_v14  ;;  %8180 = vmatprep.subr.mxu1 %v4691_v40  ;;  %v13431_v40 = vand.u32 4294901760, %v11478_v14  ;;  %13950 = vst [vmem:[#allocation24_spill] sm:$0xff] %v11498_v8  ;;  %v13434_v61 = vand.u32 4294901760, %v11488_v29  ;;  %v13955_v54 = vand.u32 4294901760, %v11498_v8 }
 0x58e   :  { %8145 = vmatprep.subr.mxu0 %v11386_v51  ;;  %13949 = vst [vmem:[#allocation30_spill] sm:$0xff] %v11490_v47  ;;  %8181 = vmatpush3.msra.mxu1 %v4579_v18  ;;  %13951 = vst [vmem:[#allocation26_spill] sm:$0xff] %v11500_v20  ;;  %v4698_v3 = vand.u32 4294901760, %v4697_v4  ;;  %v4704_v18 = vsub.f32 %v11468_v34, %v13428_v57  ;;  %v11511_v32 = vsub.f32 %v4347_v31, %v11490_v47  ;;  %v4345_v31 = vld [vmem:[%s13203_s8 + $0x90] sm:$0xff] }
 0x58f   :  { %8146 = vmatpush3.msra.mxu0 %v11396_v1  ;;  %v4586_v41 = vand.u32 4294901760, %v4585_v15  ;;  %v4592_v4 = vsub.f32 %v11478_v14, %v13431_v40  ;;  %v11522_v57 = vsub.f32 %v4331_v23, %v11500_v20  ;;  %v4711_v15 = vsub.f32 %v11488_v29, %v13434_v61  ;;  %v4329_v23 = vld [vmem:[%s13203_s8 + $0x10] sm:$0xff]  ;;  %v4344_v61 = vld [vmem:[%s13203_s8 + $0x88] sm:$0xff] }
 0x590   :  { %8147 = vmatprep.subr.mxu0 %v11428_v58  ;;  %13952 = vst [vmem:[#allocation16_spill] sm:$0xff] %v11511_v32  ;;  %8182 = vmatprep.subr.mxu1 %v4698_v3  ;;  %v4705_v42 = vand.u32 4294901760, %v4704_v18  ;;  %v11532_v40 = vand.u32 4294901760, %v4346_v12  ;;  %v4599_v62 = vsub.f32 %v11498_v8, %v13955_v54  ;;  %v11541_v18 = vand.u32 4294901760, %v4330_v53  ;;  %v4328_v54 = vld [vmem:[%s13203_s8 + $0x8] sm:$0xff] }
 0x591   :  { %8148 = vmatpush3.msra.mxu0 %v11437_v6  ;;  %13953 = vst [vmem:[#allocation19_spill] sm:$0xff] %v11522_v57  ;;  %8183 = vmatpush3.msra.mxu1 %v4586_v41  ;;  %v4593_v44 = vand.u32 4294901760, %v4592_v4  ;;  %v4712_v48 = vand.u32 4294901760, %v4711_v15  ;;  %v13957_v29 = vand.u32 4294901760, %v11511_v32  ;;  %v11552_v4 = vand.u32 4294901760, %v4345_v31 }
 0x592   :  { %8149 = vmatprep.subr.mxu0 %v11448_v13  ;;  %13954 = vst [vmem:[#allocation12_spill] sm:$0xff] %v11532_v40  ;;  %13956 = vst [vmem:[#allocation14_spill] sm:$0xff] %v11541_v18  ;;  %8184 = vmatprep.subr.mxu1 %v4705_v42  ;;  %v11550_v41 = vsub.f32 %v4346_v12, %v11532_v40  ;;  %v4600_v3 = vand.u32 4294901760, %v4599_v62  ;;  %v13960_v42 = vand.u32 4294901760, %v11522_v57  ;;  %v4343_v12 = vld [vmem:[%s13203_s8 + $0x80] sm:$0xff]  ;;  %v11574_v34 = vand.u32 4294901760, %v4344_v61 }
 0x593   :  { %8150 = vmatpush3.msra.mxu0 %v11460_v27  ;;  %v4718_v14 = vsub.f32 %v11511_v32, %v13957_v29  ;;  %13959 = vst [vmem:[#allocation27_spill] sm:$0xff] %v11552_v4  ;;  %8185 = vmatpush3.msra.mxu1 %v4593_v44  ;;  %v11562_v8 = vsub.f32 %v4330_v53, %v11541_v18  ;;  %v11564_v29 = vand.u32 4294901760, %v4329_v23  ;;  %v4327_v53 = vld [vmem:[%s13203_s8] sm:$0xff] }
 0x594   :  { %8151 = vmatprep.subr.mxu0 %v11470_v28  ;;  %13958 = vst [vmem:[#allocation23_spill] sm:$0xff] %v11550_v41  ;;  %v4606_v15 = vsub.f32 %v11522_v57, %v13960_v42  ;;  %8186 = vmatprep.subr.mxu1 %v4712_v48  ;;  %v13451_v44 = vand.u32 4294901760, %v11550_v41  ;;  %v11572_v62 = vsub.f32 %v4345_v31, %v11552_v4  ;;  %13964 = vst [vmem:[#allocation32_spill] sm:$0xff] %v11574_v34 }
 0x595   :  { %8152 = vmatpush3.msra.mxu0 %v11480_v50  ;;  %13961 = vst [vmem:[#allocation25_spill] sm:$0xff] %v11562_v8  ;;  %13962 = vst [vmem:[#allocation34_spill] sm:$0xff] %v11564_v29  ;;  %v4719_v32 = vand.u32 4294901760, %v4718_v14  ;;  %8187 = vmatpush3.msra.mxu1 %v4600_v3  ;;  %v13456_v57 = vand.u32 4294901760, %v11562_v8  ;;  %v11582_v48 = vsub.f32 %v4329_v23, %v11564_v29  ;;  %v11584_v14 = vand.u32 4294901760, %v4328_v54 }
 0x596   :  { %8153 = vmatprep.subr.mxu0 %v11490_v47  ;;  %13963 = vst [vmem:[#allocation33_spill] sm:$0xff] %v11572_v62  ;;  %v4607_v42 = vand.u32 4294901760, %v4606_v15  ;;  %v4725_v31 = vsub.f32 %v11550_v41, %v13451_v44  ;;  %v11594_v3 = vand.u32 4294901760, %v4343_v12  ;;  %v11604_v44 = vand.u32 4294901760, %v4327_v53 }
 0x597   :  { %8154 = vmatpush3.msra.mxu0 %v11500_v20  ;;  %13965 = vst [vmem:[#allocation35_spill] sm:$0xff] %v11582_v48  ;;  %13966 = vst [vmem:[#allocation36_spill] sm:$0xff] %v11584_v14  ;;  %8188 = vmatprep.subr.mxu1 %v4719_v32  ;;  %v4613_v23 = vsub.f32 %v11562_v8, %v13456_v57  ;;  %v13462_v32 = vand.u32 4294901760, %v11582_v48  ;;  %v11602_v15 = vsub.f32 %v4328_v54, %v11584_v14 }
 0x598   :  { %8155 = vmatprep.subr.mxu0 %v11532_v40  ;;  %13968 = vst [vmem:[#allocation38_spill] sm:$0xff] %v11594_v3  ;;  %8189 = vmatpush3.msra.mxu1 %v4607_v42  ;;  %13970 = vst [vmem:[#allocation40_spill] sm:$0xff] %v11604_v44 }
 0x599   :  { %8156 = vmatpush3.msra.mxu0 %v11541_v18  ;;  %v13459_v18 = vand.u32 4294901760, %v11572_v62  ;;  %13969 = vst [vmem:[#allocation39_spill] sm:$0xff] %v11602_v15  ;;  %v4614_v57 = vand.u32 4294901760, %v4613_v23  ;;  %v4620_v54 = vsub.f32 %v11582_v48, %v13462_v32  ;;  %v13466_v8 = vand.u32 4294901760, %v11602_v15 }
 0x59a   :  { %8157 = vmatprep.subr.mxu0 %v11552_v4  ;;  %v11592_v4 = vsub.f32 %v4344_v61, %v11574_v34  ;;  %v4726_v61 = vand.u32 4294901760, %v4725_v31  ;;  %v11620_v31 = vsub.f32 %v4327_v53, %v11604_v44 }
 0x59b   :  { %8158 = vmatpush3.msra.mxu0 %v11564_v29  ;;  %v4732_v41 = vsub.f32 %v11572_v62, %v13459_v18  ;;  %v4621_v23 = vand.u32 4294901760, %v4620_v54  ;;  %v4627_v32 = vsub.f32 %v11602_v15, %v13466_v8 }
 0x59c   :  { %13967 = vst [vmem:[#allocation37_spill] sm:$0xff] %v11592_v4  ;;  %8159 = vmatprep.subr.mxu0 %v11574_v34  ;;  %v13465_v42 = vand.u32 4294901760, %v11592_v4  ;;  %v11612_v34 = vsub.f32 %v4343_v12, %v11594_v3  ;;  %13972 = vst [vmem:[#allocation42_spill] sm:$0xff] %v11620_v31  ;;  %8190 = vmatprep.subr.mxu1 %v4726_v61  ;;  %v13477_v53 = vand.u32 4294901760, %v11620_v31 }
 0x59d   :  { %8160 = vmatpush3.msra.mxu0 %v11584_v14  ;;  %v4733_v18 = vand.u32 4294901760, %v4732_v41  ;;  %8191 = vmatpush3.msra.mxu1 %v4614_v57  ;;  %v4628_v61 = vand.u32 4294901760, %v4627_v32 }
 0x59e   :  { %13971 = vst [vmem:[#allocation41_spill] sm:$0xff] %v11612_v34  ;;  %8161 = vmatprep.subr.mxu0 %v11594_v3  ;;  %v4739_v12 = vsub.f32 %v11592_v4, %v13465_v42  ;;  %v13470_v62 = vand.u32 4294901760, %v11612_v34  ;;  %v4634_v42 = vsub.f32 %v11620_v31, %v13477_v53 }
 0x59f   :  { %8162 = vmatpush3.msra.mxu0 %v11604_v44  ;;  %8192 = vmatprep.subr.mxu1 %v4733_v18 }
 0x5a0   :  { %8201 = vmatprep.subr.mxu0 %v11235_v0  ;;  %v4740_v48 = vand.u32 4294901760, %v4739_v12  ;;  %v4746_v41 = vsub.f32 %v11612_v34, %v13470_v62  ;;  %8193 = vmatpush3.msra.mxu1 %v4621_v23  ;;  %v4635_v54 = vand.u32 4294901760, %v4634_v42 }
 0x5a2   :  { %8194 = vmatprep.subr.mxu1 %v4740_v48  ;;  %v4747_v57 = vand.u32 4294901760, %v4746_v41 }
 0x5a3   :  { %8195 = vmatpush3.msra.mxu1 %v4628_v61 }
 0x5a4   :  { %8196 = vmatprep.subr.mxu1 %v4747_v57 }
 0x5a5   :  { %8197 = vmatpush3.msra.mxu1 %v4635_v54 }
 0x5a6   :  { %8236 = vmatprep.subr.mxu1 %v11224_v16 }
 0x61e   :  { %v3457_v18 = vpop.f32.mrf.mxu1 }
 0x620   :  { %v3459_v12 = vpop.f32.mrf.mxu1 }
 0x622   :  { %v3616_v8 = vpop.f32.mrf.mxu1 }
 0x624   :  { %v3618_v0 = vpop.f32.mrf.mxu1 }
 0x626   :  { %v3365_v15 = vpop.f32.mrf.mxu0  ;;  %v3776_v62 = vpop.f32.mrf.mxu1 }
 0x627   :  { %v3458_v42 = vadd.f32 %v3457_v18, %v3365_v15 }
 0x628   :  { %v3367_v23 = vpop.f32.mrf.mxu0  ;;  %v3778_v34 = vpop.f32.mrf.mxu1 }
 0x629   :  { %v3460_v48 = vadd.f32 %v3459_v12, %v3367_v23 }
 0x62b   :  { %v3538_v32 = vpop.f32.mrf.mxu0 }
 0x62c   :  { %v3948_v44 = vpop.f32.mrf.mxu1  ;;  %v3539_v54 = vadd.f32 %v3538_v32, %v3458_v42 }
 0x62d   :  { %v3540_v4 = vpop.f32.mrf.mxu0 }
 0x62e   :  { %v3950_v61 = vpop.f32.mrf.mxu1  ;;  %v3541_v57 = vadd.f32 %v3540_v4, %v3460_v48  ;;  %v3617_v29 = vadd.f32 %v3616_v8, %v3539_v54  ;;  %v13976_v54 = vld [vmem:[#allocation11_spill] sm:$0xff] }
 0x630   :  { %v3619_v3 = vadd.f32 %v3618_v0, %v3541_v57 }
 0x631   :  { %v3700_v53 = vpop.f32.mrf.mxu0 }
 0x632   :  { %v4107_v16 = vpop.f32.mrf.mxu1  ;;  %v3701_v50 = vadd.f32 %v3700_v53, %v3617_v29 }
 0x633   :  { %v3702_v41 = vpop.f32.mrf.mxu0 }
 0x634   :  { %v4109_v40 = vpop.f32.mrf.mxu1  ;;  %v3703_v20 = vadd.f32 %v3702_v41, %v3619_v3  ;;  %v3777_v48 = vadd.f32 %v3776_v62, %v3701_v50  ;;  %v13973_v3 = vld [vmem:[#allocation29_spill] sm:$0xff] }
 0x636   :  { %v3779_v15 = vadd.f32 %v3778_v34, %v3703_v20 }
 0x637   :  { %v3856_v31 = vpop.f32.mrf.mxu0 }
 0x638   :  { %v3949_v60 = vadd.f32 %v3948_v44, %v3856_v31  ;;  %v4267_v23 = vpop.f32.mrf.mxu1  ;;  %v4276_v8 = vcombine.low %v3777_v48, %v3779_v15  ;;  %v13979_v15 = vld [vmem:[#allocation30_spill] sm:$0xff]  ;;  %v13983_v48 = vld [vmem:[#allocation12_spill] sm:$0xff] }
 0x639   :  { %v3858_v14 = vpop.f32.mrf.mxu0 }
 0x63a   :  { %v3951_v33 = vadd.f32 %v3950_v61, %v3858_v14  ;;  %v4269_v42 = vpop.f32.mrf.mxu1  ;;  %v4284_v14 = vrot.slane %v4276_v8, %v13973_v3  ;;  %v13975_v61 = vld [vmem:[#allocation15_spill] sm:$0xff]  ;;  %v13986_v8 = vld [vmem:[#allocation10_spill] sm:$0xff] }
 0x63c   :  { %v4029_v7 = vpop.f32.mrf.mxu0 }
 0x63d   :  { %v4030_v47 = vadd.f32 %v4029_v7, %v3949_v60 }
 0x63e   :  { %v4031_v25 = vpop.f32.mrf.mxu0 }
 0x63f   :  { %v4032_v26 = vadd.f32 %v4031_v25, %v3951_v33  ;;  %v4108_v12 = vadd.f32 %v4107_v16, %v4030_v47  ;;  %v8819_v16 = vld [vmem:[%s13196_s1] sm:$0xff] }
 0x640   :  { %v4191_v28 = vpop.f32.mrf.mxu0 }
 0x641   :  { %v4192_v4 = vadd.f32 %v4191_v28, %v4108_v12  ;;  %v4110_v18 = vadd.f32 %v4109_v40, %v4032_v26  ;;  %v13977_v12 = vld [vmem:[#allocation18_spill] sm:$0xff] }
 0x642   :  { %v4193_v32 = vpop.f32.mrf.mxu0 }
 0x643   :  { %v4194_v0 = vadd.f32 %v4193_v32, %v4110_v18  ;;  %v4268_v44 = vadd.f32 %v4267_v23, %v4192_v4  ;;  %v13978_v23 = vld [vmem:[#allocation17_spill] sm:$0xff]  ;;  %v13981_v18 = vld [vmem:[#allocation26_spill] sm:$0xff] }
 0x644   :  { %v13980_v4 = vld [vmem:[#allocation13_spill] sm:$0xff] }
 0x645   :  { %v4270_v31 = vadd.f32 %v4269_v42, %v4194_v0  ;;  %v13982_v32 = vld [vmem:[#allocation9_spill] sm:$0xff]  ;;  %v13984_v0 = vld [vmem:[#allocation6_spill] sm:$0xff] }
 0x646   :  { %v13985_v42 = vld [vmem:[#allocation14_spill] sm:$0xff] }
 0x647   :  { %v4277_v57 = vcombine.low %v4268_v44, %v4270_v31  ;;  %v13987_v44 = vld [vmem:[#allocation27_spill] sm:$0xff] }
 0x648   :  { %v13988_v31 = vld [vmem:[#allocation31_spill] sm:$0xff] }
 0x649   :  { %v4291_v7 = vrot.slane %v4277_v57, %v13973_v3  ;;  %v13989_v57 = vld [vmem:[#allocation34_spill] sm:$0xff] }
 0x64b   :  { %v4292_v60 = vcombine.low %v4284_v14, %v4291_v7  ;;  %v13990_v14 = vld [vmem:[#allocation21_spill] sm:$0xff]  ;;  %v13991_v7 = vld [vmem:[#allocation32_spill] sm:$0xff] }
 0x64d   :  { %v11644_v25 = vmul.f32 %v8819_v16, %v4292_v60  ;;  %v13992_v60 = vld [vmem:[#allocation24_spill] sm:$0xff] }
 0x64e   :  { %v13993_v16 = vld [vmem:[#allocation36_spill] sm:$0xff] }
 0x64f   :  { %v4399_v28 = vrot.slane %v11644_v25, %v13973_v3 }
 0x651   :  { %v4407_v26 = vcombine.high %v4399_v28, %v4399_v28  ;;  %v11648_v33 = vand.u32 4294901760, %v4399_v28 }
 0x653   :  { %13974 = vst [vmem:[#allocation43_spill] sm:$0xff] %v11648_v33  ;;  %v11650_v20 = vand.u32 4294901760, %v4407_v26  ;;  %v11653_v34 = vsub.f32 %v4399_v28, %v11648_v33  ;;  %v13994_v28 = vld [vmem:[#allocation16_spill] sm:$0xff] }
 0x655   :  { %4750 = vmatprep.mubr.f32.mxu1 %v11650_v20  ;;  %v4510_v50 = vsub.f32 %v4407_v26, %v11650_v20  ;;  %v4517_v47 = vand.u32 4294901760, %v11653_v34  ;;  %v13995_v26 = vld [vmem:[#allocation38_spill] sm:$0xff] }
 0x656   :  { %4752 = vmatmul.mubr.f32.vlgmr.msra.gmra.mxu1 %v11648_v33  ;;  %v14002_v33 = vld [vmem:[#allocation35_spill] sm:$0xff] }
 0x657   :  { %8237 = vmatpush3.msra.mxu1 %v11229_v17  ;;  %v4511_v40 = vand.u32 4294901760, %v4510_v50  ;;  %v4518_v29 = vsub.f32 %v11653_v34, %v4517_v47 }
 0x658   :  { %8238 = vmatprep.subr.mxu1 %v11237_v43 }
 0x659   :  { %8239 = vmatpush3.msra.mxu1 %v11246_v30  ;;  %4994 = vmatprep.mubr.f32.mxu1 %v4511_v40  ;;  %v4512_v62 = vsub.f32 %v4510_v50, %v4511_v40  ;;  %v4519_v41 = vand.u32 4294901760, %v4518_v29  ;;  %v13997_v40 = vld [vmem:[#allocation40_spill] sm:$0xff]  ;;  %v13998_v29 = vld [vmem:[#allocation23_spill] sm:$0xff] }
 0x65a   :  { %8240 = vmatprep.subr.mxu1 %v11256_v36 }
 0x65b   :  { %8241 = vmatpush3.msra.mxu1 %v11266_v46  ;;  %v4513_v53 = vand.u32 4294901760, %v4512_v62  ;;  %v13999_v62 = vld [vmem:[#allocation22_spill] sm:$0xff] }
 0x65c   :  { %8242 = vmatprep.subr.mxu1 %v11279_v21 }
 0x65d   :  { %8243 = vmatpush3.msra.mxu1 %v11292_v10  ;;  %4514 = vmatprep.mubr.f32.mxu0 %v4513_v53  ;;  %v14000_v53 = vld [vmem:[#allocation25_spill] sm:$0xff] }
 0x65e   :  { %8244 = vmatprep.subr.mxu1 %v11324_v5  ;;  %4520 = vmatmul.mubr.f32.vlgmr.msra.gmra.mxu0 %v4519_v41  ;;  %v14001_v41 = vld [vmem:[#allocation33_spill] sm:$0xff] }
 0x65f   :  { %8202 = vmatpush3.msra.mxu0 %v11244_v24  ;;  %8245 = vmatpush3.msra.mxu1 %v11333_v37 }
 0x660   :  { %8203 = vmatprep.subr.mxu0 %v11254_v39  ;;  %4887 = vmatprep.mubr.f32.mxu0 %v4510_v50  ;;  %v13996_v50 = vld [vmem:[#allocation19_spill] sm:$0xff] }
 0x661   :  { %8246 = vmatprep.subr.mxu1 %v11344_v45  ;;  %8204 = vmatpush3.msra.mxu0 %v11264_v52 }
 0x662   :  { %8247 = vmatpush3.msra.mxu1 %v11356_v22  ;;  %8205 = vmatprep.subr.mxu0 %v11277_v11 }
 0x663   :  { %8248 = vmatprep.subr.mxu1 %v11366_v9  ;;  %8206 = vmatpush3.msra.mxu0 %v11290_v56 }
 0x664   :  { %8249 = vmatpush3.msra.mxu1 %v11376_v49  ;;  %8207 = vmatprep.subr.mxu0 %v11303_v63 }
 0x665   :  { %8250 = vmatprep.subr.mxu1 %v11386_v51  ;;  %8208 = vmatpush3.msra.mxu0 %v11314_v55 }
 0x666   :  { %8251 = vmatpush3.msra.mxu1 %v11396_v1  ;;  %8209 = vmatprep.subr.mxu0 %v11342_v35 }
 0x667   :  { %8252 = vmatprep.subr.mxu1 %v11428_v58  ;;  %8210 = vmatpush3.msra.mxu0 %v11354_v2 }
 0x668   :  { %8253 = vmatpush3.msra.mxu1 %v11437_v6  ;;  %8211 = vmatprep.subr.mxu0 %v11364_v19 }
 0x669   :  { %8254 = vmatprep.subr.mxu1 %v11448_v13  ;;  %8212 = vmatpush3.msra.mxu0 %v11374_v59 }
 0x66a   :  { %8255 = vmatpush3.msra.mxu1 %v11460_v27  ;;  %8213 = vmatprep.subr.mxu0 %v11384_v38 }
 0x66b   :  { %8256 = vmatprep.subr.mxu1 %v13975_v61  ;;  %8214 = vmatpush3.msra.mxu0 %v13976_v54 }
 0x66c   :  { %8257 = vmatpush3.msra.mxu1 %v13977_v12  ;;  %8215 = vmatprep.subr.mxu0 %v13978_v23 }
 0x66d   :  { %8258 = vmatprep.subr.mxu1 %v13979_v15  ;;  %8216 = vmatpush3.msra.mxu0 %v13980_v4 }
 0x66e   :  { %8259 = vmatpush3.msra.mxu1 %v13981_v18  ;;  %8217 = vmatprep.subr.mxu0 %v13982_v32 }
 0x66f   :  { %8260 = vmatprep.subr.mxu1 %v13983_v48  ;;  %8218 = vmatpush3.msra.mxu0 %v13984_v0 }
 0x670   :  { %8261 = vmatpush3.msra.mxu1 %v13985_v42  ;;  %8219 = vmatprep.subr.mxu0 %v13986_v8 }
 0x671   :  { %8262 = vmatprep.subr.mxu1 %v13987_v44  ;;  %8220 = vmatpush3.msra.mxu0 %v13988_v31 }
 0x672   :  { %8263 = vmatpush3.msra.mxu1 %v13989_v57  ;;  %8221 = vmatprep.subr.mxu0 %v13990_v14 }
 0x673   :  { %8264 = vmatprep.subr.mxu1 %v13991_v7  ;;  %8222 = vmatpush3.msra.mxu0 %v13992_v60 }
 0x674   :  { %8265 = vmatpush3.msra.mxu1 %v13993_v16  ;;  %8223 = vmatprep.subr.mxu0 %v13994_v28 }
 0x675   :  { %8266 = vmatprep.subr.mxu1 %v13995_v26  ;;  %8224 = vmatpush3.msra.mxu0 %v13996_v50 }
 0x676   :  { %8267 = vmatpush3.msra.mxu1 %v13997_v40  ;;  %8225 = vmatprep.subr.mxu0 %v13998_v29  ;;  %v14003_v29 = vld [vmem:[#allocation37_spill] sm:$0xff] }
 0x677   :  { %4998 = vmatmul.mubr.f32.vlgmr.msra.gmra.mxu1 %v4517_v47  ;;  %8306 = vmatprep.subr.mxu1 %v13999_v62  ;;  %v14004_v47 = vld [vmem:[#allocation39_spill] sm:$0xff]  ;;  %v14005_v62 = vld [vmem:[#allocation41_spill] sm:$0xff] }
 0x678   :  { %8226 = vmatpush3.msra.mxu0 %v14000_v53  ;;  %8307 = vmatpush3.msra.mxu1 %v11229_v17  ;;  %v4390_v17 = vld [vmem:[%s13203_s8 + $0x1f8] sm:$0xff] }
 0x679   :  { %5268 = vmatprep.mubr.f32.mxu1 %v11650_v20  ;;  %8227 = vmatprep.subr.mxu0 %v14001_v41 }
 0x67a   :  { %8308 = vmatprep.subr.mxu1 %v11237_v43  ;;  %8228 = vmatpush3.msra.mxu0 %v14002_v33  ;;  %v14006_v43 = vld [vmem:[#allocation42_spill] sm:$0xff] }
 0x67b   :  { %8309 = vmatpush3.msra.mxu1 %v11246_v30  ;;  %8229 = vmatprep.subr.mxu0 %v14003_v29  ;;  %v11739_v30 = vand.u32 4294901760, %v4390_v17 }
 0x67c   :  { %8310 = vmatprep.subr.mxu1 %v11256_v36  ;;  %8230 = vmatpush3.msra.mxu0 %v14004_v47  ;;  %v4374_v36 = vld [vmem:[%s13203_s8 + $0x178] sm:$0xff] }
 0x67d   :  { %8311 = vmatpush3.msra.mxu1 %v11266_v46  ;;  %8231 = vmatprep.subr.mxu0 %v14005_v62  ;;  %v14007_v47 = vld [vmem:[#allocation8_spill] sm:$0xff]  ;;  %v14009_v46 = vand.u32 4294901760, %v11244_v24  ;;  %v14011_v24 = vand.u32 4294901760, %v11264_v52  ;;  %v4392_v52 = vcombine.high %v11644_v25, %v11644_v25 }
 0x67e   :  { %8312 = vmatprep.subr.mxu1 %v11279_v21  ;;  %8232 = vmatpush3.msra.mxu0 %v14006_v43  ;;  %v14008_v29 = vand.u32 4294901760, %v14007_v47  ;;  %v4389_v21 = vld [vmem:[%s13203_s8 + $0x1f0] sm:$0xff]  ;;  %v14013_v47 = vand.u32 4294901760, %v11290_v56  ;;  %v4371_v56 = vld [vmem:[%s13203_s8 + $0x160] sm:$0xff] }
 0x67f   :  { %8313 = vmatpush3.msra.mxu1 %v11292_v10  ;;  %4890 = vmatmul.mubr.f32.vlgmr.msra.gmra.mxu0 %v11653_v34  ;;  %v14010_v10 = vand.u32 4294901760, %v11254_v39  ;;  %v11756_v34 = vand.u32 4294901760, %v4374_v36  ;;  %v14012_v39 = vand.u32 4294901760, %v11277_v11  ;;  %v4387_v11 = vld [vmem:[%s13203_s8 + $0x1e0] sm:$0xff] }
 0x680   :  { %8271 = vmatprep.subr.mxu0 %v14008_v29  ;;  %8314 = vmatprep.subr.mxu1 %v11324_v5  ;;  %v4373_v5 = vld [vmem:[%s13203_s8 + $0x170] sm:$0xff]  ;;  %v11773_v29 = vand.u32 4294901760, %v4389_v21 }
 0x681   :  { %8272 = vmatpush3.msra.mxu0 %v14009_v46  ;;  %5164 = vmatprep.mubr.f32.mxu0 %v11650_v20  ;;  %v11765_v20 = vsub.f32 %v4390_v17, %v11739_v30  ;;  %v11783_v17 = vand.u32 4294901760, %v4373_v5  ;;  %v11792_v46 = vsub.f32 %v4374_v36, %v11756_v34  ;;  %v14017_v36 = vand.u32 4294901760, %v11342_v35 }
 0x682   :  { %8315 = vmatpush3.msra.mxu1 %v11333_v37  ;;  %8273 = vmatprep.subr.mxu0 %v14010_v10  ;;  %v4388_v37 = vld [vmem:[%s13203_s8 + $0x1e8] sm:$0xff] }
 0x683   :  { %8316 = vmatprep.subr.mxu1 %v11344_v45  ;;  %8274 = vmatpush3.msra.mxu0 %v14011_v24  ;;  %v4372_v45 = vld [vmem:[%s13203_s8 + $0x168] sm:$0xff]  ;;  %14015 = vst [vmem:[#allocation15_spill] sm:$0xff] %v11792_v46  ;;  %v11794_v25 = vand.u32 4294901760, %v4388_v37  ;;  %v13509_v10 = vand.u32 4294901760, %v11765_v20  ;;  %v11812_v24 = vsub.f32 %v4389_v21, %v11773_v29  ;;  %v11826_v35 = vsub.f32 %v4373_v5, %v11783_v17  ;;  %v4385_v21 = vld [vmem:[%s13203_s8 + $0x1d0] sm:$0xff] }
 0x684   :  { %8317 = vmatpush3.msra.mxu1 %v11356_v22  ;;  %8275 = vmatprep.subr.mxu0 %v14012_v39  ;;  %v14014_v22 = vand.u32 4294901760, %v11303_v63  ;;  %v4386_v63 = vld [vmem:[%s13203_s8 + $0x1d8] sm:$0xff]  ;;  %v14019_v39 = vand.u32 4294901760, %v11354_v2  ;;  %v13510_v2 = vand.u32 4294901760, %v11792_v46  ;;  %v4369_v5 = vld [vmem:[%s13203_s8 + $0x150] sm:$0xff] }
 0x685   :  { %8318 = vmatprep.subr.mxu1 %v11366_v9  ;;  %8276 = vmatpush3.msra.mxu0 %v14013_v47  ;;  %v14016_v9 = vand.u32 4294901760, %v11314_v55  ;;  %14018 = vst [vmem:[#allocation11_spill] sm:$0xff] %v11812_v24  ;;  %v4370_v55 = vld [vmem:[%s13203_s8 + $0x158] sm:$0xff]  ;;  %v11823_v47 = vrot.slane %v4392_v52, %v13973_v3  ;;  %14020 = vst [vmem:[#allocation18_spill] sm:$0xff] %v11826_v35  ;;  %v11840_v52 = vand.u32 4294901760, %v4386_v63 }
 0x686   :  { %8319 = vmatpush3.msra.mxu1 %v11376_v49  ;;  %8277 = vmatprep.subr.mxu0 %v14014_v22  ;;  %v11803_v49 = vand.u32 4294901760, %v4372_v45  ;;  %v14021_v22 = vand.u32 4294901760, %v11364_v19  ;;  %v11851_v19 = vsub.f32 %v11765_v20, %v13509_v10  ;;  %v4383_v10 = vld [vmem:[%s13203_s8 + $0x1c0] sm:$0xff] }
 0x687   :  { %8320 = vmatprep.subr.mxu1 %v11386_v51  ;;  %8278 = vmatpush3.msra.mxu0 %v14016_v9  ;;  %v11814_v51 = vand.u32 4294901760, %v4387_v11  ;;  %v14023_v9 = vand.u32 4294901760, %v11374_v59  ;;  %v14031_v59 = vand.u32 4294901760, %v13980_v4  ;;  %v14034_v4 = vand.u32 4294901760, %v11812_v24 }
 0x688   :  { %8321 = vmatpush3.msra.mxu1 %v11396_v1  ;;  %8279 = vmatprep.subr.mxu0 %v14017_v36  ;;  %v11828_v1 = vand.u32 4294901760, %v4371_v56  ;;  %v4384_v36 = vld [vmem:[%s13203_s8 + $0x1c8] sm:$0xff] }
 0x689   :  { %8322 = vmatprep.subr.mxu1 %v11428_v58  ;;  %8280 = vmatpush3.msra.mxu0 %v14019_v39  ;;  %v11838_v58 = vsub.f32 %v4388_v37, %v11794_v25  ;;  %v11856_v37 = vand.u32 4294901760, %v4370_v55  ;;  %v11866_v39 = vsub.f32 %v4387_v11, %v11814_v51  ;;  %v11882_v11 = vand.u32 4294901760, %v4369_v5 }
 0x68a   :  { %8323 = vmatpush3.msra.mxu1 %v11437_v6  ;;  %8281 = vmatprep.subr.mxu0 %v14021_v22  ;;  %v11854_v6 = vsub.f32 %v4372_v45, %v11803_v49  ;;  %v11868_v22 = vand.u32 4294901760, %v4385_v21  ;;  %v4368_v45 = vld [vmem:[%s13203_s8 + $0x148] sm:$0xff] }
 0x68b   :  { %14022 = vst [vmem:[#allocation17_spill] sm:$0xff] %v11838_v58  ;;  %8324 = vmatprep.subr.mxu1 %v11448_v13  ;;  %8282 = vmatpush3.msra.mxu0 %v14023_v9  ;;  %v14025_v13 = vand.u32 4294901760, %v11384_v38  ;;  %14026 = vst [vmem:[#allocation13_spill] sm:$0xff] %v11866_v39  ;;  %v14027_v9 = vand.u32 4294901760, %v13976_v54  ;;  %v4408_v38 = vcombine.high %v11823_v47, %v11823_v47 }
 0x68c   :  { %14024 = vst [vmem:[#allocation30_spill] sm:$0xff] %v11854_v6  ;;  %8325 = vmatpush3.msra.mxu1 %v11460_v27  ;;  %v11893_v54 = vsub.f32 %v11792_v46, %v13510_v2  ;;  %v11899_v27 = vand.u32 4294901760, %v4384_v36  ;;  %v11909_v2 = vand.u32 4294901760, %v4368_v45 }
 0x68d   :  { %8283 = vmatprep.subr.mxu0 %v14025_v13  ;;  %8326 = vmatprep.subr.mxu1 %v13975_v61  ;;  %v11880_v13 = vsub.f32 %v4371_v56, %v11828_v1  ;;  %v14029_v61 = vand.u32 4294901760, %v13978_v23  ;;  %v11897_v56 = vsub.f32 %v4386_v63, %v11840_v52  ;;  %v4367_v63 = vld [vmem:[%s13203_s8 + $0x140] sm:$0xff]  ;;  %v11926_v23 = vand.u32 4294901760, %v4383_v10 }
 0x68e   :  { %8284 = vmatpush3.msra.mxu0 %v14027_v9  ;;  %8327 = vmatpush3.msra.mxu1 %v13977_v12  ;;  %v14036_v9 = vand.u32 4294901760, %v13984_v0  ;;  %v11940_v12 = vsub.f32 %v4369_v5, %v11882_v11  ;;  %v11954_v3 = vand.u32 4294901760, %v4367_v63  ;;  %v14043_v5 = vand.u32 4294901760, %v13988_v31 }
 0x68f   :  { %14028 = vst [vmem:[#allocation26_spill] sm:$0xff] %v11880_v13  ;;  %8285 = vmatprep.subr.mxu0 %v14029_v61  ;;  %14030 = vst [vmem:[#allocation9_spill] sm:$0xff] %v11897_v56  ;;  %8328 = vmatprep.subr.mxu1 %v13979_v15  ;;  %v11907_v61 = vsub.f32 %v4370_v55, %v11856_v37  ;;  %v14033_v15 = vand.u32 4294901760, %v13982_v32  ;;  %v11924_v55 = vsub.f32 %v4385_v21, %v11868_v22 }
 0x690   :  { %8286 = vmatpush3.msra.mxu0 %v14031_v59  ;;  %8329 = vmatpush3.msra.mxu1 %v13981_v18  ;;  %v11920_v59 = vsub.f32 %v11812_v24, %v14034_v4  ;;  %v11931_v18 = vand.u32 4294901760, %v4408_v38  ;;  %v14038_v32 = vand.u32 4294901760, %v11826_v35  ;;  %v13512_v4 = vand.u32 4294901760, %v11880_v13  ;;  %14039 = vst [vmem:[#allocation10_spill] sm:$0xff] %v11940_v12 }
 0x691   :  { %14032 = vst [vmem:[#allocation12_spill] sm:$0xff] %v11907_v61  ;;  %8287 = vmatprep.subr.mxu0 %v14033_v15  ;;  %14035 = vst [vmem:[#allocation6_spill] sm:$0xff] %v11924_v55  ;;  %8330 = vmatprep.subr.mxu1 %v13983_v48  ;;  %v14040_v21 = vand.u32 4294901760, %v13986_v8  ;;  %v14041_v48 = vand.u32 4294901760, %v11838_v58  ;;  %v14044_v8 = vand.u32 4294901760, %v11854_v6  ;;  %v14047_v31 = vand.u32 4294901760, %v11866_v39 }
 0x692   :  { %8288 = vmatpush3.msra.mxu0 %v14036_v9  ;;  %14037 = vst [vmem:[#allocation14_spill] sm:$0xff] %v11931_v18  ;;  %v11936_v15 = vsub.f32 %v11826_v35, %v14038_v32  ;;  %8331 = vmatpush3.msra.mxu1 %v13985_v42  ;;  %v11952_v32 = vsub.f32 %v4384_v36, %v11899_v27  ;;  %v5392_v42 = vand.u32 4294901760, %v11893_v54  ;;  %v14046_v36 = vand.u32 4294901760, %v13990_v14 }
 0x693   :  { %8289 = vmatprep.subr.mxu0 %v14040_v21  ;;  %v11948_v0 = vsub.f32 %v11838_v58, %v14041_v48  ;;  %8332 = vmatprep.subr.mxu1 %v13987_v44  ;;  %v11963_v21 = vsub.f32 %v11854_v6, %v14044_v8  ;;  %v13513_v48 = vand.u32 4294901760, %v11907_v61  ;;  %v11967_v9 = vsub.f32 %v4368_v45, %v11909_v2  ;;  %v4382_v45 = vld [vmem:[%s13203_s8 + $0x1b8] sm:$0xff]  ;;  %v4377_v6 = vld [vmem:[%s13203_s8 + $0x190] sm:$0xff] }
 0x694   :  { %14042 = vst [vmem:[#allocation27_spill] sm:$0xff] %v11952_v32  ;;  %8290 = vmatpush3.msra.mxu0 %v14043_v5  ;;  %8333 = vmatpush3.msra.mxu1 %v13989_v57  ;;  %v5511_v44 = vand.u32 4294901760, %v11920_v59  ;;  %v11976_v54 = vsub.f32 %v11866_v39, %v14047_v31  ;;  %v13516_v5 = vand.u32 4294901760, %v11924_v55  ;;  %v11980_v8 = vsub.f32 %v4383_v10, %v11926_v23  ;;  %v4366_v31 = vld [vmem:[%s13203_s8 + $0x138] sm:$0xff]  ;;  %v4381_v10 = vld [vmem:[%s13203_s8 + $0x1b0] sm:$0xff] }
 0x695   :  { %14045 = vst [vmem:[#allocation31_spill] sm:$0xff] %v11967_v9  ;;  %8291 = vmatprep.subr.mxu0 %v14046_v36  ;;  %8334 = vmatprep.subr.mxu1 %v13991_v7  ;;  %v14049_v57 = vand.u32 4294901760, %v13992_v60  ;;  %v5399_v14 = vand.u32 4294901760, %v11936_v15  ;;  %v11992_v59 = vsub.f32 %v11880_v13, %v13512_v4  ;;  %v11995_v36 = vsub.f32 %v4408_v38, %v11931_v18  ;;  %v4380_v38 = vld [vmem:[%s13203_s8 + $0x1a8] sm:$0xff]  ;;  %v4362_v13 = vld [vmem:[%s13203_s8 + $0x118] sm:$0xff] }
 0x696   :  { %14048 = vst [vmem:[#allocation34_spill] sm:$0xff] %v11980_v8  ;;  %8335 = vmatpush3.msra.mxu1 %v13993_v16  ;;  %v14050_v7 = vand.u32 4294901760, %v13994_v28  ;;  %v5518_v60 = vand.u32 4294901760, %v11948_v0  ;;  %v14051_v15 = vand.u32 4294901760, %v11897_v56  ;;  %v12012_v4 = vsub.f32 %v4367_v63, %v11954_v3 }
 0x697   :  { %8292 = vmatpush3.msra.mxu0 %v14049_v57  ;;  %8336 = vmatprep.subr.mxu1 %v13995_v26  ;;  %v14053_v16 = vand.u32 4294901760, %v13996_v50  ;;  %v5406_v28 = vand.u32 4294901760, %v11963_v21  ;;  %v12024_v0 = vsub.f32 %v11907_v61, %v13513_v48  ;;  %v12027_v63 = vand.u32 4294901760, %v4382_v45  ;;  %v14054_v26 = vld [vmem:[#allocation23_spill] sm:$0xff] }
 0x698   :  { %8293 = vmatprep.subr.mxu0 %v14050_v7  ;;  %v12008_v57 = vsub.f32 %v11897_v56, %v14051_v15  ;;  %14052 = vst [vmem:[#allocation21_spill] sm:$0xff] %v12012_v4  ;;  %v4365_v15 = vld [vmem:[%s13203_s8 + $0x130] sm:$0xff]  ;;  %8337 = vmatpush3.msra.mxu1 %v13997_v40  ;;  %v14055_v50 = vand.u32 4294901760, %v14054_v26  ;;  %v5525_v21 = vand.u32 4294901760, %v11976_v54  ;;  %v12042_v7 = vand.u32 4294901760, %v4366_v31 }
 0x699   :  { %8294 = vmatpush3.msra.mxu0 %v14053_v16  ;;  %v12039_v16 = vsub.f32 %v11924_v55, %v13516_v5  ;;  %v14056_v61 = vld [vmem:[#allocation43_spill] sm:$0xff]  ;;  %v14057_v40 = vand.u32 4294901760, %v11851_v19  ;;  %v5413_v54 = vand.u32 4294901760, %v11992_v59  ;;  %v12057_v48 = vand.u32 4294901760, %v4381_v10 }
 0x69a   :  { %8295 = vmatprep.subr.mxu0 %v14055_v50  ;;  %5270 = vmatmul.mubr.f32.vlgmr.msra.gmra.mxu1 %v14056_v61  ;;  %v14058_v50 = vand.u32 4294901760, %v11940_v12  ;;  %v4364_v55 = vld [vmem:[%s13203_s8 + $0x128] sm:$0xff]  ;;  %v14060_v56 = vand.u32 4294901760, %v14000_v53  ;;  %v5532_v19 = vand.u32 4294901760, %v12008_v57  ;;  %v14061_v59 = vand.u32 4294901760, %v11952_v32 }
 0x69b   :  { %8376 = vmatprep.subr.mxu1 %v14057_v40  ;;  %14059 = vst [vmem:[#allocation32_spill] sm:$0xff] %v12057_v48  ;;  %v12071_v26 = vand.u32 4294901760, %v4365_v15  ;;  %5612 = vmatprep.mubr.f32.mxu1 %v11931_v18  ;;  %v14062_v53 = vand.u32 4294901760, %v14001_v41  ;;  %v14065_v41 = vand.u32 4294901760, %v14002_v33  ;;  %v12104_v18 = vand.u32 4294901760, %v4364_v55 }
 0x69c   :  { %v12055_v5 = vsub.f32 %v11940_v12, %v14058_v50  ;;  %8296 = vmatpush3.msra.mxu0 %v14060_v56  ;;  %8377 = vmatpush3.msra.mxu1 %v5392_v42  ;;  %v12068_v40 = vsub.f32 %v11952_v32, %v14061_v59  ;;  %v4379_v12 = vld [vmem:[%s13203_s8 + $0x1a0] sm:$0xff]  ;;  %v5420_v56 = vand.u32 4294901760, %v12024_v0  ;;  %v14063_v42 = vand.u32 4294901760, %v11967_v9 }
 0x69d   :  { %8297 = vmatprep.subr.mxu0 %v14062_v53  ;;  %v12086_v59 = vsub.f32 %v4382_v45, %v12027_v63  ;;  %v12088_v50 = vand.u32 4294901760, %v4380_v38  ;;  %v4363_v32 = vld [vmem:[%s13203_s8 + $0x120] sm:$0xff]  ;;  %8378 = vmatprep.subr.mxu1 %v5511_v44  ;;  %v5539_v0 = vand.u32 4294901760, %v12039_v16  ;;  %v14066_v53 = vand.u32 4294901760, %v11980_v8 }
 0x69e   :  { %v12083_v57 = vsub.f32 %v11967_v9, %v14063_v42  ;;  %8298 = vmatpush3.msra.mxu0 %v14065_v41  ;;  %v12102_v45 = vsub.f32 %v4366_v31, %v12042_v7  ;;  %v4378_v9 = vld [vmem:[%s13203_s8 + $0x198] sm:$0xff]  ;;  %8379 = vmatpush3.msra.mxu1 %v5399_v14  ;;  %v14070_v16 = vand.u32 4294901760, %v11995_v36  ;;  %v12118_v31 = vand.u32 4294901760, %v4379_v12  ;;  %v14072_v14 = vld [vmem:[#allocation39_spill] sm:$0xff] }
 0x69f   :  { %14064 = vst [vmem:[#allocation24_spill] sm:$0xff] %v12086_v59  ;;  %v12099_v42 = vsub.f32 %v11980_v8, %v14066_v53  ;;  %v14068_v44 = vld [vmem:[#allocation37_spill] sm:$0xff]  ;;  %v5427_v53 = vand.u32 4294901760, %v12055_v5  ;;  %v12116_v8 = vsub.f32 %v4381_v10, %v12057_v48  ;;  %8380 = vmatprep.subr.mxu1 %v5518_v60  ;;  %v14073_v39 = vand.u32 4294901760, %v14072_v14 }
 0x6a0   :  { %14067 = vst [vmem:[#allocation36_spill] sm:$0xff] %v12102_v45  ;;  %v14069_v33 = vand.u32 4294901760, %v14068_v44  ;;  %v5374_v41 = vsub.f32 %v11995_v36, %v14070_v16  ;;  %v5546_v44 = vand.u32 4294901760, %v12068_v40  ;;  %v12132_v5 = vsub.f32 %v4365_v15, %v12071_v26  ;;  %8381 = vmatpush3.msra.mxu1 %v5406_v28  ;;  %v4361_v15 = vld [vmem:[%s13203_s8 + $0x110] sm:$0xff] }
 0x6a1   :  { %14071 = vst [vmem:[#allocation16_spill] sm:$0xff] %v12116_v8  ;;  %v12134_v10 = vand.u32 4294901760, %v4363_v32  ;;  %v14075_v60 = vand.u32 4294901760, %v14005_v62  ;;  %v13541_v40 = vand.u32 4294901760, %v12086_v59  ;;  %v12144_v14 = vsub.f32 %v4380_v38, %v12088_v50  ;;  %8382 = vmatprep.subr.mxu1 %v5525_v21  ;;  %v4376_v38 = vld [vmem:[%s13203_s8 + $0x188] sm:$0xff] }
 0x6a2   :  { %8299 = vmatprep.subr.mxu0 %v14069_v33  ;;  %v14074_v33 = vand.u32 4294901760, %v12012_v4  ;;  %v5553_v62 = vand.u32 4294901760, %v12099_v42  ;;  %8383 = vmatpush3.msra.mxu1 %v5413_v54  ;;  %v5375_v21 = vand.u32 4294901760, %v5374_v41  ;;  %v12168_v42 = vand.u32 4294901760, %v4377_v6 }
 0x6a3   :  { %8300 = vmatpush3.msra.mxu0 %v14073_v39  ;;  %v5434_v39 = vand.u32 4294901760, %v12083_v57  ;;  %v12156_v57 = vsub.f32 %v4364_v55, %v12104_v18  ;;  %v4360_v55 = vld [vmem:[%s13203_s8 + $0x108] sm:$0xff]  ;;  %8384 = vmatprep.subr.mxu1 %v5532_v19  ;;  %v12179_v41 = vand.u32 4294901760, %v4361_v15  ;;  %v5559_v19 = vsub.f32 %v12086_v59, %v13541_v40 }
 0x6a4   :  { %v12129_v16 = vsub.f32 %v12012_v4, %v14074_v33  ;;  %8301 = vmatprep.subr.mxu0 %v14075_v60  ;;  %v12146_v33 = vand.u32 4294901760, %v4378_v9  ;;  %v14076_v4 = vand.u32 4294901760, %v14006_v43  ;;  %v12158_v60 = vand.u32 4294901760, %v4362_v13  ;;  %v4359_v43 = vld [vmem:[%s13203_s8 + $0x100] sm:$0xff]  ;;  %8385 = vmatpush3.msra.mxu1 %v5420_v56 }
 0x6a5   :  { %8386 = vmatprep.subr.mxu1 %v5539_v0  ;;  %v14078_v59 = vand.u32 4294901760, %v12116_v8  ;;  %v12213_v24 = vsub.f32 %v4377_v6, %v12168_v42  ;;  %v5560_v6 = vand.u32 4294901760, %v5559_v19  ;;  %v14080_v35 = vand.u32 4294901760, %v12144_v14 }
 0x6a6   :  { %8302 = vmatpush3.msra.mxu0 %v14076_v4  ;;  %v12166_v4 = vsub.f32 %v4379_v12, %v12118_v31  ;;  %v5441_v28 = vand.u32 4294901760, %v12129_v16  ;;  %v4375_v12 = vld [vmem:[%s13203_s8 + $0x180] sm:$0xff]  ;;  %v12190_v54 = vsub.f32 %v4378_v9, %v12146_v33  ;;  %v12203_v16 = vsub.f32 %v4362_v13, %v12158_v60  ;;  %8387 = vmatpush3.msra.mxu1 %v5427_v53 }
 0x6a7   :  { %5166 = vmatmul.mubr.f32.vlgmr.msra.gmra.mxu0 %v14056_v61  ;;  %8341 = vmatprep.subr.mxu0 %v11739_v30  ;;  %v12177_v61 = vsub.f32 %v4363_v32, %v12134_v10  ;;  %v12192_v32 = vand.u32 4294901760, %v4376_v38  ;;  %v12205_v9 = vand.u32 4294901760, %v4360_v55  ;;  %v5566_v56 = vsub.f32 %v12116_v8, %v14078_v59 }
 0x6a8   :  { %8342 = vmatpush3.msra.mxu0 %v11756_v34  ;;  %5376 = vmatprep.mubr.f32.mxu0 %v5375_v21  ;;  %v14077_v21 = vand.u32 4294901760, %v12102_v45  ;;  %v14079_v13 = vand.u32 4294901760, %v12132_v5  ;;  %v12225_v59 = vand.u32 4294901760, %v4359_v43  ;;  %v5573_v53 = vsub.f32 %v12144_v14, %v14080_v35 }
 0x6a9   :  { %8343 = vmatprep.subr.mxu0 %v11773_v29  ;;  %8388 = vmatprep.subr.mxu1 %v5546_v44  ;;  %v12233_v46 = vsub.f32 %v4376_v38, %v12192_v32  ;;  %v12241_v19 = vsub.f32 %v4360_v55, %v12205_v9  ;;  %v5567_v35 = vand.u32 4294901760, %v5566_v56  ;;  %v14082_v38 = vand.u32 4294901760, %v12166_v4 }
 0x6aa   :  { %v5447_v58 = vsub.f32 %v12102_v45, %v14077_v21  ;;  %8344 = vmatpush3.msra.mxu0 %v11783_v17  ;;  %v12215_v21 = vand.u32 4294901760, %v4375_v12  ;;  %v5454_v0 = vsub.f32 %v12132_v5, %v14079_v13  ;;  %v12223_v45 = vsub.f32 %v4361_v15, %v12179_v41  ;;  %8389 = vmatpush3.msra.mxu1 %v5434_v39 }
 0x6ab   :  { %8345 = vmatprep.subr.mxu0 %v11794_v25  ;;  %v14081_v13 = vand.u32 4294901760, %v12156_v57  ;;  %8390 = vmatprep.subr.mxu1 %v5553_v62  ;;  %v5580_v39 = vsub.f32 %v12166_v4, %v14082_v38  ;;  %v14083_v55 = vand.u32 4294901760, %v12177_v61  ;;  %v12257_v56 = vsub.f32 %v4359_v43, %v12225_v59 }
 0x6ac   :  { %8346 = vmatpush3.msra.mxu0 %v11803_v49  ;;  %v5448_v15 = vand.u32 4294901760, %v5447_v58  ;;  %v12249_v58 = vsub.f32 %v4375_v12, %v12215_v21  ;;  %8391 = vmatpush3.msra.mxu1 %v5441_v28  ;;  %v5574_v38 = vand.u32 4294901760, %v5573_v53  ;;  %v14084_v12 = vand.u32 4294901760, %v12190_v54 }
 0x6ad   :  { %8347 = vmatprep.subr.mxu0 %v11814_v51  ;;  %v5461_v44 = vsub.f32 %v12156_v57, %v14081_v13  ;;  %v5455_v13 = vand.u32 4294901760, %v5454_v0  ;;  %v5468_v62 = vsub.f32 %v12177_v61, %v14083_v55  ;;  %8392 = vmatprep.subr.mxu1 %v5560_v6  ;;  %v14085_v55 = vand.u32 4294901760, %v12203_v16 }
 0x6ae   :  { %8348 = vmatpush3.msra.mxu0 %v11828_v1  ;;  %v5587_v28 = vsub.f32 %v12190_v54, %v14084_v12  ;;  %8393 = vmatpush3.msra.mxu1 %v5448_v15  ;;  %v5581_v6 = vand.u32 4294901760, %v5580_v39  ;;  %v14086_v53 = vand.u32 4294901760, %v12213_v24  ;;  %v14088_v39 = vand.u32 4294901760, %v12233_v46 }
 0x6af   :  { %8349 = vmatprep.subr.mxu0 %v11840_v52  ;;  %v5462_v0 = vand.u32 4294901760, %v5461_v44  ;;  %v5475_v40 = vsub.f32 %v12203_v16, %v14085_v55  ;;  %8394 = vmatprep.subr.mxu1 %v5567_v35  ;;  %v5469_v15 = vand.u32 4294901760, %v5468_v62  ;;  %v14087_v44 = vand.u32 4294901760, %v12223_v45 }
 0x6b0   :  { %8350 = vmatpush3.msra.mxu0 %v11856_v37  ;;  %v5594_v12 = vsub.f32 %v12213_v24, %v14086_v53  ;;  %8395 = vmatpush3.msra.mxu1 %v5455_v13  ;;  %v5588_v35 = vand.u32 4294901760, %v5587_v28  ;;  %v5601_v53 = vsub.f32 %v12233_v46, %v14088_v39  ;;  %v14089_v62 = vand.u32 4294901760, %v12241_v19 }
 0x6b1   :  { %8351 = vmatprep.subr.mxu0 %v11868_v22  ;;  %v5482_v55 = vsub.f32 %v12223_v45, %v14087_v44  ;;  %8396 = vmatprep.subr.mxu1 %v5574_v38  ;;  %v5476_v13 = vand.u32 4294901760, %v5475_v40  ;;  %v14090_v38 = vand.u32 4294901760, %v12249_v58  ;;  %v12292_v43 = vand.u32 4294901760, %v11823_v47 }
 0x6b2   :  { %8352 = vmatpush3.msra.mxu0 %v11882_v11  ;;  %8397 = vmatpush3.msra.mxu1 %v5462_v0  ;;  %v5489_v8 = vsub.f32 %v12241_v19, %v14089_v62  ;;  %v5595_v44 = vand.u32 4294901760, %v5594_v12  ;;  %v14092_v40 = vand.u32 4294901760, %v12257_v56 }
 0x6b3   :  { %8353 = vmatprep.subr.mxu0 %v11899_v27  ;;  %8398 = vmatprep.subr.mxu1 %v5581_v6  ;;  %v5608_v28 = vsub.f32 %v12249_v58, %v14090_v38  ;;  %14091 = vst [vmem:[#allocation38_spill] sm:$0xff] %v12292_v43  ;;  %v5483_v0 = vand.u32 4294901760, %v5482_v55  ;;  %v5602_v6 = vand.u32 4294901760, %v5601_v53  ;;  %v14096_v38 = vld [vmem:[#allocation18_spill] sm:$0xff] }
 0x6b4   :  { %8354 = vmatpush3.msra.mxu0 %v11909_v2  ;;  %8399 = vmatpush3.msra.mxu1 %v5469_v15  ;;  %v5496_v39 = vsub.f32 %v12257_v56, %v14092_v40  ;;  %v5490_v12 = vand.u32 4294901760, %v5489_v8  ;;  %v12303_v15 = vsub.f32 %v11823_v47, %v12292_v43  ;;  %v14093_v47 = vand.u32 4294901760, %v11995_v36  ;;  %v14099_v40 = vld [vmem:[#allocation13_spill] sm:$0xff] }
 0x6b5   :  { %8355 = vmatprep.subr.mxu0 %v11926_v23  ;;  %8400 = vmatprep.subr.mxu1 %v5588_v35  ;;  %v5609_v62 = vand.u32 4294901760, %v5608_v28  ;;  %v14097_v28 = vld [vmem:[#allocation17_spill] sm:$0xff] }
 0x6b6   :  { %8356 = vmatpush3.msra.mxu0 %v11954_v3  ;;  %8401 = vmatpush3.msra.mxu1 %v5476_v13  ;;  %v5497_v55 = vand.u32 4294901760, %v5496_v39  ;;  %v13554_v8 = vand.u32 4294901760, %v12303_v15  ;;  %v14094_v13 = vld [vmem:[#allocation15_spill] sm:$0xff]  ;;  %v14101_v39 = vld [vmem:[#allocation9_spill] sm:$0xff] }
 0x6b7   :  { %8357 = vmatprep.subr.mxu0 %v12027_v63  ;;  %8402 = vmatprep.subr.mxu1 %v5595_v44  ;;  %v14095_v44 = vld [vmem:[#allocation11_spill] sm:$0xff] }
 0x6b8   :  { %8358 = vmatpush3.msra.mxu0 %v12042_v7  ;;  %8403 = vmatpush3.msra.mxu1 %v5483_v0  ;;  %v5380_v35 = vsub.f32 %v12303_v15, %v13554_v8  ;;  %v14098_v0 = vld [vmem:[#allocation30_spill] sm:$0xff]  ;;  %v14109_v8 = vld [vmem:[#allocation29_spill] sm:$0xff] }
 0x6b9   :  { %8359 = vmatprep.subr.mxu0 %v12057_v48  ;;  %8404 = vmatprep.subr.mxu1 %v5602_v6  ;;  %v14102_v6 = vld [vmem:[#allocation12_spill] sm:$0xff] }
 0x6ba   :  { %8360 = vmatpush3.msra.mxu0 %v12071_v26  ;;  %8405 = vmatpush3.msra.mxu1 %v5490_v12  ;;  %v5381_v53 = vand.u32 4294901760, %v5380_v35  ;;  %v14103_v12 = vld [vmem:[#allocation6_spill] sm:$0xff] }
 0x6bb   :  { %8361 = vmatprep.subr.mxu0 %v12088_v50  ;;  %8406 = vmatprep.subr.mxu1 %v5609_v62  ;;  %v14104_v62 = vld [vmem:[#allocation10_spill] sm:$0xff] }
 0x6bc   :  { %8362 = vmatpush3.msra.mxu0 %v12104_v18  ;;  %8407 = vmatpush3.msra.mxu1 %v5497_v55  ;;  %v14105_v55 = vld [vmem:[#allocation27_spill] sm:$0xff]  ;;  %v14107_v35 = vld [vmem:[#allocation34_spill] sm:$0xff] }
 0x6bd   :  { %8363 = vmatprep.subr.mxu0 %v12118_v31  ;;  %5614 = vmatmul.mubr.f32.vlgmr.msra.gmra.mxu1 %v12292_v43  ;;  %v14110_v43 = vld [vmem:[#allocation20_spill] sm:$0xff] }
 0x6be   :  { %8364 = vmatpush3.msra.mxu0 %v12134_v10  ;;  %8446 = vmatprep.subr.mxu1 %v11739_v30 }
 0x6bf   :  { %8365 = vmatprep.subr.mxu0 %v12146_v33  ;;  %8447 = vmatpush3.msra.mxu1 %v11756_v34 }
 0x6c0   :  { %8366 = vmatpush3.msra.mxu0 %v12158_v60  ;;  %5856 = vmatprep.mubr.f32.mxu1 %v14093_v47  ;;  %v14106_v47 = vld [vmem:[#allocation31_spill] sm:$0xff] }
 0x6c1   :  { %8367 = vmatprep.subr.mxu0 %v12168_v42  ;;  %8448 = vmatprep.subr.mxu1 %v11773_v29 }
 0x6c2   :  { %8368 = vmatpush3.msra.mxu0 %v12179_v41  ;;  %8449 = vmatpush3.msra.mxu1 %v11783_v17 }
 0x6c3   :  { %8369 = vmatprep.subr.mxu0 %v12192_v32  ;;  %8450 = vmatprep.subr.mxu1 %v11794_v25 }
 0x6c4   :  { %8370 = vmatpush3.msra.mxu0 %v12205_v9  ;;  %8451 = vmatpush3.msra.mxu1 %v11803_v49 }
 0x6c5   :  { %8371 = vmatprep.subr.mxu0 %v12215_v21  ;;  %8452 = vmatprep.subr.mxu1 %v11814_v51 }
 0x6c6   :  { %8372 = vmatpush3.msra.mxu0 %v12225_v59  ;;  %8453 = vmatpush3.msra.mxu1 %v11828_v1 }
 0x6c7   :  { %5382 = vmatmul.mubr.f32.vlgmr.msra.gmra.mxu0 %v5381_v53  ;;  %8411 = vmatprep.subr.mxu0 %v11765_v20  ;;  %v14108_v53 = vld [vmem:[#allocation21_spill] sm:$0xff] }
 0x6c8   :  { %8454 = vmatprep.subr.mxu1 %v11840_v52  ;;  %8412 = vmatpush3.msra.mxu0 %v14094_v13 }
 0x6c9   :  { %5749 = vmatprep.mubr.f32.mxu0 %v11995_v36  ;;  %8455 = vmatpush3.msra.mxu1 %v11856_v37  ;;  %v14100_v36 = vld [vmem:[#allocation26_spill] sm:$0xff] }
 0x6ca   :  { %8413 = vmatprep.subr.mxu0 %v14095_v44  ;;  %8456 = vmatprep.subr.mxu1 %v11868_v22 }
 0x6cb   :  { %8414 = vmatpush3.msra.mxu0 %v14096_v38  ;;  %8457 = vmatpush3.msra.mxu1 %v11882_v11 }
 0x6cc   :  { %8415 = vmatprep.subr.mxu0 %v14097_v28  ;;  %8458 = vmatprep.subr.mxu1 %v11899_v27 }
 0x6cd   :  { %8416 = vmatpush3.msra.mxu0 %v14098_v0  ;;  %8459 = vmatpush3.msra.mxu1 %v11909_v2 }
 0x6ce   :  { %8417 = vmatprep.subr.mxu0 %v14099_v40  ;;  %8460 = vmatprep.subr.mxu1 %v11926_v23 }
 0x6cf   :  { %8418 = vmatpush3.msra.mxu0 %v14100_v36  ;;  %8461 = vmatpush3.msra.mxu1 %v11954_v3 }
 0x6d0   :  { %8419 = vmatprep.subr.mxu0 %v14101_v39  ;;  %8462 = vmatprep.subr.mxu1 %v12027_v63 }
 0x6d1   :  { %8420 = vmatpush3.msra.mxu0 %v14102_v6  ;;  %8463 = vmatpush3.msra.mxu1 %v12042_v7 }
 0x6d2   :  { %8421 = vmatprep.subr.mxu0 %v14103_v12  ;;  %8464 = vmatprep.subr.mxu1 %v12057_v48  ;;  %v14111_v48 = vld [vmem:[#allocation7_spill] sm:$0xff] }
 0x6d3   :  { %8422 = vmatpush3.msra.mxu0 %v14104_v62  ;;  %8465 = vmatpush3.msra.mxu1 %v12071_v26  ;;  %v14112_v62 = vcombine.low %v14110_v43, %v14111_v48  ;;  %v8820_v48 = vld [vmem:[%s13195_s0] sm:$0xf] }
 0x6d4   :  { %8423 = vmatprep.subr.mxu0 %v14105_v55  ;;  %8466 = vmatprep.subr.mxu1 %v12088_v50  ;;  %v14113_v55 = vld [vmem:[#allocation24_spill] sm:$0xff] }
 0x6d5   :  { %8424 = vmatpush3.msra.mxu0 %v14106_v47  ;;  %8467 = vmatpush3.msra.mxu1 %v12104_v18  ;;  %v1444_v12 = vrot.slane %v14112_v62, %v14109_v8  ;;  %v14114_v47 = vld [vmem:[#allocation36_spill] sm:$0xff] }
 0x6d6   :  { %8425 = vmatprep.subr.mxu0 %v14107_v35  ;;  %8468 = vmatprep.subr.mxu1 %v12118_v31  ;;  %v14115_v35 = vld [vmem:[#allocation16_spill] sm:$0xff] }
 0x6d7   :  { %8426 = vmatpush3.msra.mxu0 %v14108_v53  ;;  %8469 = vmatpush3.msra.mxu1 %v12134_v10  ;;  %v1446_v43 = vmul.f32 %v8820_v48, %v1444_v12  ;;  %v14116_v12 = vand.u32 4294901760, %v12303_v15  ;;  %v14117_v48 = vld [vmem:[#allocation14_spill] sm:$0xff] }
 0x6d8   :  { %8427 = vmatprep.subr.mxu0 %v14113_v55  ;;  %8470 = vmatprep.subr.mxu1 %v12146_v33 }
 0x6d9   :  { %8428 = vmatpush3.msra.mxu0 %v14114_v47  ;;  %8471 = vmatpush3.msra.mxu1 %v12158_v60  ;;  %v12388_v62 = vrot.slane %v1446_v43, %v14109_v8 }
 0x6da   :  { %8429 = vmatprep.subr.mxu0 %v14115_v35  ;;  %8472 = vmatprep.subr.mxu1 %v12168_v42 }
 0x6db   :  { %8430 = vmatpush3.msra.mxu0 %v12132_v5  ;;  %8473 = vmatpush3.msra.mxu1 %v12179_v41  ;;  %v6145_v8 = vcombine.high %v12388_v62, %v12388_v62 }
 0x6dc   :  { %8431 = vmatprep.subr.mxu0 %v12144_v14  ;;  %8474 = vmatprep.subr.mxu1 %v12192_v32 }
 0x6dd   :  { %8432 = vmatpush3.msra.mxu0 %v12156_v57  ;;  %8475 = vmatpush3.msra.mxu1 %v12205_v9 }
 0x6de   :  { %8433 = vmatprep.subr.mxu0 %v12166_v4  ;;  %8476 = vmatprep.subr.mxu1 %v12215_v21 }
 0x6df   :  { %8434 = vmatpush3.msra.mxu0 %v12177_v61  ;;  %8477 = vmatpush3.msra.mxu1 %v12225_v59 }
 0x6e0   :  { %8435 = vmatprep.subr.mxu0 %v12190_v54  ;;  %5860 = vmatmul.mubr.f32.vlgmr.msra.gmra.mxu1 %v14116_v12  ;;  %v14127_v12 = vand.u32 4294901760, %v14100_v36  ;;  %v4322_v36 = vld [vmem:[%s13202_s7 + $0xd8] sm:$0xff] }
 0x6e1   :  { %8516 = vmatprep.subr.mxu1 %v11739_v30  ;;  %8436 = vmatpush3.msra.mxu0 %v12203_v16  ;;  %v12411_v30 = vand.u32 4294901760, %v6145_v8 }
 0x6e2   :  { %8517 = vmatpush3.msra.mxu1 %v11756_v34  ;;  %6130 = vmatprep.mubr.f32.mxu1 %v14117_v48  ;;  %v14119_v34 = vand.u32 4294901760, %v11765_v20  ;;  %v14121_v20 = vand.u32 4294901760, %v14095_v44  ;;  %v14125_v44 = vand.u32 4294901760, %v14098_v0 }
 0x6e3   :  { %8437 = vmatprep.subr.mxu0 %v12213_v24  ;;  %8518 = vmatprep.subr.mxu1 %v11773_v29  ;;  %14118 = vst [vmem:[#allocation19_spill] sm:$0xff] %v12411_v30  ;;  %v4326_v29 = vld [vmem:[%s13202_s7 + $0xf8] sm:$0xff] }
 0x6e4   :  { %8438 = vmatpush3.msra.mxu0 %v12223_v45  ;;  %8519 = vmatpush3.msra.mxu1 %v11783_v17  ;;  %v14120_v17 = vand.u32 4294901760, %v14094_v13 }
 0x6e5   :  { %8439 = vmatprep.subr.mxu0 %v12233_v46  ;;  %8520 = vmatprep.subr.mxu1 %v11794_v25  ;;  %v4310_v25 = vld [vmem:[%s13202_s7 + $0x78] sm:$0xff] }
 0x6e6   :  { %8440 = vmatpush3.msra.mxu0 %v12241_v19  ;;  %8521 = vmatpush3.msra.mxu1 %v11803_v49  ;;  %v4325_v49 = vld [vmem:[%s13202_s7 + $0xf0] sm:$0xff]  ;;  %v12447_v13 = vand.u32 4294901760, %v4310_v25 }
 0x6e7   :  { %8441 = vmatprep.subr.mxu0 %v12249_v58  ;;  %8522 = vmatprep.subr.mxu1 %v11814_v51  ;;  %v12434_v51 = vsub.f32 %v6145_v8, %v12411_v30  ;;  %v14129_v8 = vand.u32 4294901760, %v14101_v39  ;;  %v4306_v39 = vld [vmem:[%s13202_s7 + $0x58] sm:$0xff] }
 0x6e8   :  { %8442 = vmatpush3.msra.mxu0 %v12257_v56  ;;  %8523 = vmatpush3.msra.mxu1 %v11828_v1  ;;  %v14123_v1 = vand.u32 4294901760, %v14096_v38  ;;  %v12455_v38 = vand.u32 4294901760, %v4325_v49 }
 0x6e9   :  { %5752 = vmatmul.mubr.f32.vlgmr.msra.gmra.mxu0 %v12303_v15  ;;  %8481 = vmatprep.subr.mxu0 %v14119_v34  ;;  %14122 = vst [vmem:[#allocation40_spill] sm:$0xff] %v12434_v51  ;;  %v14124_v15 = vand.u32 4294901760, %v14097_v28  ;;  %v14126_v28 = vand.u32 4294901760, %v14099_v40  ;;  %v13558_v0 = vand.u32 4294901760, %v12434_v51  ;;  %v4307_v40 = vld [vmem:[%s13202_s7 + $0x60] sm:$0xff]  ;;  %v12484_v34 = vsub.f32 %v4310_v25, %v12447_v13 }
 0x6ea   :  { %8524 = vmatprep.subr.mxu1 %v11840_v52  ;;  %8482 = vmatpush3.msra.mxu0 %v14120_v17  ;;  %v12439_v52 = vand.u32 4294901760, %v4326_v29  ;;  %v12495_v17 = vsub.f32 %v4325_v49, %v12455_v38  ;;  %v14131_v25 = vld [vmem:[#allocation6_spill] sm:$0xff]  ;;  %v4321_v49 = vld [vmem:[%s13202_s7 + $0xd0] sm:$0xff] }
 0x6eb   :  { %6026 = vmatprep.mubr.f32.mxu0 %v14117_v48  ;;  %8525 = vmatpush3.msra.mxu1 %v11856_v37  ;;  %v4309_v37 = vld [vmem:[%s13202_s7 + $0x70] sm:$0xff] }
 0x6ec   :  { %8483 = vmatprep.subr.mxu0 %v14121_v20  ;;  %8526 = vmatprep.subr.mxu1 %v11868_v22  ;;  %v4324_v22 = vld [vmem:[%s13202_s7 + $0xe8] sm:$0xff]  ;;  %v12463_v43 = vand.u32 4294901760, %v4309_v37  ;;  %v12473_v48 = vsub.f32 %v4326_v29, %v12439_v52  ;;  %v14130_v29 = vand.u32 4294901760, %v14102_v6  ;;  %v14132_v20 = vand.u32 4294901760, %v14131_v25 }
 0x6ed   :  { %8484 = vmatpush3.msra.mxu0 %v14123_v1  ;;  %8527 = vmatpush3.msra.mxu1 %v11882_v11  ;;  %v4308_v11 = vld [vmem:[%s13202_s7 + $0x68] sm:$0xff]  ;;  %v12513_v6 = vsub.f32 %v12434_v51, %v13558_v0  ;;  %v4303_v51 = vld [vmem:[%s13202_s7 + $0x40] sm:$0xff] }
 0x6ee   :  { %8485 = vmatprep.subr.mxu0 %v14124_v15  ;;  %8528 = vmatprep.subr.mxu1 %v11899_v27  ;;  %v4323_v27 = vld [vmem:[%s13202_s7 + $0xe0] sm:$0xff]  ;;  %14128 = vst [vmem:[#allocation22_spill] sm:$0xff] %v12473_v48  ;;  %v12506_v1 = vsub.f32 %v4309_v37, %v12463_v43  ;;  %v14134_v15 = vld [vmem:[#allocation32_spill] sm:$0xff] }
 0x6ef   :  { %8486 = vmatpush3.msra.mxu0 %v14125_v44  ;;  %8529 = vmatpush3.msra.mxu1 %v11909_v2  ;;  %v12475_v2 = vand.u32 4294901760, %v4324_v22 }
 0x6f0   :  { %8487 = vmatprep.subr.mxu0 %v14126_v28  ;;  %8530 = vmatprep.subr.mxu1 %v11926_v23  ;;  %v12486_v23 = vand.u32 4294901760, %v4308_v11  ;;  %14133 = vst [vmem:[#allocation25_spill] sm:$0xff] %v12506_v1 }
 0x6f1   :  { %8488 = vmatpush3.msra.mxu0 %v14127_v12  ;;  %8531 = vmatpush3.msra.mxu1 %v11954_v3  ;;  %v12497_v3 = vand.u32 4294901760, %v4323_v27  ;;  %v12523_v37 = vsub.f32 %v4324_v22, %v12475_v2  ;;  %v12525_v12 = vand.u32 4294901760, %v4322_v36  ;;  %v4320_v22 = vld [vmem:[%s13202_s7 + $0xc8] sm:$0xff] }
 0x6f2   :  { %8489 = vmatprep.subr.mxu0 %v14129_v8  ;;  %8532 = vmatprep.subr.mxu1 %v12027_v63  ;;  %v12508_v63 = vand.u32 4294901760, %v4307_v40  ;;  %v4305_v8 = vld [vmem:[%s13202_s7 + $0x50] sm:$0xff] }
 0x6f3   :  { %8490 = vmatpush3.msra.mxu0 %v14130_v29  ;;  %8533 = vmatpush3.msra.mxu1 %v12042_v7  ;;  %v14135_v7 = vld [vmem:[#allocation10_spill] sm:$0xff]  ;;  %14137 = vst [vmem:[#allocation33_spill] sm:$0xff] %v12523_v37  ;;  %v14138_v29 = vld [vmem:[#allocation27_spill] sm:$0xff] }
 0x6f4   :  { %8491 = vmatprep.subr.mxu0 %v14132_v20  ;;  %8534 = vmatprep.subr.mxu1 %v14134_v15  ;;  %v14136_v44 = vand.u32 4294901760, %v14135_v7  ;;  %v14139_v25 = vand.u32 4294901760, %v14138_v29  ;;  %v12535_v15 = vsub.f32 %v4308_v11, %v12486_v23  ;;  %v12537_v7 = vand.u32 4294901760, %v4306_v39  ;;  %v4304_v11 = vld [vmem:[%s13202_s7 + $0x48] sm:$0xff] }
 0x6f5   :  { %8535 = vmatpush3.msra.mxu1 %v12071_v26  ;;  %v12547_v29 = vsub.f32 %v4323_v27, %v12497_v3  ;;  %v14144_v20 = vld [vmem:[#allocation34_spill] sm:$0xff]  ;;  %v12562_v27 = vand.u32 4294901760, %v4305_v8 }
 0x6f6   :  { %8492 = vmatpush3.msra.mxu0 %v14136_v44  ;;  %14140 = vst [vmem:[#allocation35_spill] sm:$0xff] %v12535_v15  ;;  %8536 = vmatprep.subr.mxu1 %v12088_v50  ;;  %v14141_v44 = vld [vmem:[#allocation31_spill] sm:$0xff]  ;;  %v14145_v28 = vand.u32 4294901760, %v14144_v20  ;;  %v4319_v26 = vld [vmem:[%s13202_s7 + $0xc0] sm:$0xff]  ;;  %v12579_v50 = vand.u32 4294901760, %v4320_v22 }
 0x6f7   :  { %8493 = vmatprep.subr.mxu0 %v14139_v25  ;;  %v14142_v0 = vand.u32 4294901760, %v14141_v44  ;;  %14143 = vst [vmem:[#allocation41_spill] sm:$0xff] %v12547_v29  ;;  %v12549_v25 = vand.u32 4294901760, %v4321_v49  ;;  %8537 = vmatpush3.msra.mxu1 %v12104_v18  ;;  %v14147_v18 = vand.u32 4294901760, %v14108_v53  ;;  %v12577_v44 = vsub.f32 %v4322_v36, %v12525_v12 }
 0x6f8   :  { %8538 = vmatprep.subr.mxu1 %v12118_v31  ;;  %v14150_v31 = vand.u32 4294901760, %v14113_v55  ;;  %v14151_v53 = vand.u32 4294901760, %v12484_v34  ;;  %v12594_v36 = vsub.f32 %v4306_v39, %v12537_v7  ;;  %v14156_v39 = vand.u32 4294901760, %v14115_v35 }
 0x6f9   :  { %8494 = vmatpush3.msra.mxu0 %v14142_v0  ;;  %v12559_v0 = vsub.f32 %v4307_v40, %v12508_v63  ;;  %14149 = vst [vmem:[#allocation8_spill] sm:$0xff] %v12577_v44  ;;  %8539 = vmatpush3.msra.mxu1 %v12134_v10  ;;  %v12596_v40 = vand.u32 4294901760, %v4304_v11  ;;  %v14154_v10 = vand.u32 4294901760, %v12495_v17  ;;  %v14160_v35 = vand.u32 4294901760, %v12523_v37 }
 0x6fa   :  { %8495 = vmatprep.subr.mxu0 %v14145_v28  ;;  %v14148_v28 = vand.u32 4294901760, %v12473_v48  ;;  %14152 = vst [vmem:[#allocation23_spill] sm:$0xff] %v12594_v36  ;;  %8540 = vmatprep.subr.mxu1 %v12146_v33  ;;  %v14157_v33 = vand.u32 4294901760, %v12506_v1 }
 0x6fb   :  { %14146 = vst [vmem:[#allocation42_spill] sm:$0xff] %v12559_v0  ;;  %8496 = vmatpush3.msra.mxu0 %v14147_v18  ;;  %v12590_v18 = vsub.f32 %v12484_v34, %v14151_v53  ;;  %v12604_v55 = vsub.f32 %v12495_v17, %v14154_v10  ;;  %v12608_v53 = vsub.f32 %v4321_v49, %v12549_v25  ;;  %v14159_v49 = vand.u32 4294901760, %v12132_v5 }
 0x6fc   :  { %v12573_v20 = vsub.f32 %v12473_v48, %v14148_v28  ;;  %8497 = vmatprep.subr.mxu0 %v14150_v31  ;;  %v14153_v48 = vand.u32 4294901760, %v14114_v47  ;;  %v12610_v28 = vand.u32 4294901760, %v4319_v26  ;;  %8541 = vmatpush3.msra.mxu1 %v12158_v60  ;;  %v12618_v47 = vsub.f32 %v12506_v1, %v14157_v33 }
 0x6fd   :  { %14155 = vst [vmem:[#allocation43_spill] sm:$0xff] %v12608_v53  ;;  %v12622_v10 = vsub.f32 %v4305_v8, %v12562_v27  ;;  %v12624_v31 = vand.u32 4294901760, %v4303_v51  ;;  %8542 = vmatprep.subr.mxu1 %v12168_v42  ;;  %v13563_v33 = vand.u32 4294901760, %v12577_v44  ;;  %v14162_v8 = vand.u32 4294901760, %v12144_v14 }
 0x6fe   :  { %8498 = vmatpush3.msra.mxu0 %v14153_v48  ;;  %v6377_v60 = vand.u32 4294901760, %v12573_v20  ;;  %v12637_v48 = vsub.f32 %v4320_v22, %v12579_v50  ;;  %8543 = vmatpush3.msra.mxu1 %v12179_v41  ;;  %v6265_v5 = vand.u32 4294901760, %v12590_v18  ;;  %v14163_v42 = vand.u32 4294901760, %v12535_v15  ;;  %v4318_v22 = vld [vmem:[%s13202_s7 + $0xb8] sm:$0xff] }
 0x6ff   :  { %8499 = vmatprep.subr.mxu0 %v14156_v39  ;;  %14158 = vst [vmem:[#allocation37_spill] sm:$0xff] %v12622_v10  ;;  %v12633_v39 = vsub.f32 %v12523_v37, %v14160_v35  ;;  %v12650_v35 = vsub.f32 %v4304_v11, %v12596_v40  ;;  %8544 = vmatprep.subr.mxu1 %v12192_v32  ;;  %v14165_v14 = vand.u32 4294901760, %v12156_v57  ;;  %v6384_v41 = vand.u32 4294901760, %v12604_v55 }
 0x700   :  { %8500 = vmatpush3.msra.mxu0 %v14159_v49  ;;  %14161 = vst [vmem:[#allocation39_spill] sm:$0xff] %v12637_v48  ;;  %v12646_v20 = vsub.f32 %v12535_v15, %v14163_v42  ;;  %v14166_v18 = vand.u32 4294901760, %v12547_v29  ;;  %v12666_v11 = vsub.f32 %v4319_v26, %v12610_v28  ;;  %v4302_v49 = vld [vmem:[%s13202_s7 + $0x38] sm:$0xff]  ;;  %8545 = vmatpush3.msra.mxu1 %v12205_v9  ;;  %v14168_v57 = vand.u32 4294901760, %v12166_v4  ;;  %v4317_v42 = vld [vmem:[%s13202_s7 + $0xb0] sm:$0xff] }
 0x701   :  { %8501 = vmatprep.subr.mxu0 %v14162_v8  ;;  %14164 = vst [vmem:[#allocation15_spill] sm:$0xff] %v12650_v35  ;;  %v6272_v32 = vand.u32 4294901760, %v12618_v47  ;;  %v14169_v55 = vand.u32 4294901760, %v12559_v0  ;;  %v12682_v26 = vsub.f32 %v4303_v51, %v12624_v31  ;;  %8546 = vmatprep.subr.mxu1 %v12215_v21  ;;  %v14171_v4 = vand.u32 4294901760, %v12177_v61 }
 0x702   :  { %8502 = vmatpush3.msra.mxu0 %v14165_v14  ;;  %v12662_v8 = vsub.f32 %v12547_v29, %v14166_v18  ;;  %14167 = vst [vmem:[#allocation11_spill] sm:$0xff] %v12666_v11  ;;  %v6391_v9 = vand.u32 4294901760, %v12633_v39  ;;  %v12694_v47 = vsub.f32 %v12577_v44, %v13563_v33  ;;  %v12697_v51 = vand.u32 4294901760, %v4318_v22  ;;  %8547 = vmatpush3.msra.mxu1 %v12225_v59  ;;  %v4316_v18 = vld [vmem:[%s13202_s7 + $0xa8] sm:$0xff]  ;;  %v4295_v29 = vld [vmem:[%s13202_s7] sm:$0xff] }
 0x703   :  { %8503 = vmatprep.subr.mxu0 %v14168_v57  ;;  %v12678_v14 = vsub.f32 %v12559_v0, %v14169_v55  ;;  %14170 = vst [vmem:[#allocation18_spill] sm:$0xff] %v12682_v26  ;;  %v4301_v55 = vld [vmem:[%s13202_s7 + $0x30] sm:$0xff]  ;;  %v14172_v61 = vand.u32 4294901760, %v12190_v54  ;;  %v6279_v21 = vand.u32 4294901760, %v12646_v20  ;;  %v14173_v39 = vand.u32 4294901760, %v12594_v36  ;;  %v14174_v44 = vld [vmem:[#allocation38_spill] sm:$0xff]  ;;  %8586 = vmatprep.subr.mxu1 %v6377_v60 }
 0x704   :  { %8504 = vmatpush3.msra.mxu0 %v14171_v4  ;;  %v12712_v57 = vand.u32 4294901760, %v4302_v49  ;;  %6132 = vmatmul.mubr.f32.vlgmr.msra.gmra.mxu1 %v14174_v44  ;;  %v6398_v54 = vand.u32 4294901760, %v12662_v8  ;;  %v14175_v59 = vand.u32 4294901760, %v12608_v53  ;;  %v4300_v33 = vld [vmem:[%s13202_s7 + $0x28] sm:$0xff]  ;;  %v14177_v8 = vand.u32 4294901760, %v12622_v10 }
 0x705   :  { %8505 = vmatprep.subr.mxu0 %v14172_v61  ;;  %v12709_v4 = vsub.f32 %v12594_v36, %v14173_v39  ;;  %v12725_v39 = vand.u32 4294901760, %v4317_v42  ;;  %v14176_v36 = vand.u32 4294901760, %v12203_v16  ;;  %8587 = vmatpush3.msra.mxu1 %v6265_v5  ;;  %v6286_v60 = vand.u32 4294901760, %v12678_v14 }
 0x706   :  { %v12722_v20 = vsub.f32 %v12608_v53, %v14175_v59  ;;  %v12736_v0 = vsub.f32 %v12622_v10, %v14177_v8  ;;  %v12739_v61 = vand.u32 4294901760, %v4301_v55  ;;  %v4315_v53 = vld [vmem:[%s13202_s7 + $0xa0] sm:$0xff]  ;;  %6485 = vmatprep.mubr.f32.mxu1 %v12411_v30  ;;  %v14178_v16 = vand.u32 4294901760, %v12213_v24  ;;  %8588 = vmatprep.subr.mxu1 %v6384_v41 }
 0x707   :  { %8506 = vmatpush3.msra.mxu0 %v14176_v36  ;;  %v6405_v36 = vand.u32 4294901760, %v12694_v47  ;;  %v14179_v5 = vand.u32 4294901760, %v12637_v48  ;;  %v12754_v8 = vsub.f32 %v4318_v22, %v12697_v51  ;;  %v12756_v59 = vand.u32 4294901760, %v4316_v18  ;;  %v4299_v10 = vld [vmem:[%s13202_s7 + $0x20] sm:$0xff]  ;;  %8589 = vmatpush3.msra.mxu1 %v6272_v32 }
 0x708   :  { %8507 = vmatprep.subr.mxu0 %v14178_v16  ;;  %v14182_v24 = vand.u32 4294901760, %v12223_v45  ;;  %v6293_v47 = vand.u32 4294901760, %v12709_v4  ;;  %v14183_v16 = vand.u32 4294901760, %v12650_v35  ;;  %v12770_v22 = vsub.f32 %v4302_v49, %v12712_v57  ;;  %8590 = vmatprep.subr.mxu1 %v6391_v9 }
 0x709   :  { %v12751_v14 = vsub.f32 %v12637_v48, %v14179_v5  ;;  %14180 = vst [vmem:[#allocation17_spill] sm:$0xff] %v12754_v8  ;;  %14181 = vst [vmem:[#allocation30_spill] sm:$0xff] %v12756_v59  ;;  %v12772_v30 = vand.u32 4294901760, %v4300_v33  ;;  %v4314_v48 = vld [vmem:[%s13202_s7 + $0x98] sm:$0xff]  ;;  %v14185_v45 = vand.u32 4294901760, %v12233_v46  ;;  %v6412_v41 = vand.u32 4294901760, %v12722_v20  ;;  %8591 = vmatpush3.msra.mxu1 %v6279_v21 }
 0x70a   :  { %8508 = vmatpush3.msra.mxu0 %v14182_v24  ;;  %v12767_v5 = vsub.f32 %v12650_v35, %v14183_v16  ;;  %14184 = vst [vmem:[#allocation13_spill] sm:$0xff] %v12770_v22  ;;  %v14186_v4 = vand.u32 4294901760, %v12666_v11  ;;  %v12786_v49 = vsub.f32 %v4317_v42, %v12725_v39  ;;  %v12788_v16 = vand.u32 4294901760, %v4315_v53  ;;  %v4298_v35 = vld [vmem:[%s13202_s7 + $0x18] sm:$0xff]  ;;  %8592 = vmatprep.subr.mxu1 %v6398_v54 }
 0x70b   :  { %8509 = vmatprep.subr.mxu0 %v14185_v45  ;;  %v14188_v46 = vand.u32 4294901760, %v12241_v19  ;;  %v6300_v32 = vand.u32 4294901760, %v12736_v0  ;;  %v14189_v20 = vand.u32 4294901760, %v12682_v26  ;;  %v12802_v42 = vsub.f32 %v4301_v55, %v12739_v61  ;;  %v4297_v55 = vld [vmem:[%s13202_s7 + $0x10] sm:$0xff]  ;;  %8593 = vmatpush3.msra.mxu1 %v6286_v60 }
 0x70c   :  { %v12783_v24 = vsub.f32 %v12666_v11, %v14186_v4  ;;  %14187 = vst [vmem:[#allocation26_spill] sm:$0xff] %v12786_v49  ;;  %v12804_v4 = vand.u32 4294901760, %v4299_v10  ;;  %v4313_v11 = vld [vmem:[%s13202_s7 + $0x90] sm:$0xff]  ;;  %v14190_v19 = vand.u32 4294901760, %v12249_v58  ;;  %v6419_v0 = vand.u32 4294901760, %v12751_v14  ;;  %8594 = vmatprep.subr.mxu1 %v6405_v36 }
 0x70d   :  { %8510 = vmatpush3.msra.mxu0 %v14188_v46  ;;  %v12799_v45 = vsub.f32 %v12682_v26, %v14189_v20  ;;  %v13586_v9 = vand.u32 4294901760, %v12754_v8  ;;  %v12814_v46 = vsub.f32 %v4316_v18, %v12756_v59  ;;  %v12816_v20 = vand.u32 4294901760, %v4314_v48  ;;  %v4312_v18 = vld [vmem:[%s13202_s7 + $0x88] sm:$0xff]  ;;  %8595 = vmatpush3.msra.mxu1 %v6293_v47 }
 0x70e   :  { %8511 = vmatprep.subr.mxu0 %v14190_v19  ;;  %v14191_v26 = vand.u32 4294901760, %v12257_v56  ;;  %v6307_v58 = vand.u32 4294901760, %v12767_v5  ;;  %v12826_v14 = vsub.f32 %v4300_v33, %v12772_v30  ;;  %v12828_v19 = vand.u32 4294901760, %v4298_v35  ;;  %v4296_v33 = vld [vmem:[%s13202_s7 + $0x8] sm:$0xff]  ;;  %8596 = vmatprep.subr.mxu1 %v6412_v41 }
 0x70f   :  { %v6426_v54 = vand.u32 4294901760, %v12783_v24  ;;  %v12839_v5 = vand.u32 4294901760, %v4313_v11  ;;  %v6314_v60 = vand.u32 4294901760, %v12799_v45  ;;  %v12848_v24 = vsub.f32 %v4299_v10, %v12804_v4  ;;  %8597 = vmatpush3.msra.mxu1 %v6300_v32 }
 0x710   :  { %8512 = vmatpush3.msra.mxu0 %v14191_v26  ;;  %v12837_v26 = vsub.f32 %v4315_v53, %v12788_v16  ;;  %v12850_v56 = vand.u32 4294901760, %v4297_v55  ;;  %v4311_v53 = vld [vmem:[%s13202_s7 + $0x80] sm:$0xff]  ;;  %v14193_v21 = vand.u32 4294901760, %v12513_v6  ;;  %v6432_v36 = vsub.f32 %v12754_v8, %v13586_v9  ;;  %8598 = vmatprep.subr.mxu1 %v6419_v0 }
 0x711   :  { %6028 = vmatmul.mubr.f32.vlgmr.msra.gmra.mxu0 %v14174_v44  ;;  %8551 = vmatprep.subr.mxu0 %v12439_v52  ;;  %v12863_v10 = vsub.f32 %v4314_v48, %v12816_v20  ;;  %v12865_v44 = vand.u32 4294901760, %v4312_v18  ;;  %v14194_v6 = vand.u32 4294901760, %v12770_v22  ;;  %v12876_v45 = vsub.f32 %v4298_v35, %v12828_v19 }
 0x712   :  { %14192 = vst [vmem:[#allocation9_spill] sm:$0xff] %v12850_v56  ;;  %8552 = vmatpush3.msra.mxu0 %v12447_v13  ;;  %6249 = vmatprep.mubr.f32.mxu0 %v14193_v21  ;;  %v12878_v48 = vand.u32 4294901760, %v4296_v33  ;;  %v14196_v8 = vand.u32 4294901760, %v12786_v49  ;;  %v12886_v37 = vsub.f32 %v4313_v11, %v12839_v5  ;;  %v14197_v35 = vand.u32 4294901760, %v12802_v42 }
 0x713   :  { %8553 = vmatprep.subr.mxu0 %v12455_v38  ;;  %v6320_v21 = vsub.f32 %v12770_v22, %v14194_v6  ;;  %v12888_v6 = vand.u32 4294901760, %v4311_v53  ;;  %v12896_v22 = vsub.f32 %v4297_v55, %v12850_v56  ;;  %v6433_v11 = vand.u32 4294901760, %v6432_v36  ;;  %8599 = vmatpush3.msra.mxu1 %v6307_v58 }
 0x714   :  { %14195 = vst [vmem:[#allocation12_spill] sm:$0xff] %v12878_v48  ;;  %8554 = vmatpush3.msra.mxu0 %v12463_v43  ;;  %v6439_v47 = vsub.f32 %v12786_v49, %v14196_v8  ;;  %v6327_v41 = vsub.f32 %v12802_v42, %v14197_v35  ;;  %v12898_v8 = vand.u32 4294901760, %v4295_v29  ;;  %v14198_v15 = vand.u32 4294901760, %v12814_v46  ;;  %8600 = vmatprep.subr.mxu1 %v6426_v54 }
 0x715   :  { %8555 = vmatprep.subr.mxu0 %v12475_v2  ;;  %v12906_v1 = vsub.f32 %v4312_v18, %v12865_v44  ;;  %v6321_v55 = vand.u32 4294901760, %v6320_v21  ;;  %v14199_v35 = vand.u32 4294901760, %v12826_v14  ;;  %v12914_v36 = vsub.f32 %v4296_v33, %v12878_v48  ;;  %8601 = vmatpush3.msra.mxu1 %v6314_v60 }
 0x716   :  { %8556 = vmatpush3.msra.mxu0 %v12486_v23  ;;  %v6446_v32 = vsub.f32 %v12814_v46, %v14198_v15  ;;  %v6440_v15 = vand.u32 4294901760, %v6439_v47  ;;  %v14200_v18 = vand.u32 4294901760, %v12837_v26  ;;  %v12922_v21 = vsub.f32 %v4311_v53, %v12888_v6  ;;  %8602 = vmatprep.subr.mxu1 %v6433_v11 }
 0x717   :  { %8557 = vmatprep.subr.mxu0 %v12497_v3  ;;  %v6334_v0 = vsub.f32 %v12826_v14, %v14199_v35  ;;  %v6328_v35 = vand.u32 4294901760, %v6327_v41  ;;  %v14201_v33 = vand.u32 4294901760, %v12848_v24  ;;  %v12930_v47 = vsub.f32 %v4295_v29, %v12898_v8  ;;  %8603 = vmatpush3.msra.mxu1 %v6321_v55 }
 0x718   :  { %8558 = vmatpush3.msra.mxu0 %v12508_v63  ;;  %v6453_v58 = vsub.f32 %v12837_v26, %v14200_v18  ;;  %v6447_v18 = vand.u32 4294901760, %v6446_v32  ;;  %v14202_v53 = vand.u32 4294901760, %v12863_v10  ;;  %8604 = vmatprep.subr.mxu1 %v6440_v15  ;;  %v14204_v32 = vand.u32 4294901760, %v12886_v37 }
 0x719   :  { %8559 = vmatprep.subr.mxu0 %v12525_v12  ;;  %v6341_v54 = vsub.f32 %v12848_v24, %v14201_v33  ;;  %v6335_v41 = vand.u32 4294901760, %v6334_v0  ;;  %v14203_v33 = vand.u32 4294901760, %v12876_v45  ;;  %8605 = vmatpush3.msra.mxu1 %v6328_v35  ;;  %v14205_v0 = vand.u32 4294901760, %v12896_v22 }
 0x71a   :  { %8560 = vmatpush3.msra.mxu0 %v12537_v7  ;;  %v6460_v60 = vsub.f32 %v12863_v10, %v14202_v53  ;;  %v6454_v11 = vand.u32 4294901760, %v6453_v58  ;;  %v6467_v53 = vsub.f32 %v12886_v37, %v14204_v32  ;;  %8606 = vmatprep.subr.mxu1 %v6447_v18  ;;  %v14206_v58 = vand.u32 4294901760, %v12906_v1 }
 0x71b   :  { %8561 = vmatprep.subr.mxu0 %v12549_v25  ;;  %v6348_v9 = vsub.f32 %v12876_v45, %v14203_v33  ;;  %v6342_v55 = vand.u32 4294901760, %v6341_v54  ;;  %v6355_v33 = vsub.f32 %v12896_v22, %v14205_v0  ;;  %8607 = vmatpush3.msra.mxu1 %v6335_v41  ;;  %v14207_v54 = vand.u32 4294901760, %v12914_v36 }
 0x71c   :  { %8562 = vmatpush3.msra.mxu0 %v12562_v27  ;;  %v6461_v15 = vand.u32 4294901760, %v6460_v60  ;;  %v6474_v32 = vsub.f32 %v12906_v1, %v14206_v58  ;;  %8608 = vmatprep.subr.mxu1 %v6454_v11  ;;  %v6468_v0 = vand.u32 4294901760, %v6467_v53  ;;  %v14208_v18 = vand.u32 4294901760, %v12922_v21 }
 0x71d   :  { %8563 = vmatprep.subr.mxu0 %v12579_v50  ;;  %v6349_v35 = vand.u32 4294901760, %v6348_v9  ;;  %v6362_v49 = vsub.f32 %v12914_v36, %v14207_v54  ;;  %v12965_v29 = vand.u32 4294901760, %v12388_v62  ;;  %8609 = vmatpush3.msra.mxu1 %v6342_v55  ;;  %v6356_v41 = vand.u32 4294901760, %v6355_v33 }
 0x71e   :  { %8564 = vmatpush3.msra.mxu0 %v12596_v40  ;;  %v6481_v60 = vsub.f32 %v12922_v21, %v14208_v18  ;;  %v14210_v9 = vand.u32 4294901760, %v12930_v47  ;;  %8610 = vmatprep.subr.mxu1 %v6461_v15  ;;  %v6475_v11 = vand.u32 4294901760, %v6474_v32  ;;  %v14214_v18 = vld [vmem:[#allocation25_spill] sm:$0xff] }
 0x71f   :  { %8565 = vmatprep.subr.mxu0 %v12610_v28  ;;  %14209 = vst [vmem:[#allocation21_spill] sm:$0xff] %v12965_v29  ;;  %8611 = vmatpush3.msra.mxu1 %v6349_v35  ;;  %v6363_v53 = vand.u32 4294901760, %v6362_v49  ;;  %v12976_v55 = vsub.f32 %v12388_v62, %v12965_v29  ;;  %v14211_v62 = vld [vmem:[#allocation40_spill] sm:$0xff] }
 0x720   :  { %8566 = vmatpush3.msra.mxu0 %v12624_v31  ;;  %v6369_v58 = vsub.f32 %v12930_v47, %v14210_v9  ;;  %8612 = vmatprep.subr.mxu1 %v6468_v0  ;;  %v6482_v54 = vand.u32 4294901760, %v6481_v60  ;;  %v14212_v15 = vand.u32 4294901760, %v14211_v62  ;;  %v14213_v0 = vld [vmem:[#allocation22_spill] sm:$0xff]  ;;  %v14215_v60 = vld [vmem:[#allocation33_spill] sm:$0xff] }
 0x721   :  { %8567 = vmatprep.subr.mxu0 %v12697_v51  ;;  %8613 = vmatpush3.msra.mxu1 %v6356_v41  ;;  %v13599_v49 = vand.u32 4294901760, %v12976_v55  ;;  %v14216_v41 = vld [vmem:[#allocation35_spill] sm:$0xff]  ;;  %v14217_v9 = vld [vmem:[#allocation41_spill] sm:$0xff] }
 0x722   :  { %8568 = vmatpush3.msra.mxu0 %v12712_v57  ;;  %v6370_v33 = vand.u32 4294901760, %v6369_v58  ;;  %8614 = vmatprep.subr.mxu1 %v6475_v11  ;;  %v14218_v58 = vld [vmem:[#allocation42_spill] sm:$0xff]  ;;  %v14219_v11 = vld [vmem:[#allocation8_spill] sm:$0xff] }
 0x723   :  { %8569 = vmatprep.subr.mxu0 %v12725_v39  ;;  %8615 = vmatpush3.msra.mxu1 %v6363_v53  ;;  %v6253_v32 = vsub.f32 %v12976_v55, %v13599_v49  ;;  %v14220_v53 = vld [vmem:[#allocation23_spill] sm:$0xff]  ;;  %v14227_v49 = vld [vmem:[#allocation17_spill] sm:$0xff] }
 0x724   :  { %8570 = vmatpush3.msra.mxu0 %v12739_v61  ;;  %8616 = vmatprep.subr.mxu1 %v6482_v54  ;;  %v14221_v54 = vld [vmem:[#allocation43_spill] sm:$0xff] }
 0x725   :  { %8571 = vmatprep.subr.mxu0 %v12756_v59  ;;  %8617 = vmatpush3.msra.mxu1 %v6370_v33  ;;  %v6254_v35 = vand.u32 4294901760, %v6253_v32  ;;  %v14222_v33 = vld [vmem:[#allocation37_spill] sm:$0xff]  ;;  %v14225_v32 = vld [vmem:[#allocation11_spill] sm:$0xff] }
 0x726   :  { %8572 = vmatpush3.msra.mxu0 %v12772_v30  ;;  %6487 = vmatmul.mubr.f32.vlgmr.msra.gmra.mxu1 %v12965_v29  ;;  %v14228_v29 = vld [vmem:[#allocation13_spill] sm:$0xff] }
 0x727   :  { %8573 = vmatprep.subr.mxu0 %v12788_v16  ;;  %8656 = vmatprep.subr.mxu1 %v12439_v52 }
 0x728   :  { %8574 = vmatpush3.msra.mxu0 %v12804_v4  ;;  %8657 = vmatpush3.msra.mxu1 %v12447_v13 }
 0x729   :  { %8575 = vmatprep.subr.mxu0 %v12816_v20  ;;  %6729 = vmatprep.mubr.f32.mxu1 %v14212_v15  ;;  %v14224_v15 = vld [vmem:[#allocation15_spill] sm:$0xff] }
 0x72a   :  { %8576 = vmatpush3.msra.mxu0 %v12828_v19  ;;  %8658 = vmatprep.subr.mxu1 %v12455_v38 }
 0x72b   :  { %8577 = vmatprep.subr.mxu0 %v12839_v5  ;;  %8659 = vmatpush3.msra.mxu1 %v12463_v43 }
 0x72c   :  { %8578 = vmatpush3.msra.mxu0 %v12850_v56  ;;  %8660 = vmatprep.subr.mxu1 %v12475_v2 }
 0x72d   :  { %8579 = vmatprep.subr.mxu0 %v12865_v44  ;;  %8661 = vmatpush3.msra.mxu1 %v12486_v23 }
 0x72e   :  { %8580 = vmatpush3.msra.mxu0 %v12878_v48  ;;  %8662 = vmatprep.subr.mxu1 %v12497_v3 }
 0x72f   :  { %8581 = vmatprep.subr.mxu0 %v12888_v6  ;;  %8663 = vmatpush3.msra.mxu1 %v12508_v63 }
 0x730   :  { %8582 = vmatpush3.msra.mxu0 %v12898_v8  ;;  %8664 = vmatprep.subr.mxu1 %v12525_v12 }
 0x731   :  { %6255 = vmatmul.mubr.f32.vlgmr.msra.gmra.mxu0 %v6254_v35  ;;  %8621 = vmatprep.subr.mxu0 %v14213_v0  ;;  %v14226_v35 = vld [vmem:[#allocation18_spill] sm:$0xff] }
 0x732   :  { %8622 = vmatpush3.msra.mxu0 %v12484_v34  ;;  %6622 = vmatprep.mubr.f32.mxu0 %v14211_v62  ;;  %v14223_v62 = vld [vmem:[#allocation39_spill] sm:$0xff] }
 0x733   :  { %8665 = vmatpush3.msra.mxu1 %v12537_v7  ;;  %8623 = vmatprep.subr.mxu0 %v12495_v17 }
 0x734   :  { %8666 = vmatprep.subr.mxu1 %v12549_v25  ;;  %8624 = vmatpush3.msra.mxu0 %v14214_v18 }
 0x735   :  { %8667 = vmatpush3.msra.mxu1 %v12562_v27  ;;  %8625 = vmatprep.subr.mxu0 %v14215_v60 }
 0x736   :  { %8668 = vmatprep.subr.mxu1 %v12579_v50  ;;  %8626 = vmatpush3.msra.mxu0 %v14216_v41 }
 0x737   :  { %8669 = vmatpush3.msra.mxu1 %v12596_v40  ;;  %8627 = vmatprep.subr.mxu0 %v14217_v9 }
 0x738   :  { %8670 = vmatprep.subr.mxu1 %v12610_v28  ;;  %8628 = vmatpush3.msra.mxu0 %v14218_v58 }
 0x739   :  { %8671 = vmatpush3.msra.mxu1 %v12624_v31  ;;  %8629 = vmatprep.subr.mxu0 %v14219_v11 }
 0x73a   :  { %8672 = vmatprep.subr.mxu1 %v12697_v51  ;;  %8630 = vmatpush3.msra.mxu0 %v14220_v53 }
 0x73b   :  { %8673 = vmatpush3.msra.mxu1 %v12712_v57  ;;  %8631 = vmatprep.subr.mxu0 %v14221_v54 }
 0x73c   :  { %8674 = vmatprep.subr.mxu1 %v12725_v39  ;;  %8632 = vmatpush3.msra.mxu0 %v14222_v33 }
 0x73d   :  { %8675 = vmatpush3.msra.mxu1 %v12739_v61  ;;  %8633 = vmatprep.subr.mxu0 %v14223_v62 }
 0x73e   :  { %8676 = vmatprep.subr.mxu1 %v12756_v59  ;;  %8634 = vmatpush3.msra.mxu0 %v14224_v15  ;;  %v14229_v59 = vld [vmem:[#allocation26_spill] sm:$0xff] }
 0x73f   :  { %8677 = vmatpush3.msra.mxu1 %v12772_v30  ;;  %8635 = vmatprep.subr.mxu0 %v14225_v32 }
 0x740   :  { %8678 = vmatprep.subr.mxu1 %v12788_v16  ;;  %8636 = vmatpush3.msra.mxu0 %v14226_v35 }
 0x741   :  { %8679 = vmatpush3.msra.mxu1 %v12804_v4  ;;  %8637 = vmatprep.subr.mxu0 %v14227_v49 }
 0x742   :  { %8680 = vmatprep.subr.mxu1 %v12816_v20  ;;  %8638 = vmatpush3.msra.mxu0 %v14228_v29 }
 0x743   :  { %8681 = vmatpush3.msra.mxu1 %v12828_v19  ;;  %8639 = vmatprep.subr.mxu0 %v14229_v59 }
 0x744   :  { %8682 = vmatprep.subr.mxu1 %v12839_v5  ;;  %8640 = vmatpush3.msra.mxu0 %v12802_v42 }
 0x745   :  { %8683 = vmatpush3.msra.mxu1 %v12850_v56  ;;  %8641 = vmatprep.subr.mxu0 %v12814_v46  ;;  %v14230_v56 = vand.u32 4294901760, %v12976_v55 }
 0x746   :  { %8684 = vmatprep.subr.mxu1 %v12865_v44  ;;  %8642 = vmatpush3.msra.mxu0 %v12826_v14 }
 0x747   :  { %8685 = vmatpush3.msra.mxu1 %v12878_v48  ;;  %8643 = vmatprep.subr.mxu0 %v12837_v26  ;;  %v14231_v48 = vld [vmem:[#allocation19_spill] sm:$0xff] }
 0x748   :  { %8686 = vmatprep.subr.mxu1 %v12888_v6  ;;  %8644 = vmatpush3.msra.mxu0 %v12848_v24 }
 0x749   :  { %8687 = vmatpush3.msra.mxu1 %v12898_v8  ;;  %8645 = vmatprep.subr.mxu0 %v12863_v10 }
 0x74a   :  { %6733 = vmatmul.mubr.f32.vlgmr.msra.gmra.mxu1 %v14230_v56  ;;  %8726 = vmatprep.subr.mxu1 %v12439_v52  ;;  %v14232_v52 = vand.u32 4294901760, %v14213_v0  ;;  %v14263_v56 = vmov 0.0  }
 0x74b   :  { %8646 = vmatpush3.msra.mxu0 %v12876_v45  ;;  %8727 = vmatpush3.msra.mxu1 %v12447_v13  ;;  %v14233_v13 = vand.u32 4294901760, %v12484_v34  ;;  %v14237_v34 = vand.u32 4294901760, %v14216_v41 }
 0x74c   :  { %7003 = vmatprep.mubr.f32.mxu1 %v14231_v48  ;;  %8647 = vmatprep.subr.mxu0 %v12886_v37 }
 0x74d   :  { %8728 = vmatprep.subr.mxu1 %v12455_v38  ;;  %8648 = vmatpush3.msra.mxu0 %v12896_v22  ;;  %v14234_v38 = vand.u32 4294901760, %v12495_v17  ;;  %v14239_v17 = vand.u32 4294901760, %v14218_v58 }
 0x74e   :  { %8729 = vmatpush3.msra.mxu1 %v12463_v43  ;;  %8649 = vmatprep.subr.mxu0 %v12906_v1  ;;  %v14235_v43 = vand.u32 4294901760, %v14214_v18 }
 0x74f   :  { %8730 = vmatprep.subr.mxu1 %v12475_v2  ;;  %8650 = vmatpush3.msra.mxu0 %v12914_v36  ;;  %v14236_v2 = vand.u32 4294901760, %v14215_v60 }
 0x750   :  { %8731 = vmatpush3.msra.mxu1 %v12486_v23  ;;  %8651 = vmatprep.subr.mxu0 %v12922_v21  ;;  %v14238_v23 = vand.u32 4294901760, %v14217_v9 }
 0x751   :  { %8732 = vmatprep.subr.mxu1 %v12497_v3  ;;  %8652 = vmatpush3.msra.mxu0 %v12930_v47  ;;  %v14240_v3 = vand.u32 4294901760, %v14219_v11 }
 0x752   :  { %8733 = vmatpush3.msra.mxu1 %v12508_v63  ;;  %6625 = vmatmul.mubr.f32.vlgmr.msra.gmra.mxu0 %v12976_v55  ;;  %v14241_v63 = vand.u32 4294901760, %v14220_v53 }
 0x753   :  { %8691 = vmatprep.subr.mxu0 %v14232_v52  ;;  %8734 = vmatprep.subr.mxu1 %v12525_v12  ;;  %v14242_v12 = vand.u32 4294901760, %v14221_v54 }
 0x754   :  { %8692 = vmatpush3.msra.mxu0 %v14233_v13  ;;  %6899 = vmatprep.mubr.f32.mxu0 %v14231_v48 }
 0x755   :  { %8735 = vmatpush3.msra.mxu1 %v12537_v7  ;;  %8693 = vmatprep.subr.mxu0 %v14234_v38  ;;  %v14243_v7 = vand.u32 4294901760, %v14222_v33 }
 0x756   :  { %8736 = vmatprep.subr.mxu1 %v12549_v25  ;;  %8694 = vmatpush3.msra.mxu0 %v14235_v43  ;;  %v14244_v25 = vand.u32 4294901760, %v14223_v62 }
 0x757   :  { %8737 = vmatpush3.msra.mxu1 %v12562_v27  ;;  %8695 = vmatprep.subr.mxu0 %v14236_v2  ;;  %v14246_v27 = vand.u32 4294901760, %v14224_v15 }
 0x758   :  { %8738 = vmatprep.subr.mxu1 %v12579_v50  ;;  %8696 = vmatpush3.msra.mxu0 %v14237_v34  ;;  %v14245_v50 = vld [vmem:[#allocation30_spill] sm:$0xff] }
 0x759   :  { %8739 = vmatpush3.msra.mxu1 %v12596_v40  ;;  %8697 = vmatprep.subr.mxu0 %v14238_v23  ;;  %v14247_v40 = vand.u32 4294901760, %v14225_v32 }
 0x75a   :  { %8740 = vmatprep.subr.mxu1 %v12610_v28  ;;  %8698 = vmatpush3.msra.mxu0 %v14239_v17  ;;  %v14248_v28 = vand.u32 4294901760, %v14226_v35 }
 0x75b   :  { %8741 = vmatpush3.msra.mxu1 %v12624_v31  ;;  %8699 = vmatprep.subr.mxu0 %v14240_v3  ;;  %v14249_v31 = vand.u32 4294901760, %v14227_v49 }
 0x75c   :  { %8742 = vmatprep.subr.mxu1 %v12697_v51  ;;  %8700 = vmatpush3.msra.mxu0 %v14241_v63  ;;  %v14252_v51 = vand.u32 4294901760, %v12802_v42  ;;  %v14258_v42 = vand.u32 4294901760, %v12848_v24  ;;  %v14267_v24 = vand.u32 4294901760, %v12922_v21 }
 0x75d   :  { %8743 = vmatpush3.msra.mxu1 %v12712_v57  ;;  %8701 = vmatprep.subr.mxu0 %v14242_v12  ;;  %v14250_v57 = vand.u32 4294901760, %v14228_v29 }
 0x75e   :  { %8744 = vmatprep.subr.mxu1 %v12725_v39  ;;  %8702 = vmatpush3.msra.mxu0 %v14243_v7  ;;  %v14254_v39 = vand.u32 4294901760, %v12814_v46  ;;  %v14259_v46 = vand.u32 4294901760, %v12863_v10 }
 0x75f   :  { %8745 = vmatpush3.msra.mxu1 %v12739_v61  ;;  %8703 = vmatprep.subr.mxu0 %v14244_v25  ;;  %v14253_v61 = vld [vmem:[#allocation9_spill] sm:$0xff] }
 0x760   :  { %8746 = vmatprep.subr.mxu1 %v14245_v50  ;;  %8704 = vmatpush3.msra.mxu0 %v14246_v27 }
 0x761   :  { %8747 = vmatpush3.msra.mxu1 %v12772_v30  ;;  %8705 = vmatprep.subr.mxu0 %v14247_v40  ;;  %v14251_v30 = vand.u32 4294901760, %v14229_v59  ;;  %v14257_v59 = vand.u32 4294901760, %v12837_v26  ;;  %v14264_v26 = vand.u32 4294901760, %v12896_v22  ;;  %v8198_v22 = vpop.f32.mrf.mxu1 }
 0x762   :  { %8748 = vmatprep.subr.mxu1 %v12788_v16  ;;  %8706 = vmatpush3.msra.mxu0 %v14248_v28  ;;  %v14255_v16 = vand.u32 4294901760, %v12826_v14  ;;  %v14261_v14 = vand.u32 4294901760, %v12876_v45  ;;  %v14268_v45 = vand.u32 4294901760, %v12930_v47 }
 0x763   :  { %8749 = vmatpush3.msra.mxu1 %v12804_v4  ;;  %8707 = vmatprep.subr.mxu0 %v14249_v31  ;;  %v14256_v4 = vld [vmem:[#allocation12_spill] sm:$0xff] }
 0x764   :  { %8750 = vmatprep.subr.mxu1 %v12816_v20  ;;  %8708 = vmatpush3.msra.mxu0 %v14250_v57  ;;  %v14260_v20 = vld [vmem:[#allocation21_spill] sm:$0xff] }
 0x765   :  { %8751 = vmatpush3.msra.mxu1 %v12828_v19  ;;  %8709 = vmatprep.subr.mxu0 %v14251_v30  ;;  %v14262_v19 = vand.u32 4294901760, %v12886_v37  ;;  %v8163_v37 = vpop.f32.mrf.mxu0 }
 0x766   :  { %8752 = vmatprep.subr.mxu1 %v12839_v5  ;;  %8710 = vmatpush3.msra.mxu0 %v14252_v51  ;;  %v14265_v5 = vand.u32 4294901760, %v12906_v1  ;;  %v7021_v1 = vld [vmem:[#allocation2] sm:$0x1] }
 0x767   :  { %8753 = vmatpush3.msra.mxu1 %v14253_v61  ;;  %8711 = vmatprep.subr.mxu0 %v14254_v39  ;;  %v8164_v10 = vpop.f32.mrf.mxu0 }
 0x768   :  { %8754 = vmatprep.subr.mxu1 %v12865_v44  ;;  %8712 = vmatpush3.msra.mxu0 %v14255_v16  ;;  %v14266_v44 = vand.u32 4294901760, %v12914_v36  ;;  %v8165_v21 = vadd.f32 %v8164_v10, %v8163_v37 }
 0x769   :  { %8755 = vmatpush3.msra.mxu1 %v14256_v4  ;;  %8713 = vmatprep.subr.mxu0 %v14257_v59  ;;  %v8233_v48 = vpop.f32.mrf.mxu0 }
 0x76a   :  { %8756 = vmatprep.subr.mxu1 %v12888_v6  ;;  %8714 = vmatpush3.msra.mxu0 %v14258_v42  ;;  %v8199_v6 = vpop.f32.mrf.mxu1 }
 0x76b   :  { %8757 = vmatpush3.msra.mxu1 %v12898_v8  ;;  %8715 = vmatprep.subr.mxu0 %v14259_v46  ;;  %v8234_v36 = vpop.f32.mrf.mxu0  ;;  %v8200_v29 = vadd.f32 %v8199_v6, %v8198_v22 }
 0x76c   :  { %7005 = vmatmul.mubr.f32.vlgmr.msra.gmra.mxu1 %v14260_v20  ;;  %8716 = vmatpush3.msra.mxu0 %v14261_v14  ;;  %v8268_v8 = vpop.f32.mrf.mxu1  ;;  %v8235_v55 = vadd.f32 %v8234_v36, %v8233_v48  ;;  %v7020_v14 = vld [vmem:[%s13205_s10] sm:$0x1] }
 0x76d   :  { %8717 = vmatprep.subr.mxu0 %v14262_v19  ;;  %8778 = vmatprep.subr.mxu1 %v14263_v56  ;;  %v8303_v47 = vpop.f32.mrf.mxu0  ;;  %v4754_v0 = vadd.f32 %v8200_v29, %v8165_v21 }
 0x76e   :  { %8718 = vmatpush3.msra.mxu0 %v14264_v26  ;;  %8780 = vmatprep.mubr.msk.f32.mxu1 %vm8847_vm5, %v14263_v56  ;;  %v8269_v49 = vpop.f32.mrf.mxu1 }
 0x76f   :  { %8719 = vmatprep.subr.mxu0 %v14265_v5  ;;  %7024 = vperm.xlu0 %8809, %v7021_v1   ;;  %v8304_v60 = vpop.f32.mrf.mxu0  ;;  %v4892_v41 = vadd.f32 %v8235_v55, %v4754_v0  ;;  %v8270_v58 = vadd.f32 %v8269_v49, %v8268_v8  ;;  %v7500_v49 = vld [vmem:[%s13204_s9] ss:$0 sm:$0xff]  ;;  %s8848_s9 = smov [#allocation3]  }
 0x770   :  { %8720 = vmatpush3.msra.mxu0 %v14266_v44  ;;  %v8338_v18 = vpop.f32.mrf.mxu1  ;;  %v8305_v11 = vadd.f32 %v8304_v60, %v8303_v47  ;;  %v7033_v44 = vsel %vm7031_vm6, %v7020_v14, 0  ;;  %s7492_s11 = sshll.u32 %s8848_s9, 4  ;;  %s7493_s11 = int_to_ptr.vmem [resolvable:$true] %s7492_s11 }
 0x771   :  { %8721 = vmatprep.subr.mxu0 %v14267_v24  ;;  %v5000_v54 = vadd.f32 %v8270_v58, %v4892_v41  ;;  %v7104_v37 = vand.u32 4294901760, %v7033_v44  ;;  %s8822_s3 = scalar_lea.vmem %s7493_s11, 16  ;;  %s8826_s29 = scalar_lea.vmem %s7493_s11, 32 }
 0x772   :  { %8722 = vmatpush3.msra.mxu0 %v14268_v45  ;;  %v8339_v53 = vpop.f32.mrf.mxu1  ;;  %p8823_p0 = scmp.ne.s32.totalorder %s7493_s11, %s8822_s3  ;;  %p8827_p1 = scmp.lt.s32.totalorder %s7493_s11, %s7493_s11 }
 0x773   :  { %6901 = vmatmul.mubr.f32.vlgmr.msra.gmra.mxu0 %v14260_v20  ;;  %8773 = vmatprep.subr.mxu0 %v14263_v56  ;;  %v5168_v15 = vadd.f32 %v8305_v11, %v5000_v54  ;;  %v8340_v35 = vadd.f32 %v8339_v53, %v8338_v18  ;;  %v7105_v36 = vsub.f32 %v7033_v44, %v7104_v37  ;;  %p8828_p2 = scmp.lt.s32.totalorder %s8826_s29, %s8822_s3 }
 0x774   :  { %8775 = vmatprep.mubr.msk.f32.mxu0 %vm8847_vm5, %v14263_v56 }
 0x775   :  { %v5272_v38 = vadd.f32 %v8340_v35, %v5168_v15  ;;  %v7106_v0 = vand.u32 4294901760, %v7105_v36  ;;  %p8829_p3 = por %p8828_p2, %p8827_p1 }
 0x777   :  { %v7107_v41 = vsub.f32 %v7105_v36, %v7106_v0  ;;  %p8830_p4 = pnand %p8829_p3, %p8823_p0 }
 0x779   :  { %v7108_v53 = vand.u32 4294901760, %v7107_v41 }
 0x77d   :  { %v8408_v33 = vpop.f32.mrf.mxu1 }
 0x77f   :  { %v8409_v13 = vpop.f32.mrf.mxu1 }
 0x780   :  { %v8410_v17 = vadd.f32 %v8409_v13, %v8408_v33 }
 0x787   :  { %v8373_v9 = vpop.f32.mrf.mxu0 }
 0x789   :  { %v8374_v62 = vpop.f32.mrf.mxu0 }
 0x78a   :  { %v8375_v52 = vadd.f32 %v8374_v62, %v8373_v9 }
 0x78c   :  { %v5384_v34 = vadd.f32 %v8375_v52, %v5272_v38 }
 0x78e   :  { %v5616_v12 = vadd.f32 %v8410_v17, %v5384_v34 }
 0x7a0   :  { %v8478_v43 = vpop.f32.mrf.mxu1 }
 0x7a2   :  { %v8479_v63 = vpop.f32.mrf.mxu1 }
 0x7a3   :  { %v8480_v40 = vadd.f32 %v8479_v63, %v8478_v43 }
 0x7a9   :  { %v8443_v32 = vpop.f32.mrf.mxu0 }
 0x7ab   :  { %v8444_v2 = vpop.f32.mrf.mxu0 }
 0x7ac   :  { %v8445_v3 = vadd.f32 %v8444_v2, %v8443_v32  ;;  %v14269_v32 = vld [vmem:[#allocation28_spill] sm:$0xff] }
 0x7ad   :  { %v7029_v35 = vsub.s32 0, %v14269_v32 }
 0x7ae   :  { %v5754_v50 = vadd.f32 %v8445_v3, %v5616_v12 }
 0x7b0   :  { %v5862_v57 = vadd.f32 %v8480_v40, %v5754_v50 }
 0x7c4   :  { %v8548_v7 = vpop.f32.mrf.mxu1 }
 0x7c6   :  { %v8549_v31 = vpop.f32.mrf.mxu1 }
 0x7c7   :  { %v8550_v16 = vadd.f32 %v8549_v31, %v8548_v7 }
 0x7d1   :  { %v8513_v23 = vpop.f32.mrf.mxu0 }
 0x7d3   :  { %v8514_v25 = vpop.f32.mrf.mxu0 }
 0x7d4   :  { %v8515_v28 = vadd.f32 %v8514_v25, %v8513_v23 }
 0x7d6   :  { %v6030_v61 = vadd.f32 %v8515_v28, %v5862_v57 }
 0x7d8   :  { %v6134_v42 = vadd.f32 %v8550_v16, %v6030_v61 }
 0x7e6   :  { %v8618_v30 = vpop.f32.mrf.mxu1 }
 0x7e8   :  { %v8619_v59 = vpop.f32.mrf.mxu1 }
 0x7e9   :  { %v8620_v26 = vadd.f32 %v8619_v59, %v8618_v30 }
 0x7ea   :  { %v7025_v52 = vpop.permute.xlu0 %7024 }
 0x7eb   :  { %v7030_v38 = vrot.slane %v7025_v52, %v7029_v35 }
 0x7f1   :  { %v8583_v27 = vpop.f32.mrf.mxu0 }
 0x7f3   :  { %v8584_v51 = vpop.f32.mrf.mxu0 }
 0x7f4   :  { %v8585_v4 = vadd.f32 %v8584_v51, %v8583_v27 }
 0x7f6   :  { %v6257_v19 = vadd.f32 %v8585_v4, %v6134_v42 }
 0x7f8   :  { %v6489_v45 = vadd.f32 %v8620_v26, %v6257_v19 }
 0x80a   :  { %v8688_v46 = vpop.f32.mrf.mxu1 }
 0x80c   :  { %v8689_v24 = vpop.f32.mrf.mxu1 }
 0x80d   :  { %v8690_v48 = vadd.f32 %v8689_v24, %v8688_v46 }
 0x812   :  { %v8653_v39 = vpop.f32.mrf.mxu0 }
 0x814   :  { %v8654_v20 = vpop.f32.mrf.mxu0 }
 0x815   :  { %v8655_v5 = vadd.f32 %v8654_v20, %v8653_v39 }
 0x817   :  { %v6627_v22 = vadd.f32 %v8655_v5, %v6489_v45 }
 0x819   :  { %v6735_v21 = vadd.f32 %v8690_v48, %v6627_v22 }
 0x82c   :  { %v8758_v1 = vpop.f32.mrf.mxu1 }
 0x82e   :  { %v8759_v6 = vpop.f32.mrf.mxu1 }
 0x82f   :  { %v8760_v29 = vadd.f32 %v8759_v6, %v8758_v1 }
 0x833   :  { %v8723_v10 = vpop.f32.mrf.mxu0 }
 0x835   :  { %v8724_v8 = vpop.f32.mrf.mxu0 }
 0x836   :  { %v8725_v47 = vadd.f32 %v8724_v8, %v8723_v10 }
 0x838   :  { %v6903_v55 = vadd.f32 %v8725_v47, %v6735_v21 }
 0x83a   :  { %v7007_v18 = vadd.f32 %v8760_v29, %v6903_v55 }
 0x83c   :  { %vm7010_vm7 = vcmp.ge.f32.partialorder %v7007_v18, 0.0  ;;  %v7018_v60 = vmul.f32 %v7500_v49, %v7007_v18 }
 0x83e   :  { %v7019_v9 = vsel %vm7010_vm7, %v7007_v18, %v7018_v60 }
 0x83f   :  { %v7036_v58 = vsel %vm7031_vm6, %v7019_v9, 0 }
 0x840   :  { %v7069_v11 = vand.u32 4294901760, %v7036_v58 }
 0x842   :  { %8774 = vmatpush3.xpose.msra.mxu0 %v7069_v11  ;;  %v7146_v54 = vsub.f32 %v7036_v58, %v7069_v11 }
 0x843   :  { %8783 = vmatprep.subr.mxu0 %v14263_v56 }
 0x844   :  { %v7147_v33 = vand.u32 4294901760, %v7146_v54 }
 0x845   :  { %8776 = vmatmul.mubr.f32.vlgmr.msra.gmra.mxu0 %v7108_v53 }
 0x846   :  { %8784 = vmatpush3.xpose.msra.mxu0 %v7146_v54  ;;  %8785 = vmatprep.mubr.msk.f32.mxu0 %vm8847_vm5, %v14263_v56  ;;  %v7148_v62 = vsub.f32 %v7146_v54, %v7147_v33 }
 0x847   :  { %8793 = vmatprep.subr.mxu0 %v14263_v56 }
 0x848   :  { %v7149_v15 = vand.u32 4294901760, %v7148_v62 }
 0x849   :  { %8786 = vmatmul.mubr.f32.vlgmr.msra.gmra.mxu0 %v7105_v36 }
 0x84a   :  { %8779 = vmatpush3.xpose.msra.mxu1 %v7149_v15  ;;  %8794 = vmatpush3.xpose.msra.mxu0 %v7147_v33 }
 0x84b   :  { %8788 = vmatprep.subr.mxu1 %v14263_v56  ;;  %8795 = vmatprep.mubr.msk.f32.mxu0 %vm8847_vm5, %v14263_v56 }
 0x84d   :  { %8781 = vmatmul.mubr.f32.vlgmr.msra.gmra.mxu1 %v7104_v37  ;;  %8796 = vmatmul.mubr.f32.vlgmr.msra.gmra.mxu0 %v7104_v37 }
 0x84e   :  { %8789 = vmatpush3.xpose.msra.mxu1 %v7069_v11  ;;  %8790 = vmatprep.mubr.msk.f32.mxu1 %vm8847_vm5, %v14263_v56 }
 0x84f   :  { %8798 = vmatprep.subr.mxu1 %v14263_v56 }
 0x851   :  { %8791 = vmatmul.mubr.f32.vlgmr.msra.gmra.mxu1 %v7106_v0 }
 0x852   :  { %8799 = vmatpush3.xpose.msra.mxu1 %v7069_v11  ;;  %8800 = vmatprep.mubr.msk.f32.mxu1 %vm8847_vm5, %v14263_v56 }
 0x855   :  { %8801 = vmatmul.mubr.f32.vlgmr.msra.gmra.mxu1 %v7104_v37 }
 0x905   :  { %v7110_v13 = vpop.f32.mrf.mxu0 }
 0x906   :  { %v7111_v34 = vadd.f32 %v7110_v13, %v7030_v38 }
 0x907   :  { %v8777_v43 = vpop.f32.mrf.mxu0 }
 0x909   :  { %v7260_v2 = vpop.f32.mrf.mxu0 }
 0x90b   :  { %v8787_v23 = vpop.f32.mrf.mxu0 }
 0x90d   :  { %v7186_v17 = vpop.f32.mrf.mxu1  ;;  %v7408_v3 = vpop.f32.mrf.mxu0 }
 0x90e   :  { %v7187_v63 = vadd.f32 %v7186_v17, %v7111_v34 }
 0x90f   :  { %v8782_v12 = vpop.f32.mrf.mxu1  ;;  %v8797_v7 = vpop.f32.mrf.mxu0 }
 0x910   :  { %v7261_v25 = vadd.f32 %v7260_v2, %v7187_v63 }
 0x911   :  { %v7334_v50 = vpop.f32.mrf.mxu1 }
 0x912   :  { %v7335_v27 = vadd.f32 %v7334_v50, %v7261_v25 }
 0x913   :  { %v8792_v40 = vpop.f32.mrf.mxu1 }
 0x914   :  { %v7409_v56 = vadd.f32 %v7408_v3, %v7335_v27 }
 0x915   :  { %v7480_v28 = vpop.f32.mrf.mxu1 }
 0x916   :  { %v7481_v31 = vadd.f32 %v7480_v28, %v7409_v56 }
 0x917   :  { %v8802_v57 = vpop.f32.mrf.mxu1 }
 0x918   :  { %7485 = vst.msk [vmem:[#allocation3] sm:$0x1] %vm7484_vm8, %v7481_v31 }
 0x919   :  { %8833 = shalt.err (!%p8830_p4)
}
 0x91a   :  { %7495 = dma.vmem_to_hbm [thread:$0]  %s7493_s11, 16, %s13207_s12, [#allocation4]  }
 0x91b   :  { %8842 = dma.done.wait [#allocation4], 16  }
 0x91c   :  { %8843 = vsyncadd [#allocation4], 4294967280 }
 0x91d   :  { %7499 = vsyncpa [#allocation4], 1 }

</bundles_post_ra>
